<compile_context>
chip_gen: v6e
topology: v6e:2x2x1
jax: 0.10.0
libtpu: 0.0.40
codegen_flags: <defaults>
</compile_context>

<pallas_src>
import functools

import jax
import jax.numpy as jnp
from jax.experimental import pallas as pl
from jax.experimental.pallas import tpu as pltpu


# ----------------------------------------------------------------------------
# generation-aware configuration
# ----------------------------------------------------------------------------
def _tpu_config():
    kind = ""
    try:
        kind = jax.devices()[0].device_kind.lower()
    except Exception:
        pass
    if "v5 lite" in kind or "v5e" in kind or "v5lite" in kind:
        # ~0.8 TB/s HBM, 128 MiB VMEM: favour bigger FC M-tile, moderate batch tile.
        return dict(batch_tile=128, fc_tm=512, fc_tn=256, t_block=16,
                    vmem_limit=96 * 1024 * 1024, two_tc=False)
    if "v7" in kind:
        # 64 MiB VMEM per TC, 2 TCs per chip: tighter VMEM, ensure 2 batch tiles.
        return dict(batch_tile=256, fc_tm=256, fc_tn=256, t_block=16,
                    vmem_limit=48 * 1024 * 1024, two_tc=True)
    # v6e / default: 256-wide MXU, 128 MiB VMEM.
    return dict(batch_tile=256, fc_tm=512, fc_tn=256, t_block=16,
                vmem_limit=96 * 1024 * 1024, two_tc=False)


# ----------------------------------------------------------------------------
# small helpers
# ----------------------------------------------------------------------------
def _round_up(x, m):
    return (x + m - 1) // m * m


def _choose_tile(dim, target, minimum):
    """Largest multiple of `minimum` that divides `dim`, capped at `target`.

    Falls back to the full dim (always a legal block) only if no divisor
    exists; callers pad dims to multiples of `minimum` so this never produces
    the pathological whole-dimension tile for large padded dims.
    """
    if dim <= minimum:
        return dim
    cap = min(target, dim)
    cap -= cap % minimum
    for cand in range(cap, minimum - 1, -minimum):
        if dim % cand == 0:
            return cand
    return dim


def _choose_batch_tile(Bp, cfg):
    """Pick batch tile; pad Bp to a multiple; >=2 tiles on 2-TC chips if possible."""
    target = cfg["batch_tile"]
    if Bp > target:
        bt = target
        Bp = _round_up(Bp, bt)
    elif cfg["two_tc"] and Bp >= 16:
        bt = _round_up((Bp + 1) // 2, 8)
        Bp = 2 * bt
    else:
        bt = Bp
    return Bp, bt


def _choose_time_block(L, batch_tile, Hp, cfg):
    """Timesteps per grid step: large enough to amortize the ~0.35us/step
    pipeline overhead, small enough that the double-buffered bf16 gi block
    stays well inside the per-generation VMEM budget."""
    target = cfg["t_block"]
    budget = cfg["vmem_limit"] // 3
    while target > 8 and 2 * target * batch_tile * 3 * Hp * 2 > budget:
        target //= 2
    tb = min(target, _round_up(L, 8))
    Lp = _round_up(L, tb)
    return Lp, tb


def _pad_gru_weight(w, in_new, h_new):
    """(in, 3H) -> (in_new, 3*h_new), zero-padding each gate block separately."""
    in_dim, h3 = w.shape
    h = h3 // 3
    w = w.reshape(in_dim, 3, h)
    w = jnp.pad(w, ((0, in_new - in_dim), (0, 0), (0, h_new - h)))
    return w.reshape(in_new, 3 * h_new)


def _fold_gru_biases(bih, bhh, h_new):
    """Return (gi_bias (1, 3*h_new), b_hn (1, h_new)).

    b_hh for r/z is folded into the hoisted input-projection bias; b_hn must
    stay inside r * (W_hn h + b_hn) to match torch.nn.GRU.
    """
    h = bih.shape[-1] // 3
    bi = bih.reshape(3, h)
    bh = bhh.reshape(3, h)
    gate_mask = jnp.array([1.0, 1.0, 0.0], bih.dtype)[:, None]
    gi_bias = jnp.pad(bi + bh * gate_mask, ((0, 0), (0, h_new - h)))
    b_hn = jnp.pad(bh[2:3], ((0, 0), (0, h_new - h)))
    return gi_bias.reshape(1, 3 * h_new), b_hn


def _pad_time_identity(gi, t_new, Hp):
    """Pad gi along time with EXACT identity GRU steps (z pre-activation = +80
    => sigmoid == 1.0 in f32 => h_new = h), so the encoder's final hidden is
    unchanged by the padded steps."""
    t = gi.shape[0]
    if t_new == t:
        return gi
    pad = jnp.zeros((t_new - t,) + gi.shape[1:], gi.dtype)
    pad = pad.at[:, :, Hp:2 * Hp].set(jnp.asarray(80.0, gi.dtype))
    return jnp.concatenate([gi, pad], axis=0)


# ----------------------------------------------------------------------------
# Kernel 1: tiled matmul + bias  (input projections and final FC)
# ----------------------------------------------------------------------------
def _matmul_bias_kernel(x_ref, w_ref, b_ref, o_ref, acc_ref):
    k = pl.program_id(2)

    @pl.when(k == 0)
    def _():
        acc_ref[...] = jnp.zeros_like(acc_ref)

    acc_ref[...] += jnp.dot(x_ref[...], w_ref[...],
                            preferred_element_type=jnp.float32)

    @pl.when(k == pl.num_programs(2) - 1)
    def _():
        o_ref[...] = (acc_ref[...] + b_ref[...].astype(jnp.float32)
                      ).astype(o_ref.dtype)


def matmul_bias(x, w, b, *, out_dtype=jnp.float32, tm=256, tn=512, tk=512,
                vmem_limit=64 * 1024 * 1024):
    """(M,K)@(K,N)+b with f32 accumulation.

    M must be a multiple of 8; K, N multiples of 128 (callers pad).  Tiles are
    chosen as divisors of the dims so the output tile never falls back to the
    whole (tm, N) slab.
    """
    M, K = x.shape
    _, N = w.shape
    tm = _choose_tile(M, tm, 8)
    tn = _choose_tile(N, tn, 128)
    tk = _choose_tile(K, tk, 128)
    return pl.pallas_call(
        _matmul_bias_kernel,
        out_shape=jax.ShapeDtypeStruct((M, N), out_dtype),
        grid_spec=pltpu.PrefetchScalarGridSpec(
            num_scalar_prefetch=0,
            grid=(M // tm, N // tn, K // tk),
            in_specs=[
                pl.BlockSpec((tm, tk), lambda i, j, k: (i, k)),
                pl.BlockSpec((tk, tn), lambda i, j, k: (k, j)),
                pl.BlockSpec((1, tn), lambda i, j, k: (0, j)),
            ],
            out_specs=pl.BlockSpec((tm, tn), lambda i, j, k: (i, j)),
            scratch_shapes=[pltpu.VMEM((tm, tn), jnp.float32)],
        ),
        compiler_params=pltpu.CompilerParams(
            dimension_semantics=("parallel", "parallel", "arbitrary"),
            vmem_limit_bytes=vmem_limit),
    )(x, w, b)


# ----------------------------------------------------------------------------
# Kernel 2: GRU recurrence (input projection already hoisted into gi)
# ----------------------------------------------------------------------------
def _gru_gates(gi, gh, h, bhn, hidden):
    """torch GRU gates; gi already contains b_ih + b_hh(r,z)."""
    H = hidden
    r = jax.nn.sigmoid(gi[:, :H] + gh[:, :H])
    z = jax.nn.sigmoid(gi[:, H:2 * H] + gh[:, H:2 * H])
    n = jnp.tanh(gi[:, 2 * H:] + r * (gh[:, 2 * H:] + bhn))
    return (1.0 - z) * n + z * h


def gru_encoder_kernel(gi_ref, whh_ref, bhn_ref, h_last_ref, h_sc,
                       *, hidden, t_block, unroll):
    t_idx = pl.program_id(1)

    @pl.when(t_idx == 0)
    def _():
        h_sc[...] = jnp.zeros_like(h_sc)

    whh = whh_ref[...]                          # (H, 3H) bf16, single-buffered
    bhn = bhn_ref[...].astype(jnp.float32)      # (1, H)

    def step(i, h):
        gi = gi_ref[i].astype(jnp.float32)      # (bt, 3H): x@W_ih + folded bias
        gh = jnp.dot(h.astype(whh.dtype), whh,
                     preferred_element_type=jnp.float32)
        return _gru_gates(gi, gh, h, bhn, hidden)

    h = jax.lax.fori_loop(0, t_block, step, h_sc[...], unroll=unroll)
    h_sc[...] = h

    @pl.when(t_idx == pl.num_programs(1) - 1)
    def _():
        h_last_ref[...] = h.astype(h_last_ref.dtype)


def gru_decoder_kernel(gi_ref, h0_ref, whh_ref, bhn_ref, hs_ref, h_sc,
                       *, hidden, t_block, unroll):
    t_idx = pl.program_id(1)

    @pl.when(t_idx == 0)
    def _():
        h_sc[...] = h0_ref[...].astype(jnp.float32)

    whh = whh_ref[...]
    bhn = bhn_ref[...].astype(jnp.float32)

    def step(i, h):
        gi = gi_ref[i].astype(jnp.float32)
        gh = jnp.dot(h.astype(whh.dtype), whh,
                     preferred_element_type=jnp.float32)
        h_new = _gru_gates(gi, gh, h, bhn, hidden)
        hs_ref[i] = h_new.astype(hs_ref.dtype)   # dense (bt, H) bf16 slab store
        return h_new

    h = jax.lax.fori_loop(0, t_block, step, h_sc[...], unroll=unroll)
    h_sc[...] = h


def run_encoder(gi, whh, bhn, *, t_block, batch_tile, vmem_limit):
    """gi: (Sp, Bp, 3H) bf16 -> final hidden (Bp, H) f32."""
    S, B, H3 = gi.shape
    H = H3 // 3
    kernel = functools.partial(gru_encoder_kernel, hidden=H, t_block=t_block,
                               unroll=min(8, t_block))
    return pl.pallas_call(
        kernel,
        out_shape=jax.ShapeDtypeStruct((B, H), jnp.float32),
        grid_spec=pltpu.PrefetchScalarGridSpec(
            num_scalar_prefetch=0,
            grid=(B // batch_tile, S // t_block),
            in_specs=[
                pl.BlockSpec((t_block, batch_tile, H3), lambda b, t: (t, b, 0)),
                pl.BlockSpec((H, H3), lambda b, t: (0, 0),
                             pipeline_mode=pl.Buffered(1)),
                pl.BlockSpec((1, H), lambda b, t: (0, 0),
                             pipeline_mode=pl.Buffered(1)),
            ],
            out_specs=pl.BlockSpec((batch_tile, H), lambda b, t: (b, 0)),
            scratch_shapes=[pltpu.VMEM((batch_tile, H), jnp.float32)],
        ),
        compiler_params=pltpu.CompilerParams(
            dimension_semantics=("parallel", "arbitrary"),
            vmem_limit_bytes=vmem_limit),
    )(gi, whh, bhn)


def run_decoder(gi, h0, whh, bhn, *, t_block, batch_tile, vmem_limit):
    """gi: (Tp, Bp, 3H) bf16, h0: (Bp, H) f32 -> all hidden states (Tp, Bp, H) bf16."""
    T, B, H3 = gi.shape
    H = H3 // 3
    kernel = functools.partial(gru_decoder_kernel, hidden=H, t_block=t_block,
                               unroll=min(8, t_block))
    return pl.pallas_call(
        kernel,
        out_shape=jax.ShapeDtypeStruct((T, B, H), jnp.bfloat16),
        grid_spec=pltpu.PrefetchScalarGridSpec(
            num_scalar_prefetch=0,
            grid=(B // batch_tile, T // t_block),
            in_specs=[
                pl.BlockSpec((t_block, batch_tile, H3), lambda b, t: (t, b, 0)),
                pl.BlockSpec((batch_tile, H), lambda b, t: (b, 0),
                             pipeline_mode=pl.Buffered(1)),
                pl.BlockSpec((H, H3), lambda b, t: (0, 0),
                             pipeline_mode=pl.Buffered(1)),
                pl.BlockSpec((1, H), lambda b, t: (0, 0),
                             pipeline_mode=pl.Buffered(1)),
            ],
            out_specs=pl.BlockSpec((t_block, batch_tile, H),
                                   lambda b, t: (t, b, 0)),
            scratch_shapes=[pltpu.VMEM((batch_tile, H), jnp.float32)],
        ),
        compiler_params=pltpu.CompilerParams(
            dimension_semantics=("parallel", "arbitrary"),
            vmem_limit_bytes=vmem_limit),
    )(gi, h0, whh, bhn)


# ----------------------------------------------------------------------------
# Parameters (torch-equivalent shapes, pre-transposed to (in, out); f32 master)
# ----------------------------------------------------------------------------
def init_params(key, vocab_size, embedding_dim, hidden_dim):
    ks = jax.random.split(key, 10)
    u = lambda k, shape, bound: jax.random.uniform(
        k, shape, jnp.float32, minval=-bound, maxval=bound)
    kH = 1.0 / jnp.sqrt(hidden_dim)
    return {
        "embedding": jax.random.normal(ks[0], (vocab_size, embedding_dim),
                                       jnp.float32),
        # GRU weights stored transposed: (in, 3H) / (H, 3H); gate order r,z,n.
        "enc_wih": u(ks[1], (embedding_dim, 3 * hidden_dim), kH),
        "enc_whh": u(ks[2], (hidden_dim, 3 * hidden_dim), kH),
        "enc_bih": u(ks[3], (1, 3 * hidden_dim), kH),
        "enc_bhh": u(ks[4], (1, 3 * hidden_dim), kH),
        "dec_wih": u(ks[5], (embedding_dim, 3 * hidden_dim), kH),
        "dec_whh": u(ks[6], (hidden_dim, 3 * hidden_dim), kH),
        "dec_bih": u(ks[7], (1, 3 * hidden_dim), kH),
        "dec_bhh": u(ks[8], (1, 3 * hidden_dim), kH),
        # Linear stored as (H, V) so kernels do h @ W_fc + b.
        "fc_w": u(ks[9], (hidden_dim, vocab_size), kH),
        "fc_b": jnp.zeros((1, vocab_size), jnp.float32),
    }


# ----------------------------------------------------------------------------
# Forward
# ----------------------------------------------------------------------------
def seq2seq_forward(params, src, tgt):
    """src: int32 (B,S), tgt: int32 (B,T) token ids -> logits (B, T, V) f32."""
    B, S = src.shape
    T = tgt.shape[1]
    V, E = params["embedding"].shape
    H = params["enc_whh"].shape[0]

    cfg = _tpu_config()

    # (8, 128) vreg-aligned / tile-aligned padded sizes.
    Ep = _round_up(E, 128)
    Hp = _round_up(H, 128)
    Vp = _round_up(V, cfg["fc_tn"])       # pad vocab to a multiple of the N-tile
    Bp, batch_tile = _choose_batch_tile(_round_up(B, 8), cfg)
    Sp, tS = _choose_time_block(S, batch_tile, Hp, cfg)
    Tp, tT = _choose_time_block(T, batch_tile, Hp, cfg)

    # --- embedding lookup (gather; plain JAX glue), time-major, padded, bf16 ---
    emb = params["embedding"]

    def embed(tok):
        x = jnp.take(emb, tok, axis=0)                       # (B, L, E)
        x = jnp.transpose(x, (1, 0, 2))                      # (L, B, E)
        x = jnp.pad(x, ((0, 0), (0, Bp - B), (0, Ep - E)))
        return x.astype(jnp.bfloat16)                        # (L, Bp, Ep)

    x_src = embed(src)
    x_tgt = embed(tgt)

    # --- pad / cast weights (zero padding preserves the logical GRU outputs) ---
    enc_wih = _pad_gru_weight(params["enc_wih"], Ep, Hp).astype(jnp.bfloat16)
    enc_whh = _pad_gru_weight(params["enc_whh"], Hp, Hp).astype(jnp.bfloat16)
    dec_wih = _pad_gru_weight(params["dec_wih"], Ep, Hp).astype(jnp.bfloat16)
    dec_whh = _pad_gru_weight(params["dec_whh"], Hp, Hp).astype(jnp.bfloat16)
    enc_gi_b, enc_bhn = _fold_gru_biases(params["enc_bih"], params["enc_bhh"], Hp)
    dec_gi_b, dec_bhn = _fold_gru_biases(params["dec_bih"], params["dec_bhh"], Hp)
    fc_w = jnp.pad(params["fc_w"], ((0, Hp - H), (0, Vp - V))).astype(jnp.bfloat16)
    fc_b = jnp.pad(params["fc_b"], ((0, 0), (0, Vp - V)))

    # --- hoisted input projections: one big MXU matmul per GRU, bf16 output ---
    gi_src = matmul_bias(x_src.reshape(S * Bp, Ep), enc_wih, enc_gi_b,
                         out_dtype=jnp.bfloat16, vmem_limit=cfg["vmem_limit"])
    gi_tgt = matmul_bias(x_tgt.reshape(T * Bp, Ep), dec_wih, dec_gi_b,
                         out_dtype=jnp.bfloat16, vmem_limit=cfg["vmem_limit"])
    gi_src = _pad_time_identity(gi_src.reshape(S, Bp, 3 * Hp), Sp, Hp)
    gi_tgt = _pad_time_identity(gi_tgt.reshape(T, Bp, 3 * Hp), Tp, Hp)

    # --- recurrences: only h @ W_hh + gates on the serial critical path ---
    h_enc = run_encoder(gi_src, enc_whh, enc_bhn,
                        t_block=tS, batch_tile=batch_tile,
                        vmem_limit=cfg["vmem_limit"])          # (Bp, Hp) f32
    hs = run_decoder(gi_tgt, h_enc, dec_whh, dec_bhn,
                     t_block=tT, batch_tile=batch_tile,
                     vmem_limit=cfg["vmem_limit"])             # (Tp, Bp, Hp) bf16

    # --- reorder the SMALL bf16 hidden states to batch-major, then project ---
    # (so the big f32 logits come out (B, T, V)-major with no final transpose)
    hs_bm = jnp.transpose(hs[:T], (1, 0, 2)).reshape(Bp * T, Hp)
    logits = matmul_bias(hs_bm, fc_w, fc_b, out_dtype=jnp.float32,
                         tm=cfg["fc_tm"], tn=cfg["fc_tn"],
                         vmem_limit=cfg["vmem_limit"])         # (Bp*T, Vp) f32
    return logits.reshape(Bp, T, Vp)[:B, :, :V]                # (B, T, V)


# ----------------------------------------------------------------------------
# Pure-JAX f32 reference (torch.nn.GRU math) for the correctness check
# ----------------------------------------------------------------------------
def _gru_ref(x_bte, h0, wih, whh, bih, bhh, hidden_dim):
    def step(h, x):
        gi = x @ wih + bih
        gh = h @ whh + bhh
        H = hidden_dim
        r = jax.nn.sigmoid(gi[:, :H] + gh[:, :H])
        z = jax.nn.sigmoid(gi[:, H:2 * H] + gh[:, H:2 * H])
        n = jnp.tanh(gi[:, 2 * H:] + r * gh[:, 2 * H:])
        h_new = (1.0 - z) * n + z * h
        return h_new, h_new

    h_last, hs = jax.lax.scan(step, h0, jnp.transpose(x_bte, (1, 0, 2)))
    return jnp.transpose(hs, (1, 0, 2)), h_last


def seq2seq_reference(params, src, tgt, hidden_dim):
    emb_src = jnp.take(params["embedding"], src, axis=0)
    emb_tgt = jnp.take(params["embedding"], tgt, axis=0)
    _, h = _gru_ref(emb_src, jnp.zeros((src.shape[0], hidden_dim), jnp.float32),
                    params["enc_wih"], params["enc_whh"],
                    params["enc_bih"], params["enc_bhh"], hidden_dim)
    outs, _ = _gru_ref(emb_tgt, h,
                       params["dec_wih"], params["dec_whh"],
                       params["dec_bih"], params["dec_bhh"], hidden_dim)
    return outs @ params["fc_w"] + params["fc_b"]


# ----------------------------------------------------------------------------
if __name__ == "__main__":
    vocab_size, embedding_dim, hidden_dim = 50, 16, 32
    batch, src_len, tgt_len = 2, 8, 8

    key = jax.random.PRNGKey(0)
    kp, ks, kt = jax.random.split(key, 3)
    params = init_params(kp, vocab_size, embedding_dim, hidden_dim)

    src = jax.random.randint(ks, (batch, src_len), 0, vocab_size, jnp.int32)
    tgt = jax.random.randint(kt, (batch, tgt_len), 0, vocab_size, jnp.int32)

    logits = jax.jit(seq2seq_forward)(params, src, tgt)
    logits = jax.block_until_ready(logits)
    assert logits.shape == (batch, tgt_len, vocab_size)

    ref = seq2seq_reference(params, src, tgt, hidden_dim)
    # bf16 MXU operands / bf16 gi + hs storage vs. an f32 reference -> loose tol.
    err = float(jnp.max(jnp.abs(logits - ref)))
    assert jnp.allclose(logits, ref, atol=5e-2, rtol=5e-2), err

    print("KERNEL_OK")
</pallas_src>

<mosaic_0001>
module attributes {stable_mosaic.version = 11 : i64} {
  func.func @_matmul_bias_kernel(%arg0: i32, %arg1: i32, %arg2: i32, %arg3: memref<64x128xbf16, #tpu.memory_space<vmem>>, %arg4: memref<128x384xbf16, #tpu.memory_space<vmem>>, %arg5: memref<1x384xf32, #tpu.memory_space<vmem>>, %arg6: memref<64x384xbf16, #tpu.memory_space<vmem>>, %arg7: memref<64x384xf32, #tpu.memory_space<vmem>>) attributes {dimension_semantics = [#tpu.dimension_semantics<parallel>, #tpu.dimension_semantics<parallel>, #tpu.dimension_semantics<arbitrary>], iteration_bounds = array<i64: 1, 1, 1>, scalar_prefetch = 0 : i64, scratch_operands = 1 : i64, tpu.core_type = #tpu.core_type<tc>, window_params = [{transform_indices = @transform_0, window_bounds = array<i64: 64, 128>}, {transform_indices = @transform_1, window_bounds = array<i64: 128, 384>}, {transform_indices = @transform_2, window_bounds = array<i64: 1, 384>}, {transform_indices = @transform_3, window_bounds = array<i64: 64, 384>}]} {
    %c0_i32 = arith.constant 0 : i32
    %0 = arith.cmpi eq, %arg2, %c0_i32 : i32
    %1 = arith.extui %0 : i1 to i32
    %c0_i32_0 = arith.constant 0 : i32
    %2 = arith.cmpi ne, %1, %c0_i32_0 : i32
    scf.if %2 {
      %cst_10 = arith.constant 0.000000e+00 : f32
      %12 = vector.broadcast %cst_10 : f32 to vector<64x384xf32>
      %c0_11 = arith.constant 0 : index
      %c0_12 = arith.constant 0 : index
      %13 = vector.load %arg7[%c0_11, %c0_12] : memref<64x384xf32, #tpu.memory_space<vmem>>, vector<64x384xf32>
      tpu.vector_store %arg7[%c0_11, %c0_12], %12 {strides = array<i32>} : memref<64x384xf32, #tpu.memory_space<vmem>>, vector<64x384xf32>,
    } else {
    }
    %c0 = arith.constant 0 : index
    %c0_1 = arith.constant 0 : index
    %3 = vector.load %arg7[%c0, %c0_1] : memref<64x384xf32, #tpu.memory_space<vmem>>, vector<64x384xf32>
    %c0_2 = arith.constant 0 : index
    %c0_3 = arith.constant 0 : index
    %4 = vector.load %arg3[%c0_2, %c0_3] : memref<64x128xbf16, #tpu.memory_space<vmem>>, vector<64x128xbf16>
    %c0_4 = arith.constant 0 : index
    %c0_5 = arith.constant 0 : index
    %5 = vector.load %arg4[%c0_4, %c0_5] : memref<128x384xbf16, #tpu.memory_space<vmem>>, vector<128x384xbf16>
    %cst = arith.constant dense<0.000000e+00> : vector<64x384xf32>
    %6 = tpu.matmul %4, %5, %cst {dimension_numbers = #tpu.dot_dimension_numbers<[1], [0], [0], [1], [0, 0, 1, 1], [], []>} : vector<64x128xbf16>, vector<128x384xbf16>, vector<64x384xf32> -> vector<64x384xf32>
    %7 = arith.addf %3, %6 : vector<64x384xf32>
    %c0_6 = arith.constant 0 : index
    %c0_7 = arith.constant 0 : index
    %8 = vector.load %arg7[%c0_6, %c0_7] : memref<64x384xf32, #tpu.memory_space<vmem>>, vector<64x384xf32>
    tpu.vector_store %arg7[%c0_6, %c0_7], %7 {strides = array<i32>} : memref<64x384xf32, #tpu.memory_space<vmem>>, vector<64x384xf32>,
    %c0_i32_8 = arith.constant 0 : i32
    %9 = arith.cmpi eq, %arg2, %c0_i32_8 : i32
    %10 = arith.extui %9 : i1 to i32
    %c0_i32_9 = arith.constant 0 : i32
    %11 = arith.cmpi ne, %10, %c0_i32_9 : i32
    scf.if %11 {
      %c0_10 = arith.constant 0 : index
      %c0_11 = arith.constant 0 : index
      %12 = vector.load %arg7[%c0_10, %c0_11] : memref<64x384xf32, #tpu.memory_space<vmem>>, vector<64x384xf32>
      %c0_12 = arith.constant 0 : index
      %c0_13 = arith.constant 0 : index
      %13 = vector.load %arg5[%c0_12, %c0_13] : memref<1x384xf32, #tpu.memory_space<vmem>>, vector<1x384xf32>
      %14 = vector.broadcast %13 : vector<1x384xf32> to vector<64x384xf32>
      %15 = arith.addf %12, %14 : vector<64x384xf32>
      %16 = arith.truncf %15 : vector<64x384xf32> to vector<64x384xbf16>
      %c0_14 = arith.constant 0 : index
      %c0_15 = arith.constant 0 : index
      %17 = vector.load %arg6[%c0_14, %c0_15] : memref<64x384xbf16, #tpu.memory_space<vmem>>, vector<64x384xbf16>
      tpu.vector_store %arg6[%c0_14, %c0_15], %16 {strides = array<i32>} : memref<64x384xbf16, #tpu.memory_space<vmem>>, vector<64x384xbf16>,
    } else {
    }
    return
  }
  func.func @transform_0(%arg0: i32, %arg1: i32, %arg2: i32) -> (i32, i32) {
    %c0_i32 = arith.constant 0 : i32
    return %arg0, %arg2 : i32, i32
  }
  func.func @transform_1(%arg0: i32, %arg1: i32, %arg2: i32) -> (i32, i32) {
    %c0_i32 = arith.constant 0 : i32
    return %arg2, %arg1 : i32, i32
  }
  func.func @transform_2(%arg0: i32, %arg1: i32, %arg2: i32) -> (i32, i32) {
    %c0_i32 = arith.constant 0 : i32
    %c0_i32_0 = arith.constant 0 : i32
    return %c0_i32, %arg1 : i32, i32
  }
  func.func @transform_3(%arg0: i32, %arg1: i32, %arg2: i32) -> (i32, i32) {
    %c0_i32 = arith.constant 0 : i32
    return %arg0, %arg1 : i32, i32
  }
}

module attributes {stable_mosaic.version = 11 : i64} {
  func.func @gru_encoder_kernel(%arg0: i32, %arg1: i32, %arg2: memref<8x8x384xbf16, #tpu.memory_space<vmem>>, %arg3: memref<128x384xbf16, #tpu.memory_space<vmem>>, %arg4: memref<1x128xf32, #tpu.memory_space<vmem>>, %arg5: memref<8x128xf32, #tpu.memory_space<vmem>>, %arg6: memref<8x128xf32, #tpu.memory_space<vmem>>) attributes {dimension_semantics = [#tpu.dimension_semantics<parallel>, #tpu.dimension_semantics<arbitrary>], iteration_bounds = array<i64: 1, 1>, scalar_prefetch = 0 : i64, scratch_operands = 1 : i64, tpu.core_type = #tpu.core_type<tc>, window_params = [{transform_indices = @transform_0, window_bounds = array<i64: 8, 8, 384>}, {pipeline_mode = #tpu.pipeline_mode<synchronous>, transform_indices = @transform_1, window_bounds = array<i64: 128, 384>}, {pipeline_mode = #tpu.pipeline_mode<synchronous>, transform_indices = @transform_2, window_bounds = array<i64: 1, 128>}, {transform_indices = @transform_3, window_bounds = array<i64: 8, 128>}]} {
    %c0_i32 = arith.constant 0 : i32
    %0 = arith.cmpi eq, %arg1, %c0_i32 : i32
    %1 = arith.extui %0 : i1 to i32
    %c0_i32_0 = arith.constant 0 : i32
    %2 = arith.cmpi ne, %1, %c0_i32_0 : i32
    scf.if %2 {
      %cst_58 = arith.constant 0.000000e+00 : f32
      %282 = vector.broadcast %cst_58 : f32 to vector<8x128xf32>
      %c0_59 = arith.constant 0 : index
      %c0_60 = arith.constant 0 : index
      %283 = vector.load %arg6[%c0_59, %c0_60] : memref<8x128xf32, #tpu.memory_space<vmem>>, vector<8x128xf32>
      tpu.vector_store %arg6[%c0_59, %c0_60], %282 {strides = array<i32>} : memref<8x128xf32, #tpu.memory_space<vmem>>, vector<8x128xf32>,
    } else {
    }
    %c0 = arith.constant 0 : index
    %c0_1 = arith.constant 0 : index
    %3 = vector.load %arg3[%c0, %c0_1] : memref<128x384xbf16, #tpu.memory_space<vmem>>, vector<128x384xbf16>
    %c0_2 = arith.constant 0 : index
    %c0_3 = arith.constant 0 : index
    %4 = vector.load %arg4[%c0_2, %c0_3] : memref<1x128xf32, #tpu.memory_space<vmem>>, vector<1x128xf32>
    %c0_4 = arith.constant 0 : index
    %c0_5 = arith.constant 0 : index
    %5 = vector.load %arg6[%c0_4, %c0_5] : memref<8x128xf32, #tpu.memory_space<vmem>>, vector<8x128xf32>
    %c0_i32_6 = arith.constant 0 : i32
    %6 = arith.index_cast %c0_i32_6 : i32 to index
    %c0_7 = arith.constant 0 : index
    %c0_8 = arith.constant 0 : index
    %7 = vector.load %arg2[%6, %c0_7, %c0_8] : memref<8x8x384xbf16, #tpu.memory_space<vmem>>, vector<1x8x384xbf16>
    %8 = vector.shape_cast %7 : vector<1x8x384xbf16> to vector<8x384xbf16>
    %9 = arith.extf %8 : vector<8x384xbf16> to vector<8x384xf32>
    %10 = arith.truncf %5 : vector<8x128xf32> to vector<8x128xbf16>
    %cst = arith.constant dense<0.000000e+00> : vector<8x384xf32>
    %11 = tpu.matmul %10, %3, %cst {dimension_numbers = #tpu.dot_dimension_numbers<[1], [0], [0], [1], [0, 0, 1, 1], [], []>} : vector<8x128xbf16>, vector<128x384xbf16>, vector<8x384xf32> -> vector<8x384xf32>
    %12 = vector.extract_strided_slice %9 {offsets = [0, 0], sizes = [8, 128], strides = [1, 1]} : vector<8x384xf32> to vector<8x128xf32>
    %13 = vector.extract_strided_slice %11 {offsets = [0, 0], sizes = [8, 128], strides = [1, 1]} : vector<8x384xf32> to vector<8x128xf32>
    %14 = arith.addf %12, %13 : vector<8x128xf32>
    %15 = arith.negf %14 : vector<8x128xf32>
    %16 = math.exp %15 : vector<8x128xf32>
    %cst_9 = arith.constant 1.000000e+00 : f32
    %17 = vector.broadcast %cst_9 : f32 to vector<8x128xf32>
    %18 = arith.addf %17, %16 : vector<8x128xf32>
    %19 = arith.divf %17, %18 : vector<8x128xf32>
    %20 = vector.extract_strided_slice %9 {offsets = [0, 128], sizes = [8, 128], strides = [1, 1]} : vector<8x384xf32> to vector<8x128xf32>
    %21 = vector.extract_strided_slice %11 {offsets = [0, 128], sizes = [8, 128], strides = [1, 1]} : vector<8x384xf32> to vector<8x128xf32>
    %22 = arith.addf %20, %21 : vector<8x128xf32>
    %23 = arith.negf %22 : vector<8x128xf32>
    %24 = math.exp %23 : vector<8x128xf32>
    %cst_10 = arith.constant 1.000000e+00 : f32
    %25 = vector.broadcast %cst_10 : f32 to vector<8x128xf32>
    %26 = arith.addf %25, %24 : vector<8x128xf32>
    %27 = arith.divf %25, %26 : vector<8x128xf32>
    %28 = vector.extract_strided_slice %9 {offsets = [0, 256], sizes = [8, 128], strides = [1, 1]} : vector<8x384xf32> to vector<8x128xf32>
    %29 = vector.extract_strided_slice %11 {offsets = [0, 256], sizes = [8, 128], strides = [1, 1]} : vector<8x384xf32> to vector<8x128xf32>
    %30 = vector.broadcast %4 : vector<1x128xf32> to vector<8x128xf32>
    %31 = arith.addf %29, %30 : vector<8x128xf32>
    %32 = arith.mulf %19, %31 : vector<8x128xf32>
    %33 = arith.addf %28, %32 : vector<8x128xf32>
    %34 = math.tanh %33 : vector<8x128xf32>
    %cst_11 = arith.constant 1.000000e+00 : f32
    %35 = vector.broadcast %cst_11 : f32 to vector<8x128xf32>
    %36 = arith.subf %35, %27 : vector<8x128xf32>
    %37 = arith.mulf %36, %34 : vector<8x128xf32>
    %38 = arith.mulf %27, %5 : vector<8x128xf32>
    %39 = arith.addf %37, %38 : vector<8x128xf32>
    %c1_i32 = arith.constant 1 : i32
    %40 = arith.index_cast %c1_i32 : i32 to index
    %c0_12 = arith.constant 0 : index
    %c0_13 = arith.constant 0 : index
    %41 = vector.load %arg2[%40, %c0_12, %c0_13] : memref<8x8x384xbf16, #tpu.memory_space<vmem>>, vector<1x8x384xbf16>
    %42 = vector.shape_cast %41 : vector<1x8x384xbf16> to vector<8x384xbf16>
    %43 = arith.extf %42 : vector<8x384xbf16> to vector<8x384xf32>
    %44 = arith.truncf %39 : vector<8x128xf32> to vector<8x128xbf16>
    %cst_14 = arith.constant dense<0.000000e+00> : vector<8x384xf32>
    %45 = tpu.matmul %44, %3, %cst_14 {dimension_numbers = #tpu.dot_dimension_numbers<[1], [0], [0], [1], [0, 0, 1, 1], [], []>} : vector<8x128xbf16>, vector<128x384xbf16>, vector<8x384xf32> -> vector<8x384xf32>
    %46 = vector.extract_strided_slice %43 {offsets = [0, 0], sizes = [8, 128], strides = [1, 1]} : vector<8x384xf32> to vector<8x128xf32>
    %47 = vector.extract_strided_slice %45 {offsets = [0, 0], sizes = [8, 128], strides = [1, 1]} : vector<8x384xf32> to vector<8x128xf32>
    %48 = arith.addf %46, %47 : vector<8x128xf32>
    %49 = arith.negf %48 : vector<8x128xf32>
    %50 = math.exp %49 : vector<8x128xf32>
    %cst_15 = arith.constant 1.000000e+00 : f32
    %51 = vector.broadcast %cst_15 : f32 to vector<8x128xf32>
    %52 = arith.addf %51, %50 : vector<8x128xf32>
    %53 = arith.divf %51, %52 : vector<8x128xf32>
    %54 = vector.extract_strided_slice %43 {offsets = [0, 128], sizes = [8, 128], strides = [1, 1]} : vector<8x384xf32> to vector<8x128xf32>
    %55 = vector.extract_strided_slice %45 {offsets = [0, 128], sizes = [8, 128], strides = [1, 1]} : vector<8x384xf32> to vector<8x128xf32>
    %56 = arith.addf %54, %55 : vector<8x128xf32>
    %57 = arith.negf %56 : vector<8x128xf32>
    %58 = math.exp %57 : vector<8x128xf32>
    %cst_16 = arith.constant 1.000000e+00 : f32
    %59 = vector.broadcast %cst_16 : f32 to vector<8x128xf32>
    %60 = arith.addf %59, %58 : vector<8x128xf32>
    %61 = arith.divf %59, %60 : vector<8x128xf32>
    %62 = vector.extract_strided_slice %43 {offsets = [0, 256], sizes = [8, 128], strides = [1, 1]} : vector<8x384xf32> to vector<8x128xf32>
    %63 = vector.extract_strided_slice %45 {offsets = [0, 256], sizes = [8, 128], strides = [1, 1]} : vector<8x384xf32> to vector<8x128xf32>
    %64 = vector.broadcast %4 : vector<1x128xf32> to vector<8x128xf32>
    %65 = arith.addf %63, %64 : vector<8x128xf32>
    %66 = arith.mulf %53, %65 : vector<8x128xf32>
    %67 = arith.addf %62, %66 : vector<8x128xf32>
    %68 = math.tanh %67 : vector<8x128xf32>
    %cst_17 = arith.constant 1.000000e+00 : f32
    %69 = vector.broadcast %cst_17 : f32 to vector<8x128xf32>
    %70 = arith.subf %69, %61 : vector<8x128xf32>
    %71 = arith.mulf %70, %68 : vector<8x128xf32>
    %72 = arith.mulf %61, %39 : vector<8x128xf32>
    %73 = arith.addf %71, %72 : vector<8x128xf32>
    %c2_i32 = arith.constant 2 : i32
    %74 = arith.index_cast %c2_i32 : i32 to index
    %c0_18 = arith.constant 0 : index
    %c0_19 = arith.constant 0 : index
    %75 = vector.load %arg2[%74, %c0_18, %c0_19] : memref<8x8x384xbf16, #tpu.memory_space<vmem>>, vector<1x8x384xbf16>
    %76 = vector.shape_cast %75 : vector<1x8x384xbf16> to vector<8x384xbf16>
    %77 = arith.extf %76 : vector<8x384xbf16> to vector<8x384xf32>
    %78 = arith.truncf %73 : vector<8x128xf32> to vector<8x128xbf16>
    %cst_20 = arith.constant dense<0.000000e+00> : vector<8x384xf32>
    %79 = tpu.matmul %78, %3, %cst_20 {dimension_numbers = #tpu.dot_dimension_numbers<[1], [0], [0], [1], [0, 0, 1, 1], [], []>} : vector<8x128xbf16>, vector<128x384xbf16>, vector<8x384xf32> -> vector<8x384xf32>
    %80 = vector.extract_strided_slice %77 {offsets = [0, 0], sizes = [8, 128], strides = [1, 1]} : vector<8x384xf32> to vector<8x128xf32>
    %81 = vector.extract_strided_slice %79 {offsets = [0, 0], sizes = [8, 128], strides = [1, 1]} : vector<8x384xf32> to vector<8x128xf32>
    %82 = arith.addf %80, %81 : vector<8x128xf32>
    %83 = arith.negf %82 : vector<8x128xf32>
    %84 = math.exp %83 : vector<8x128xf32>
    %cst_21 = arith.constant 1.000000e+00 : f32
    %85 = vector.broadcast %cst_21 : f32 to vector<8x128xf32>
    %86 = arith.addf %85, %84 : vector<8x128xf32>
    %87 = arith.divf %85, %86 : vector<8x128xf32>
    %88 = vector.extract_strided_slice %77 {offsets = [0, 128], sizes = [8, 128], strides = [1, 1]} : vector<8x384xf32> to vector<8x128xf32>
    %89 = vector.extract_strided_slice %79 {offsets = [0, 128], sizes = [8, 128], strides = [1, 1]} : vector<8x384xf32> to vector<8x128xf32>
    %90 = arith.addf %88, %89 : vector<8x128xf32>
    %91 = arith.negf %90 : vector<8x128xf32>
    %92 = math.exp %91 : vector<8x128xf32>
    %cst_22 = arith.constant 1.000000e+00 : f32
    %93 = vector.broadcast %cst_22 : f32 to vector<8x128xf32>
    %94 = arith.addf %93, %92 : vector<8x128xf32>
    %95 = arith.divf %93, %94 : vector<8x128xf32>
    %96 = vector.extract_strided_slice %77 {offsets = [0, 256], sizes = [8, 128], strides = [1, 1]} : vector<8x384xf32> to vector<8x128xf32>
    %97 = vector.extract_strided_slice %79 {offsets = [0, 256], sizes = [8, 128], strides = [1, 1]} : vector<8x384xf32> to vector<8x128xf32>
    %98 = vector.broadcast %4 : vector<1x128xf32> to vector<8x128xf32>
    %99 = arith.addf %97, %98 : vector<8x128xf32>
    %100 = arith.mulf %87, %99 : vector<8x128xf32>
    %101 = arith.addf %96, %100 : vector<8x128xf32>
    %102 = math.tanh %101 : vector<8x128xf32>
    %cst_23 = arith.constant 1.000000e+00 : f32
    %103 = vector.broadcast %cst_23 : f32 to vector<8x128xf32>
    %104 = arith.subf %103, %95 : vector<8x128xf32>
    %105 = arith.mulf %104, %102 : vector<8x128xf32>
    %106 = arith.mulf %95, %73 : vector<8x128xf32>
    %107 = arith.addf %105, %106 : vector<8x128xf32>
    %c3_i32 = arith.constant 3 : i32
    %108 = arith.index_cast %c3_i32 : i32 to index
    %c0_24 = arith.constant 0 : index
    %c0_25 = arith.constant 0 : index
    %109 = vector.load %arg2[%108, %c0_24, %c0_25] : memref<8x8x384xbf16, #tpu.memory_space<vmem>>, vector<1x8x384xbf16>
    %110 = vector.shape_cast %109 : vector<1x8x384xbf16> to vector<8x384xbf16>
    %111 = arith.extf %110 : vector<8x384xbf16> to vector<8x384xf32>
    %112 = arith.truncf %107 : vector<8x128xf32> to vector<8x128xbf16>
    %cst_26 = arith.constant dense<0.000000e+00> : vector<8x384xf32>
    %113 = tpu.matmul %112, %3, %cst_26 {dimension_numbers = #tpu.dot_dimension_numbers<[1], [0], [0], [1], [0, 0, 1, 1], [], []>} : vector<8x128xbf16>, vector<128x384xbf16>, vector<8x384xf32> -> vector<8x384xf32>
    %114 = vector.extract_strided_slice %111 {offsets = [0, 0], sizes = [8, 128], strides = [1, 1]} : vector<8x384xf32> to vector<8x128xf32>
    %115 = vector.extract_strided_slice %113 {offsets = [0, 0], sizes = [8, 128], strides = [1, 1]} : vector<8x384xf32> to vector<8x128xf32>
    %116 = arith.addf %114, %115 : vector<8x128xf32>
    %117 = arith.negf %116 : vector<8x128xf32>
    %118 = math.exp %117 : vector<8x128xf32>
    %cst_27 = arith.constant 1.000000e+00 : f32
    %119 = vector.broadcast %cst_27 : f32 to vector<8x128xf32>
    %120 = arith.addf %119, %118 : vector<8x128xf32>
    %121 = arith.divf %119, %120 : vector<8x128xf32>
    %122 = vector.extract_strided_slice %111 {offsets = [0, 128], sizes = [8, 128], strides = [1, 1]} : vector<8x384xf32> to vector<8x128xf32>
    %123 = vector.extract_strided_slice %113 {offsets = [0, 128], sizes = [8, 128], strides = [1, 1]} : vector<8x384xf32> to vector<8x128xf32>
    %124 = arith.addf %122, %123 : vector<8x128xf32>
    %125 = arith.negf %124 : vector<8x128xf32>
    %126 = math.exp %125 : vector<8x128xf32>
    %cst_28 = arith.constant 1.000000e+00 : f32
    %127 = vector.broadcast %cst_28 : f32 to vector<8x128xf32>
    %128 = arith.addf %127, %126 : vector<8x128xf32>
    %129 = arith.divf %127, %128 : vector<8x128xf32>
    %130 = vector.extract_strided_slice %111 {offsets = [0, 256], sizes = [8, 128], strides = [1, 1]} : vector<8x384xf32> to vector<8x128xf32>
    %131 = vector.extract_strided_slice %113 {offsets = [0, 256], sizes = [8, 128], strides = [1, 1]} : vector<8x384xf32> to vector<8x128xf32>
    %132 = vector.broadcast %4 : vector<1x128xf32> to vector<8x128xf32>
    %133 = arith.addf %131, %132 : vector<8x128xf32>
    %134 = arith.mulf %121, %133 : vector<8x128xf32>
    %135 = arith.addf %130, %134 : vector<8x128xf32>
    %136 = math.tanh %135 : vector<8x128xf32>
    %cst_29 = arith.constant 1.000000e+00 : f32
    %137 = vector.broadcast %cst_29 : f32 to vector<8x128xf32>
    %138 = arith.subf %137, %129 : vector<8x128xf32>
    %139 = arith.mulf %138, %136 : vector<8x128xf32>
    %140 = arith.mulf %129, %107 : vector<8x128xf32>
    %141 = arith.addf %139, %140 : vector<8x128xf32>
    %c4_i32 = arith.constant 4 : i32
    %142 = arith.index_cast %c4_i32 : i32 to index
    %c0_30 = arith.constant 0 : index
    %c0_31 = arith.constant 0 : index
    %143 = vector.load %arg2[%142, %c0_30, %c0_31] : memref<8x8x384xbf16, #tpu.memory_space<vmem>>, vector<1x8x384xbf16>
    %144 = vector.shape_cast %143 : vector<1x8x384xbf16> to vector<8x384xbf16>
    %145 = arith.extf %144 : vector<8x384xbf16> to vector<8x384xf32>
    %146 = arith.truncf %141 : vector<8x128xf32> to vector<8x128xbf16>
    %cst_32 = arith.constant dense<0.000000e+00> : vector<8x384xf32>
    %147 = tpu.matmul %146, %3, %cst_32 {dimension_numbers = #tpu.dot_dimension_numbers<[1], [0], [0], [1], [0, 0, 1, 1], [], []>} : vector<8x128xbf16>, vector<128x384xbf16>, vector<8x384xf32> -> vector<8x384xf32>
    %148 = vector.extract_strided_slice %145 {offsets = [0, 0], sizes = [8, 128], strides = [1, 1]} : vector<8x384xf32> to vector<8x128xf32>
    %149 = vector.extract_strided_slice %147 {offsets = [0, 0], sizes = [8, 128], strides = [1, 1]} : vector<8x384xf32> to vector<8x128xf32>
    %150 = arith.addf %148, %149 : vector<8x128xf32>
    %151 = arith.negf %150 : vector<8x128xf32>
    %152 = math.exp %151 : vector<8x128xf32>
    %cst_33 = arith.constant 1.000000e+00 : f32
    %153 = vector.broadcast %cst_33 : f32 to vector<8x128xf32>
    %154 = arith.addf %153, %152 : vector<8x128xf32>
    %155 = arith.divf %153, %154 : vector<8x128xf32>
    %156 = vector.extract_strided_slice %145 {offsets = [0, 128], sizes = [8, 128], strides = [1, 1]} : vector<8x384xf32> to vector<8x128xf32>
    %157 = vector.extract_strided_slice %147 {offsets = [0, 128], sizes = [8, 128], strides = [1, 1]} : vector<8x384xf32> to vector<8x128xf32>
    %158 = arith.addf %156, %157 : vector<8x128xf32>
    %159 = arith.negf %158 : vector<8x128xf32>
    %160 = math.exp %159 : vector<8x128xf32>
    %cst_34 = arith.constant 1.000000e+00 : f32
    %161 = vector.broadcast %cst_34 : f32 to vector<8x128xf32>
    %162 = arith.addf %161, %160 : vector<8x128xf32>
    %163 = arith.divf %161, %162 : vector<8x128xf32>
    %164 = vector.extract_strided_slice %145 {offsets = [0, 256], sizes = [8, 128], strides = [1, 1]} : vector<8x384xf32> to vector<8x128xf32>
    %165 = vector.extract_strided_slice %147 {offsets = [0, 256], sizes = [8, 128], strides = [1, 1]} : vector<8x384xf32> to vector<8x128xf32>
    %166 = vector.broadcast %4 : vector<1x128xf32> to vector<8x128xf32>
    %167 = arith.addf %165, %166 : vector<8x128xf32>
    %168 = arith.mulf %155, %167 : vector<8x128xf32>
    %169 = arith.addf %164, %168 : vector<8x128xf32>
    %170 = math.tanh %169 : vector<8x128xf32>
    %cst_35 = arith.constant 1.000000e+00 : f32
    %171 = vector.broadcast %cst_35 : f32 to vector<8x128xf32>
    %172 = arith.subf %171, %163 : vector<8x128xf32>
    %173 = arith.mulf %172, %170 : vector<8x128xf32>
    %174 = arith.mulf %163, %141 : vector<8x128xf32>
    %175 = arith.addf %173, %174 : vector<8x128xf32>
    %c5_i32 = arith.constant 5 : i32
    %176 = arith.index_cast %c5_i32 : i32 to index
    %c0_36 = arith.constant 0 : index
    %c0_37 = arith.constant 0 : index
    %177 = vector.load %arg2[%176, %c0_36, %c0_37] : memref<8x8x384xbf16, #tpu.memory_space<vmem>>, vector<1x8x384xbf16>
    %178 = vector.shape_cast %177 : vector<1x8x384xbf16> to vector<8x384xbf16>
    %179 = arith.extf %178 : vector<8x384xbf16> to vector<8x384xf32>
    %180 = arith.truncf %175 : vector<8x128xf32> to vector<8x128xbf16>
    %cst_38 = arith.constant dense<0.000000e+00> : vector<8x384xf32>
    %181 = tpu.matmul %180, %3, %cst_38 {dimension_numbers = #tpu.dot_dimension_numbers<[1], [0], [0], [1], [0, 0, 1, 1], [], []>} : vector<8x128xbf16>, vector<128x384xbf16>, vector<8x384xf32> -> vector<8x384xf32>
    %182 = vector.extract_strided_slice %179 {offsets = [0, 0], sizes = [8, 128], strides = [1, 1]} : vector<8x384xf32> to vector<8x128xf32>
    %183 = vector.extract_strided_slice %181 {offsets = [0, 0], sizes = [8, 128], strides = [1, 1]} : vector<8x384xf32> to vector<8x128xf32>
    %184 = arith.addf %182, %183 : vector<8x128xf32>
    %185 = arith.negf %184 : vector<8x128xf32>
    %186 = math.exp %185 : vector<8x128xf32>
    %cst_39 = arith.constant 1.000000e+00 : f32
    %187 = vector.broadcast %cst_39 : f32 to vector<8x128xf32>
    %188 = arith.addf %187, %186 : vector<8x128xf32>
    %189 = arith.divf %187, %188 : vector<8x128xf32>
    %190 = vector.extract_strided_slice %179 {offsets = [0, 128], sizes = [8, 128], strides = [1, 1]} : vector<8x384xf32> to vector<8x128xf32>
    %191 = vector.extract_strided_slice %181 {offsets = [0, 128], sizes = [8, 128], strides = [1, 1]} : vector<8x384xf32> to vector<8x128xf32>
    %192 = arith.addf %190, %191 : vector<8x128xf32>
    %193 = arith.negf %192 : vector<8x128xf32>
    %194 = math.exp %193 : vector<8x128xf32>
    %cst_40 = arith.constant 1.000000e+00 : f32
    %195 = vector.broadcast %cst_40 : f32 to vector<8x128xf32>
    %196 = arith.addf %195, %194 : vector<8x128xf32>
    %197 = arith.divf %195, %196 : vector<8x128xf32>
    %198 = vector.extract_strided_slice %179 {offsets = [0, 256], sizes = [8, 128], strides = [1, 1]} : vector<8x384xf32> to vector<8x128xf32>
    %199 = vector.extract_strided_slice %181 {offsets = [0, 256], sizes = [8, 128], strides = [1, 1]} : vector<8x384xf32> to vector<8x128xf32>
    %200 = vector.broadcast %4 : vector<1x128xf32> to vector<8x128xf32>
    %201 = arith.addf %199, %200 : vector<8x128xf32>
    %202 = arith.mulf %189, %201 : vector<8x128xf32>
    %203 = arith.addf %198, %202 : vector<8x128xf32>
    %204 = math.tanh %203 : vector<8x128xf32>
    %cst_41 = arith.constant 1.000000e+00 : f32
    %205 = vector.broadcast %cst_41 : f32 to vector<8x128xf32>
    %206 = arith.subf %205, %197 : vector<8x128xf32>
    %207 = arith.mulf %206, %204 : vector<8x128xf32>
    %208 = arith.mulf %197, %175 : vector<8x128xf32>
    %209 = arith.addf %207, %208 : vector<8x128xf32>
    %c6_i32 = arith.constant 6 : i32
    %210 = arith.index_cast %c6_i32 : i32 to index
    %c0_42 = arith.constant 0 : index
    %c0_43 = arith.constant 0 : index
    %211 = vector.load %arg2[%210, %c0_42, %c0_43] : memref<8x8x384xbf16, #tpu.memory_space<vmem>>, vector<1x8x384xbf16>
    %212 = vector.shape_cast %211 : vector<1x8x384xbf16> to vector<8x384xbf16>
    %213 = arith.extf %212 : vector<8x384xbf16> to vector<8x384xf32>
    %214 = arith.truncf %209 : vector<8x128xf32> to vector<8x128xbf16>
    %cst_44 = arith.constant dense<0.000000e+00> : vector<8x384xf32>
    %215 = tpu.matmul %214, %3, %cst_44 {dimension_numbers = #tpu.dot_dimension_numbers<[1], [0], [0], [1], [0, 0, 1, 1], [], []>} : vector<8x128xbf16>, vector<128x384xbf16>, vector<8x384xf32> -> vector<8x384xf32>
    %216 = vector.extract_strided_slice %213 {offsets = [0, 0], sizes = [8, 128], strides = [1, 1]} : vector<8x384xf32> to vector<8x128xf32>
    %217 = vector.extract_strided_slice %215 {offsets = [0, 0], sizes = [8, 128], strides = [1, 1]} : vector<8x384xf32> to vector<8x128xf32>
    %218 = arith.addf %216, %217 : vector<8x128xf32>
    %219 = arith.negf %218 : vector<8x128xf32>
    %220 = math.exp %219 : vector<8x128xf32>
    %cst_45 = arith.constant 1.000000e+00 : f32
    %221 = vector.broadcast %cst_45 : f32 to vector<8x128xf32>
    %222 = arith.addf %221, %220 : vector<8x128xf32>
    %223 = arith.divf %221, %222 : vector<8x128xf32>
    %224 = vector.extract_strided_slice %213 {offsets = [0, 128], sizes = [8, 128], strides = [1, 1]} : vector<8x384xf32> to vector<8x128xf32>
    %225 = vector.extract_strided_slice %215 {offsets = [0, 128], sizes = [8, 128], strides = [1, 1]} : vector<8x384xf32> to vector<8x128xf32>
    %226 = arith.addf %224, %225 : vector<8x128xf32>
    %227 = arith.negf %226 : vector<8x128xf32>
    %228 = math.exp %227 : vector<8x128xf32>
    %cst_46 = arith.constant 1.000000e+00 : f32
    %229 = vector.broadcast %cst_46 : f32 to vector<8x128xf32>
    %230 = arith.addf %229, %228 : vector<8x128xf32>
    %231 = arith.divf %229, %230 : vector<8x128xf32>
    %232 = vector.extract_strided_slice %213 {offsets = [0, 256], sizes = [8, 128], strides = [1, 1]} : vector<8x384xf32> to vector<8x128xf32>
    %233 = vector.extract_strided_slice %215 {offsets = [0, 256], sizes = [8, 128], strides = [1, 1]} : vector<8x384xf32> to vector<8x128xf32>
    %234 = vector.broadcast %4 : vector<1x128xf32> to vector<8x128xf32>
    %235 = arith.addf %233, %234 : vector<8x128xf32>
    %236 = arith.mulf %223, %235 : vector<8x128xf32>
    %237 = arith.addf %232, %236 : vector<8x128xf32>
    %238 = math.tanh %237 : vector<8x128xf32>
    %cst_47 = arith.constant 1.000000e+00 : f32
    %239 = vector.broadcast %cst_47 : f32 to vector<8x128xf32>
    %240 = arith.subf %239, %231 : vector<8x128xf32>
    %241 = arith.mulf %240, %238 : vector<8x128xf32>
    %242 = arith.mulf %231, %209 : vector<8x128xf32>
    %243 = arith.addf %241, %242 : vector<8x128xf32>
    %c7_i32 = arith.constant 7 : i32
    %244 = arith.index_cast %c7_i32 : i32 to index
    %c0_48 = arith.constant 0 : index
    %c0_49 = arith.constant 0 : index
    %245 = vector.load %arg2[%244, %c0_48, %c0_49] : memref<8x8x384xbf16, #tpu.memory_space<vmem>>, vector<1x8x384xbf16>
    %246 = vector.shape_cast %245 : vector<1x8x384xbf16> to vector<8x384xbf16>
    %247 = arith.extf %246 : vector<8x384xbf16> to vector<8x384xf32>
    %248 = arith.truncf %243 : vector<8x128xf32> to vector<8x128xbf16>
    %cst_50 = arith.constant dense<0.000000e+00> : vector<8x384xf32>
    %249 = tpu.matmul %248, %3, %cst_50 {dimension_numbers = #tpu.dot_dimension_numbers<[1], [0], [0], [1], [0, 0, 1, 1], [], []>} : vector<8x128xbf16>, vector<128x384xbf16>, vector<8x384xf32> -> vector<8x384xf32>
    %250 = vector.extract_strided_slice %247 {offsets = [0, 0], sizes = [8, 128], strides = [1, 1]} : vector<8x384xf32> to vector<8x128xf32>
    %251 = vector.extract_strided_slice %249 {offsets = [0, 0], sizes = [8, 128], strides = [1, 1]} : vector<8x384xf32> to vector<8x128xf32>
    %252 = arith.addf %250, %251 : vector<8x128xf32>
    %253 = arith.negf %252 : vector<8x128xf32>
    %254 = math.exp %253 : vector<8x128xf32>
    %cst_51 = arith.constant 1.000000e+00 : f32
    %255 = vector.broadcast %cst_51 : f32 to vector<8x128xf32>
    %256 = arith.addf %255, %254 : vector<8x128xf32>
    %257 = arith.divf %255, %256 : vector<8x128xf32>
    %258 = vector.extract_strided_slice %247 {offsets = [0, 128], sizes = [8, 128], strides = [1, 1]} : vector<8x384xf32> to vector<8x128xf32>
    %259 = vector.extract_strided_slice %249 {offsets = [0, 128], sizes = [8, 128], strides = [1, 1]} : vector<8x384xf32> to vector<8x128xf32>
    %260 = arith.addf %258, %259 : vector<8x128xf32>
    %261 = arith.negf %260 : vector<8x128xf32>
    %262 = math.exp %261 : vector<8x128xf32>
    %cst_52 = arith.constant 1.000000e+00 : f32
    %263 = vector.broadcast %cst_52 : f32 to vector<8x128xf32>
    %264 = arith.addf %263, %262 : vector<8x128xf32>
    %265 = arith.divf %263, %264 : vector<8x128xf32>
    %266 = vector.extract_strided_slice %247 {offsets = [0, 256], sizes = [8, 128], strides = [1, 1]} : vector<8x384xf32> to vector<8x128xf32>
    %267 = vector.extract_strided_slice %249 {offsets = [0, 256], sizes = [8, 128], strides = [1, 1]} : vector<8x384xf32> to vector<8x128xf32>
    %268 = vector.broadcast %4 : vector<1x128xf32> to vector<8x128xf32>
    %269 = arith.addf %267, %268 : vector<8x128xf32>
    %270 = arith.mulf %257, %269 : vector<8x128xf32>
    %271 = arith.addf %266, %270 : vector<8x128xf32>
    %272 = math.tanh %271 : vector<8x128xf32>
    %cst_53 = arith.constant 1.000000e+00 : f32
    %273 = vector.broadcast %cst_53 : f32 to vector<8x128xf32>
    %274 = arith.subf %273, %265 : vector<8x128xf32>
    %275 = arith.mulf %274, %272 : vector<8x128xf32>
    %276 = arith.mulf %265, %243 : vector<8x128xf32>
    %277 = arith.addf %275, %276 : vector<8x128xf32>
    %c8_i32 = arith.constant 8 : i32
    %c0_54 = arith.constant 0 : index
    %c0_55 = arith.constant 0 : index
    %278 = vector.load %arg6[%c0_54, %c0_55] : memref<8x128xf32, #tpu.memory_space<vmem>>, vector<8x128xf32>
    tpu.vector_store %arg6[%c0_54, %c0_55], %277 {strides = array<i32>} : memref<8x128xf32, #tpu.memory_space<vmem>>, vector<8x128xf32>,
    %c0_i32_56 = arith.constant 0 : i32
    %279 = arith.cmpi eq, %arg1, %c0_i32_56 : i32
    %280 = arith.extui %279 : i1 to i32
    %c0_i32_57 = arith.constant 0 : i32
    %281 = arith.cmpi ne, %280, %c0_i32_57 : i32
    scf.if %281 {
      %c0_58 = arith.constant 0 : index
      %c0_59 = arith.constant 0 : index
      %282 = vector.load %arg5[%c0_58, %c0_59] : memref<8x128xf32, #tpu.memory_space<vmem>>, vector<8x128xf32>
      tpu.vector_store %arg5[%c0_58, %c0_59], %277 {strides = array<i32>} : memref<8x128xf32, #tpu.memory_space<vmem>>, vector<8x128xf32>,
    } else {
    }
    return
  }
  func.func @transform_0(%arg0: i32, %arg1: i32) -> (i32, i32, i32) {
    %c0_i32 = arith.constant 0 : i32
    %c0_i32_0 = arith.constant 0 : i32
    return %arg1, %arg0, %c0_i32 : i32, i32, i32
  }
  func.func @transform_1(%arg0: i32, %arg1: i32) -> (i32, i32) {
    %c0_i32 = arith.constant 0 : i32
    %c0_i32_0 = arith.constant 0 : i32
    %c0_i32_1 = arith.constant 0 : i32
    return %c0_i32, %c0_i32_0 : i32, i32
  }
  func.func @transform_2(%arg0: i32, %arg1: i32) -> (i32, i32) {
    %c0_i32 = arith.constant 0 : i32
    %c0_i32_0 = arith.constant 0 : i32
    %c0_i32_1 = arith.constant 0 : i32
    return %c0_i32, %c0_i32_0 : i32, i32
  }
  func.func @transform_3(%arg0: i32, %arg1: i32) -> (i32, i32) {
    %c0_i32 = arith.constant 0 : i32
    %c0_i32_0 = arith.constant 0 : i32
    return %arg0, %c0_i32 : i32, i32
  }
}

module attributes {stable_mosaic.version = 11 : i64} {
  func.func @_matmul_bias_kernel(%arg0: i32, %arg1: i32, %arg2: i32, %arg3: memref<64x128xbf16, #tpu.memory_space<vmem>>, %arg4: memref<128x256xbf16, #tpu.memory_space<vmem>>, %arg5: memref<1x256xf32, #tpu.memory_space<vmem>>, %arg6: memref<64x256xf32, #tpu.memory_space<vmem>>, %arg7: memref<64x256xf32, #tpu.memory_space<vmem>>) attributes {dimension_semantics = [#tpu.dimension_semantics<parallel>, #tpu.dimension_semantics<parallel>, #tpu.dimension_semantics<arbitrary>], iteration_bounds = array<i64: 1, 1, 1>, scalar_prefetch = 0 : i64, scratch_operands = 1 : i64, tpu.core_type = #tpu.core_type<tc>, window_params = [{transform_indices = @transform_0, window_bounds = array<i64: 64, 128>}, {transform_indices = @transform_1, window_bounds = array<i64: 128, 256>}, {transform_indices = @transform_2, window_bounds = array<i64: 1, 256>}, {transform_indices = @transform_3, window_bounds = array<i64: 64, 256>}]} {
    %c0_i32 = arith.constant 0 : i32
    %0 = arith.cmpi eq, %arg2, %c0_i32 : i32
    %1 = arith.extui %0 : i1 to i32
    %c0_i32_0 = arith.constant 0 : i32
    %2 = arith.cmpi ne, %1, %c0_i32_0 : i32
    scf.if %2 {
      %cst_10 = arith.constant 0.000000e+00 : f32
      %12 = vector.broadcast %cst_10 : f32 to vector<64x256xf32>
      %c0_11 = arith.constant 0 : index
      %c0_12 = arith.constant 0 : index
      %13 = vector.load %arg7[%c0_11, %c0_12] : memref<64x256xf32, #tpu.memory_space<vmem>>, vector<64x256xf32>
      tpu.vector_store %arg7[%c0_11, %c0_12], %12 {strides = array<i32>} : memref<64x256xf32, #tpu.memory_space<vmem>>, vector<64x256xf32>,
    } else {
    }
    %c0 = arith.constant 0 : index
    %c0_1 = arith.constant 0 : index
    %3 = vector.load %arg7[%c0, %c0_1] : memref<64x256xf32, #tpu.memory_space<vmem>>, vector<64x256xf32>
    %c0_2 = arith.constant 0 : index
    %c0_3 = arith.constant 0 : index
    %4 = vector.load %arg3[%c0_2, %c0_3] : memref<64x128xbf16, #tpu.memory_space<vmem>>, vector<64x128xbf16>
    %c0_4 = arith.constant 0 : index
    %c0_5 = arith.constant 0 : index
    %5 = vector.load %arg4[%c0_4, %c0_5] : memref<128x256xbf16, #tpu.memory_space<vmem>>, vector<128x256xbf16>
    %cst = arith.constant dense<0.000000e+00> : vector<64x256xf32>
    %6 = tpu.matmul %4, %5, %cst {dimension_numbers = #tpu.dot_dimension_numbers<[1], [0], [0], [1], [0, 0, 1, 1], [], []>} : vector<64x128xbf16>, vector<128x256xbf16>, vector<64x256xf32> -> vector<64x256xf32>
    %7 = arith.addf %3, %6 : vector<64x256xf32>
    %c0_6 = arith.constant 0 : index
    %c0_7 = arith.constant 0 : index
    %8 = vector.load %arg7[%c0_6, %c0_7] : memref<64x256xf32, #tpu.memory_space<vmem>>, vector<64x256xf32>
    tpu.vector_store %arg7[%c0_6, %c0_7], %7 {strides = array<i32>} : memref<64x256xf32, #tpu.memory_space<vmem>>, vector<64x256xf32>,
    %c0_i32_8 = arith.constant 0 : i32
    %9 = arith.cmpi eq, %arg2, %c0_i32_8 : i32
    %10 = arith.extui %9 : i1 to i32
    %c0_i32_9 = arith.constant 0 : i32
    %11 = arith.cmpi ne, %10, %c0_i32_9 : i32
    scf.if %11 {
      %c0_10 = arith.constant 0 : index
      %c0_11 = arith.constant 0 : index
      %12 = vector.load %arg7[%c0_10, %c0_11] : memref<64x256xf32, #tpu.memory_space<vmem>>, vector<64x256xf32>
      %c0_12 = arith.constant 0 : index
      %c0_13 = arith.constant 0 : index
      %13 = vector.load %arg5[%c0_12, %c0_13] : memref<1x256xf32, #tpu.memory_space<vmem>>, vector<1x256xf32>
      %14 = vector.broadcast %13 : vector<1x256xf32> to vector<64x256xf32>
      %15 = arith.addf %12, %14 : vector<64x256xf32>
      %c0_14 = arith.constant 0 : index
      %c0_15 = arith.constant 0 : index
      %16 = vector.load %arg6[%c0_14, %c0_15] : memref<64x256xf32, #tpu.memory_space<vmem>>, vector<64x256xf32>
      tpu.vector_store %arg6[%c0_14, %c0_15], %15 {strides = array<i32>} : memref<64x256xf32, #tpu.memory_space<vmem>>, vector<64x256xf32>,
    } else {
    }
    return
  }
  func.func @transform_0(%arg0: i32, %arg1: i32, %arg2: i32) -> (i32, i32) {
    %c0_i32 = arith.constant 0 : i32
    return %arg0, %arg2 : i32, i32
  }
  func.func @transform_1(%arg0: i32, %arg1: i32, %arg2: i32) -> (i32, i32) {
    %c0_i32 = arith.constant 0 : i32
    return %arg2, %arg1 : i32, i32
  }
  func.func @transform_2(%arg0: i32, %arg1: i32, %arg2: i32) -> (i32, i32) {
    %c0_i32 = arith.constant 0 : i32
    %c0_i32_0 = arith.constant 0 : i32
    return %c0_i32, %arg1 : i32, i32
  }
  func.func @transform_3(%arg0: i32, %arg1: i32, %arg2: i32) -> (i32, i32) {
    %c0_i32 = arith.constant 0 : i32
    return %arg0, %arg1 : i32, i32
  }
}

module attributes {stable_mosaic.version = 11 : i64} {
  func.func @gru_decoder_kernel(%arg0: i32, %arg1: i32, %arg2: memref<8x8x384xbf16, #tpu.memory_space<vmem>>, %arg3: memref<8x128xf32, #tpu.memory_space<vmem>>, %arg4: memref<128x384xbf16, #tpu.memory_space<vmem>>, %arg5: memref<1x128xf32, #tpu.memory_space<vmem>>, %arg6: memref<8x8x128xbf16, #tpu.memory_space<vmem>>, %arg7: memref<8x128xf32, #tpu.memory_space<vmem>>) attributes {dimension_semantics = [#tpu.dimension_semantics<parallel>, #tpu.dimension_semantics<arbitrary>], iteration_bounds = array<i64: 1, 1>, scalar_prefetch = 0 : i64, scratch_operands = 1 : i64, tpu.core_type = #tpu.core_type<tc>, window_params = [{transform_indices = @transform_0, window_bounds = array<i64: 8, 8, 384>}, {pipeline_mode = #tpu.pipeline_mode<synchronous>, transform_indices = @transform_1, window_bounds = array<i64: 8, 128>}, {pipeline_mode = #tpu.pipeline_mode<synchronous>, transform_indices = @transform_2, window_bounds = array<i64: 128, 384>}, {pipeline_mode = #tpu.pipeline_mode<synchronous>, transform_indices = @transform_3, window_bounds = array<i64: 1, 128>}, {transform_indices = @transform_4, window_bounds = array<i64: 8, 8, 128>}]} {
    %c0_i32 = arith.constant 0 : i32
    %0 = arith.cmpi eq, %arg1, %c0_i32 : i32
    %1 = arith.extui %0 : i1 to i32
    %c0_i32_0 = arith.constant 0 : i32
    %2 = arith.cmpi ne, %1, %c0_i32_0 : i32
    scf.if %2 {
      %c0_72 = arith.constant 0 : index
      %c0_73 = arith.constant 0 : index
      %319 = vector.load %arg3[%c0_72, %c0_73] : memref<8x128xf32, #tpu.memory_space<vmem>>, vector<8x128xf32>
      %c0_74 = arith.constant 0 : index
      %c0_75 = arith.constant 0 : index
      %320 = vector.load %arg7[%c0_74, %c0_75] : memref<8x128xf32, #tpu.memory_space<vmem>>, vector<8x128xf32>
      tpu.vector_store %arg7[%c0_74, %c0_75], %319 {strides = array<i32>} : memref<8x128xf32, #tpu.memory_space<vmem>>, vector<8x128xf32>,
    } else {
    }
    %c0 = arith.constant 0 : index
    %c0_1 = arith.constant 0 : index
    %3 = vector.load %arg4[%c0, %c0_1] : memref<128x384xbf16, #tpu.memory_space<vmem>>, vector<128x384xbf16>
    %c0_2 = arith.constant 0 : index
    %c0_3 = arith.constant 0 : index
    %4 = vector.load %arg5[%c0_2, %c0_3] : memref<1x128xf32, #tpu.memory_space<vmem>>, vector<1x128xf32>
    %c0_4 = arith.constant 0 : index
    %c0_5 = arith.constant 0 : index
    %5 = vector.load %arg7[%c0_4, %c0_5] : memref<8x128xf32, #tpu.memory_space<vmem>>, vector<8x128xf32>
    %c0_i32_6 = arith.constant 0 : i32
    %6 = arith.index_cast %c0_i32_6 : i32 to index
    %c0_7 = arith.constant 0 : index
    %c0_8 = arith.constant 0 : index
    %7 = vector.load %arg2[%6, %c0_7, %c0_8] : memref<8x8x384xbf16, #tpu.memory_space<vmem>>, vector<1x8x384xbf16>
    %8 = vector.shape_cast %7 : vector<1x8x384xbf16> to vector<8x384xbf16>
    %9 = arith.extf %8 : vector<8x384xbf16> to vector<8x384xf32>
    %10 = arith.truncf %5 : vector<8x128xf32> to vector<8x128xbf16>
    %cst = arith.constant dense<0.000000e+00> : vector<8x384xf32>
    %11 = tpu.matmul %10, %3, %cst {dimension_numbers = #tpu.dot_dimension_numbers<[1], [0], [0], [1], [0, 0, 1, 1], [], []>} : vector<8x128xbf16>, vector<128x384xbf16>, vector<8x384xf32> -> vector<8x384xf32>
    %12 = vector.extract_strided_slice %9 {offsets = [0, 0], sizes = [8, 128], strides = [1, 1]} : vector<8x384xf32> to vector<8x128xf32>
    %13 = vector.extract_strided_slice %11 {offsets = [0, 0], sizes = [8, 128], strides = [1, 1]} : vector<8x384xf32> to vector<8x128xf32>
    %14 = arith.addf %12, %13 : vector<8x128xf32>
    %15 = arith.negf %14 : vector<8x128xf32>
    %16 = math.exp %15 : vector<8x128xf32>
    %cst_9 = arith.constant 1.000000e+00 : f32
    %17 = vector.broadcast %cst_9 : f32 to vector<8x128xf32>
    %18 = arith.addf %17, %16 : vector<8x128xf32>
    %19 = arith.divf %17, %18 : vector<8x128xf32>
    %20 = vector.extract_strided_slice %9 {offsets = [0, 128], sizes = [8, 128], strides = [1, 1]} : vector<8x384xf32> to vector<8x128xf32>
    %21 = vector.extract_strided_slice %11 {offsets = [0, 128], sizes = [8, 128], strides = [1, 1]} : vector<8x384xf32> to vector<8x128xf32>
    %22 = arith.addf %20, %21 : vector<8x128xf32>
    %23 = arith.negf %22 : vector<8x128xf32>
    %24 = math.exp %23 : vector<8x128xf32>
    %cst_10 = arith.constant 1.000000e+00 : f32
    %25 = vector.broadcast %cst_10 : f32 to vector<8x128xf32>
    %26 = arith.addf %25, %24 : vector<8x128xf32>
    %27 = arith.divf %25, %26 : vector<8x128xf32>
    %28 = vector.extract_strided_slice %9 {offsets = [0, 256], sizes = [8, 128], strides = [1, 1]} : vector<8x384xf32> to vector<8x128xf32>
    %29 = vector.extract_strided_slice %11 {offsets = [0, 256], sizes = [8, 128], strides = [1, 1]} : vector<8x384xf32> to vector<8x128xf32>
    %30 = vector.broadcast %4 : vector<1x128xf32> to vector<8x128xf32>
    %31 = arith.addf %29, %30 : vector<8x128xf32>
    %32 = arith.mulf %19, %31 : vector<8x128xf32>
    %33 = arith.addf %28, %32 : vector<8x128xf32>
    %34 = math.tanh %33 : vector<8x128xf32>
    %cst_11 = arith.constant 1.000000e+00 : f32
    %35 = vector.broadcast %cst_11 : f32 to vector<8x128xf32>
    %36 = arith.subf %35, %27 : vector<8x128xf32>
    %37 = arith.mulf %36, %34 : vector<8x128xf32>
    %38 = arith.mulf %27, %5 : vector<8x128xf32>
    %39 = arith.addf %37, %38 : vector<8x128xf32>
    %40 = arith.truncf %39 : vector<8x128xf32> to vector<8x128xbf16>
    %41 = arith.index_cast %c0_i32_6 : i32 to index
    %c0_12 = arith.constant 0 : index
    %c0_13 = arith.constant 0 : index
    %42 = vector.load %arg6[%41, %c0_12, %c0_13] : memref<8x8x128xbf16, #tpu.memory_space<vmem>>, vector<1x8x128xbf16>
    %43 = vector.shape_cast %42 : vector<1x8x128xbf16> to vector<8x128xbf16>
    %44 = vector.shape_cast %40 : vector<8x128xbf16> to vector<1x8x128xbf16>
    tpu.vector_store %arg6[%41, %c0_12, %c0_13], %44 {strides = array<i32>} : memref<8x8x128xbf16, #tpu.memory_space<vmem>>, vector<1x8x128xbf16>,
    %c1_i32 = arith.constant 1 : i32
    %45 = arith.index_cast %c1_i32 : i32 to index
    %c0_14 = arith.constant 0 : index
    %c0_15 = arith.constant 0 : index
    %46 = vector.load %arg2[%45, %c0_14, %c0_15] : memref<8x8x384xbf16, #tpu.memory_space<vmem>>, vector<1x8x384xbf16>
    %47 = vector.shape_cast %46 : vector<1x8x384xbf16> to vector<8x384xbf16>
    %48 = arith.extf %47 : vector<8x384xbf16> to vector<8x384xf32>
    %49 = arith.truncf %39 : vector<8x128xf32> to vector<8x128xbf16>
    %cst_16 = arith.constant dense<0.000000e+00> : vector<8x384xf32>
    %50 = tpu.matmul %49, %3, %cst_16 {dimension_numbers = #tpu.dot_dimension_numbers<[1], [0], [0], [1], [0, 0, 1, 1], [], []>} : vector<8x128xbf16>, vector<128x384xbf16>, vector<8x384xf32> -> vector<8x384xf32>
    %51 = vector.extract_strided_slice %48 {offsets = [0, 0], sizes = [8, 128], strides = [1, 1]} : vector<8x384xf32> to vector<8x128xf32>
    %52 = vector.extract_strided_slice %50 {offsets = [0, 0], sizes = [8, 128], strides = [1, 1]} : vector<8x384xf32> to vector<8x128xf32>
    %53 = arith.addf %51, %52 : vector<8x128xf32>
    %54 = arith.negf %53 : vector<8x128xf32>
    %55 = math.exp %54 : vector<8x128xf32>
    %cst_17 = arith.constant 1.000000e+00 : f32
    %56 = vector.broadcast %cst_17 : f32 to vector<8x128xf32>
    %57 = arith.addf %56, %55 : vector<8x128xf32>
    %58 = arith.divf %56, %57 : vector<8x128xf32>
    %59 = vector.extract_strided_slice %48 {offsets = [0, 128], sizes = [8, 128], strides = [1, 1]} : vector<8x384xf32> to vector<8x128xf32>
    %60 = vector.extract_strided_slice %50 {offsets = [0, 128], sizes = [8, 128], strides = [1, 1]} : vector<8x384xf32> to vector<8x128xf32>
    %61 = arith.addf %59, %60 : vector<8x128xf32>
    %62 = arith.negf %61 : vector<8x128xf32>
    %63 = math.exp %62 : vector<8x128xf32>
    %cst_18 = arith.constant 1.000000e+00 : f32
    %64 = vector.broadcast %cst_18 : f32 to vector<8x128xf32>
    %65 = arith.addf %64, %63 : vector<8x128xf32>
    %66 = arith.divf %64, %65 : vector<8x128xf32>
    %67 = vector.extract_strided_slice %48 {offsets = [0, 256], sizes = [8, 128], strides = [1, 1]} : vector<8x384xf32> to vector<8x128xf32>
    %68 = vector.extract_strided_slice %50 {offsets = [0, 256], sizes = [8, 128], strides = [1, 1]} : vector<8x384xf32> to vector<8x128xf32>
    %69 = vector.broadcast %4 : vector<1x128xf32> to vector<8x128xf32>
    %70 = arith.addf %68, %69 : vector<8x128xf32>
    %71 = arith.mulf %58, %70 : vector<8x128xf32>
    %72 = arith.addf %67, %71 : vector<8x128xf32>
    %73 = math.tanh %72 : vector<8x128xf32>
    %cst_19 = arith.constant 1.000000e+00 : f32
    %74 = vector.broadcast %cst_19 : f32 to vector<8x128xf32>
    %75 = arith.subf %74, %66 : vector<8x128xf32>
    %76 = arith.mulf %75, %73 : vector<8x128xf32>
    %77 = arith.mulf %66, %39 : vector<8x128xf32>
    %78 = arith.addf %76, %77 : vector<8x128xf32>
    %79 = arith.truncf %78 : vector<8x128xf32> to vector<8x128xbf16>
    %80 = arith.index_cast %c1_i32 : i32 to index
    %c0_20 = arith.constant 0 : index
    %c0_21 = arith.constant 0 : index
    %81 = vector.load %arg6[%80, %c0_20, %c0_21] : memref<8x8x128xbf16, #tpu.memory_space<vmem>>, vector<1x8x128xbf16>
    %82 = vector.shape_cast %81 : vector<1x8x128xbf16> to vector<8x128xbf16>
    %83 = vector.shape_cast %79 : vector<8x128xbf16> to vector<1x8x128xbf16>
    tpu.vector_store %arg6[%80, %c0_20, %c0_21], %83 {strides = array<i32>} : memref<8x8x128xbf16, #tpu.memory_space<vmem>>, vector<1x8x128xbf16>,
    %c2_i32 = arith.constant 2 : i32
    %84 = arith.index_cast %c2_i32 : i32 to index
    %c0_22 = arith.constant 0 : index
    %c0_23 = arith.constant 0 : index
    %85 = vector.load %arg2[%84, %c0_22, %c0_23] : memref<8x8x384xbf16, #tpu.memory_space<vmem>>, vector<1x8x384xbf16>
    %86 = vector.shape_cast %85 : vector<1x8x384xbf16> to vector<8x384xbf16>
    %87 = arith.extf %86 : vector<8x384xbf16> to vector<8x384xf32>
    %88 = arith.truncf %78 : vector<8x128xf32> to vector<8x128xbf16>
    %cst_24 = arith.constant dense<0.000000e+00> : vector<8x384xf32>
    %89 = tpu.matmul %88, %3, %cst_24 {dimension_numbers = #tpu.dot_dimension_numbers<[1], [0], [0], [1], [0, 0, 1, 1], [], []>} : vector<8x128xbf16>, vector<128x384xbf16>, vector<8x384xf32> -> vector<8x384xf32>
    %90 = vector.extract_strided_slice %87 {offsets = [0, 0], sizes = [8, 128], strides = [1, 1]} : vector<8x384xf32> to vector<8x128xf32>
    %91 = vector.extract_strided_slice %89 {offsets = [0, 0], sizes = [8, 128], strides = [1, 1]} : vector<8x384xf32> to vector<8x128xf32>
    %92 = arith.addf %90, %91 : vector<8x128xf32>
    %93 = arith.negf %92 : vector<8x128xf32>
    %94 = math.exp %93 : vector<8x128xf32>
    %cst_25 = arith.constant 1.000000e+00 : f32
    %95 = vector.broadcast %cst_25 : f32 to vector<8x128xf32>
    %96 = arith.addf %95, %94 : vector<8x128xf32>
    %97 = arith.divf %95, %96 : vector<8x128xf32>
    %98 = vector.extract_strided_slice %87 {offsets = [0, 128], sizes = [8, 128], strides = [1, 1]} : vector<8x384xf32> to vector<8x128xf32>
    %99 = vector.extract_strided_slice %89 {offsets = [0, 128], sizes = [8, 128], strides = [1, 1]} : vector<8x384xf32> to vector<8x128xf32>
    %100 = arith.addf %98, %99 : vector<8x128xf32>
    %101 = arith.negf %100 : vector<8x128xf32>
    %102 = math.exp %101 : vector<8x128xf32>
    %cst_26 = arith.constant 1.000000e+00 : f32
    %103 = vector.broadcast %cst_26 : f32 to vector<8x128xf32>
    %104 = arith.addf %103, %102 : vector<8x128xf32>
    %105 = arith.divf %103, %104 : vector<8x128xf32>
    %106 = vector.extract_strided_slice %87 {offsets = [0, 256], sizes = [8, 128], strides = [1, 1]} : vector<8x384xf32> to vector<8x128xf32>
    %107 = vector.extract_strided_slice %89 {offsets = [0, 256], sizes = [8, 128], strides = [1, 1]} : vector<8x384xf32> to vector<8x128xf32>
    %108 = vector.broadcast %4 : vector<1x128xf32> to vector<8x128xf32>
    %109 = arith.addf %107, %108 : vector<8x128xf32>
    %110 = arith.mulf %97, %109 : vector<8x128xf32>
    %111 = arith.addf %106, %110 : vector<8x128xf32>
    %112 = math.tanh %111 : vector<8x128xf32>
    %cst_27 = arith.constant 1.000000e+00 : f32
    %113 = vector.broadcast %cst_27 : f32 to vector<8x128xf32>
    %114 = arith.subf %113, %105 : vector<8x128xf32>
    %115 = arith.mulf %114, %112 : vector<8x128xf32>
    %116 = arith.mulf %105, %78 : vector<8x128xf32>
    %117 = arith.addf %115, %116 : vector<8x128xf32>
    %118 = arith.truncf %117 : vector<8x128xf32> to vector<8x128xbf16>
    %119 = arith.index_cast %c2_i32 : i32 to index
    %c0_28 = arith.constant 0 : index
    %c0_29 = arith.constant 0 : index
    %120 = vector.load %arg6[%119, %c0_28, %c0_29] : memref<8x8x128xbf16, #tpu.memory_space<vmem>>, vector<1x8x128xbf16>
    %121 = vector.shape_cast %120 : vector<1x8x128xbf16> to vector<8x128xbf16>
    %122 = vector.shape_cast %118 : vector<8x128xbf16> to vector<1x8x128xbf16>
    tpu.vector_store %arg6[%119, %c0_28, %c0_29], %122 {strides = array<i32>} : memref<8x8x128xbf16, #tpu.memory_space<vmem>>, vector<1x8x128xbf16>,
    %c3_i32 = arith.constant 3 : i32
    %123 = arith.index_cast %c3_i32 : i32 to index
    %c0_30 = arith.constant 0 : index
    %c0_31 = arith.constant 0 : index
    %124 = vector.load %arg2[%123, %c0_30, %c0_31] : memref<8x8x384xbf16, #tpu.memory_space<vmem>>, vector<1x8x384xbf16>
    %125 = vector.shape_cast %124 : vector<1x8x384xbf16> to vector<8x384xbf16>
    %126 = arith.extf %125 : vector<8x384xbf16> to vector<8x384xf32>
    %127 = arith.truncf %117 : vector<8x128xf32> to vector<8x128xbf16>
    %cst_32 = arith.constant dense<0.000000e+00> : vector<8x384xf32>
    %128 = tpu.matmul %127, %3, %cst_32 {dimension_numbers = #tpu.dot_dimension_numbers<[1], [0], [0], [1], [0, 0, 1, 1], [], []>} : vector<8x128xbf16>, vector<128x384xbf16>, vector<8x384xf32> -> vector<8x384xf32>
    %129 = vector.extract_strided_slice %126 {offsets = [0, 0], sizes = [8, 128], strides = [1, 1]} : vector<8x384xf32> to vector<8x128xf32>
    %130 = vector.extract_strided_slice %128 {offsets = [0, 0], sizes = [8, 128], strides = [1, 1]} : vector<8x384xf32> to vector<8x128xf32>
    %131 = arith.addf %129, %130 : vector<8x128xf32>
    %132 = arith.negf %131 : vector<8x128xf32>
    %133 = math.exp %132 : vector<8x128xf32>
    %cst_33 = arith.constant 1.000000e+00 : f32
    %134 = vector.broadcast %cst_33 : f32 to vector<8x128xf32>
    %135 = arith.addf %134, %133 : vector<8x128xf32>
    %136 = arith.divf %134, %135 : vector<8x128xf32>
    %137 = vector.extract_strided_slice %126 {offsets = [0, 128], sizes = [8, 128], strides = [1, 1]} : vector<8x384xf32> to vector<8x128xf32>
    %138 = vector.extract_strided_slice %128 {offsets = [0, 128], sizes = [8, 128], strides = [1, 1]} : vector<8x384xf32> to vector<8x128xf32>
    %139 = arith.addf %137, %138 : vector<8x128xf32>
    %140 = arith.negf %139 : vector<8x128xf32>
    %141 = math.exp %140 : vector<8x128xf32>
    %cst_34 = arith.constant 1.000000e+00 : f32
    %142 = vector.broadcast %cst_34 : f32 to vector<8x128xf32>
    %143 = arith.addf %142, %141 : vector<8x128xf32>
    %144 = arith.divf %142, %143 : vector<8x128xf32>
    %145 = vector.extract_strided_slice %126 {offsets = [0, 256], sizes = [8, 128], strides = [1, 1]} : vector<8x384xf32> to vector<8x128xf32>
    %146 = vector.extract_strided_slice %128 {offsets = [0, 256], sizes = [8, 128], strides = [1, 1]} : vector<8x384xf32> to vector<8x128xf32>
    %147 = vector.broadcast %4 : vector<1x128xf32> to vector<8x128xf32>
    %148 = arith.addf %146, %147 : vector<8x128xf32>
    %149 = arith.mulf %136, %148 : vector<8x128xf32>
    %150 = arith.addf %145, %149 : vector<8x128xf32>
    %151 = math.tanh %150 : vector<8x128xf32>
    %cst_35 = arith.constant 1.000000e+00 : f32
    %152 = vector.broadcast %cst_35 : f32 to vector<8x128xf32>
    %153 = arith.subf %152, %144 : vector<8x128xf32>
    %154 = arith.mulf %153, %151 : vector<8x128xf32>
    %155 = arith.mulf %144, %117 : vector<8x128xf32>
    %156 = arith.addf %154, %155 : vector<8x128xf32>
    %157 = arith.truncf %156 : vector<8x128xf32> to vector<8x128xbf16>
    %158 = arith.index_cast %c3_i32 : i32 to index
    %c0_36 = arith.constant 0 : index
    %c0_37 = arith.constant 0 : index
    %159 = vector.load %arg6[%158, %c0_36, %c0_37] : memref<8x8x128xbf16, #tpu.memory_space<vmem>>, vector<1x8x128xbf16>
    %160 = vector.shape_cast %159 : vector<1x8x128xbf16> to vector<8x128xbf16>
    %161 = vector.shape_cast %157 : vector<8x128xbf16> to vector<1x8x128xbf16>
    tpu.vector_store %arg6[%158, %c0_36, %c0_37], %161 {strides = array<i32>} : memref<8x8x128xbf16, #tpu.memory_space<vmem>>, vector<1x8x128xbf16>,
    %c4_i32 = arith.constant 4 : i32
    %162 = arith.index_cast %c4_i32 : i32 to index
    %c0_38 = arith.constant 0 : index
    %c0_39 = arith.constant 0 : index
    %163 = vector.load %arg2[%162, %c0_38, %c0_39] : memref<8x8x384xbf16, #tpu.memory_space<vmem>>, vector<1x8x384xbf16>
    %164 = vector.shape_cast %163 : vector<1x8x384xbf16> to vector<8x384xbf16>
    %165 = arith.extf %164 : vector<8x384xbf16> to vector<8x384xf32>
    %166 = arith.truncf %156 : vector<8x128xf32> to vector<8x128xbf16>
    %cst_40 = arith.constant dense<0.000000e+00> : vector<8x384xf32>
    %167 = tpu.matmul %166, %3, %cst_40 {dimension_numbers = #tpu.dot_dimension_numbers<[1], [0], [0], [1], [0, 0, 1, 1], [], []>} : vector<8x128xbf16>, vector<128x384xbf16>, vector<8x384xf32> -> vector<8x384xf32>
    %168 = vector.extract_strided_slice %165 {offsets = [0, 0], sizes = [8, 128], strides = [1, 1]} : vector<8x384xf32> to vector<8x128xf32>
    %169 = vector.extract_strided_slice %167 {offsets = [0, 0], sizes = [8, 128], strides = [1, 1]} : vector<8x384xf32> to vector<8x128xf32>
    %170 = arith.addf %168, %169 : vector<8x128xf32>
    %171 = arith.negf %170 : vector<8x128xf32>
    %172 = math.exp %171 : vector<8x128xf32>
    %cst_41 = arith.constant 1.000000e+00 : f32
    %173 = vector.broadcast %cst_41 : f32 to vector<8x128xf32>
    %174 = arith.addf %173, %172 : vector<8x128xf32>
    %175 = arith.divf %173, %174 : vector<8x128xf32>
    %176 = vector.extract_strided_slice %165 {offsets = [0, 128], sizes = [8, 128], strides = [1, 1]} : vector<8x384xf32> to vector<8x128xf32>
    %177 = vector.extract_strided_slice %167 {offsets = [0, 128], sizes = [8, 128], strides = [1, 1]} : vector<8x384xf32> to vector<8x128xf32>
    %178 = arith.addf %176, %177 : vector<8x128xf32>
    %179 = arith.negf %178 : vector<8x128xf32>
    %180 = math.exp %179 : vector<8x128xf32>
    %cst_42 = arith.constant 1.000000e+00 : f32
    %181 = vector.broadcast %cst_42 : f32 to vector<8x128xf32>
    %182 = arith.addf %181, %180 : vector<8x128xf32>
    %183 = arith.divf %181, %182 : vector<8x128xf32>
    %184 = vector.extract_strided_slice %165 {offsets = [0, 256], sizes = [8, 128], strides = [1, 1]} : vector<8x384xf32> to vector<8x128xf32>
    %185 = vector.extract_strided_slice %167 {offsets = [0, 256], sizes = [8, 128], strides = [1, 1]} : vector<8x384xf32> to vector<8x128xf32>
    %186 = vector.broadcast %4 : vector<1x128xf32> to vector<8x128xf32>
    %187 = arith.addf %185, %186 : vector<8x128xf32>
    %188 = arith.mulf %175, %187 : vector<8x128xf32>
    %189 = arith.addf %184, %188 : vector<8x128xf32>
    %190 = math.tanh %189 : vector<8x128xf32>
    %cst_43 = arith.constant 1.000000e+00 : f32
    %191 = vector.broadcast %cst_43 : f32 to vector<8x128xf32>
    %192 = arith.subf %191, %183 : vector<8x128xf32>
    %193 = arith.mulf %192, %190 : vector<8x128xf32>
    %194 = arith.mulf %183, %156 : vector<8x128xf32>
    %195 = arith.addf %193, %194 : vector<8x128xf32>
    %196 = arith.truncf %195 : vector<8x128xf32> to vector<8x128xbf16>
    %197 = arith.index_cast %c4_i32 : i32 to index
    %c0_44 = arith.constant 0 : index
    %c0_45 = arith.constant 0 : index
    %198 = vector.load %arg6[%197, %c0_44, %c0_45] : memref<8x8x128xbf16, #tpu.memory_space<vmem>>, vector<1x8x128xbf16>
    %199 = vector.shape_cast %198 : vector<1x8x128xbf16> to vector<8x128xbf16>
    %200 = vector.shape_cast %196 : vector<8x128xbf16> to vector<1x8x128xbf16>
    tpu.vector_store %arg6[%197, %c0_44, %c0_45], %200 {strides = array<i32>} : memref<8x8x128xbf16, #tpu.memory_space<vmem>>, vector<1x8x128xbf16>,
    %c5_i32 = arith.constant 5 : i32
    %201 = arith.index_cast %c5_i32 : i32 to index
    %c0_46 = arith.constant 0 : index
    %c0_47 = arith.constant 0 : index
    %202 = vector.load %arg2[%201, %c0_46, %c0_47] : memref<8x8x384xbf16, #tpu.memory_space<vmem>>, vector<1x8x384xbf16>
    %203 = vector.shape_cast %202 : vector<1x8x384xbf16> to vector<8x384xbf16>
    %204 = arith.extf %203 : vector<8x384xbf16> to vector<8x384xf32>
    %205 = arith.truncf %195 : vector<8x128xf32> to vector<8x128xbf16>
    %cst_48 = arith.constant dense<0.000000e+00> : vector<8x384xf32>
    %206 = tpu.matmul %205, %3, %cst_48 {dimension_numbers = #tpu.dot_dimension_numbers<[1], [0], [0], [1], [0, 0, 1, 1], [], []>} : vector<8x128xbf16>, vector<128x384xbf16>, vector<8x384xf32> -> vector<8x384xf32>
    %207 = vector.extract_strided_slice %204 {offsets = [0, 0], sizes = [8, 128], strides = [1, 1]} : vector<8x384xf32> to vector<8x128xf32>
    %208 = vector.extract_strided_slice %206 {offsets = [0, 0], sizes = [8, 128], strides = [1, 1]} : vector<8x384xf32> to vector<8x128xf32>
    %209 = arith.addf %207, %208 : vector<8x128xf32>
    %210 = arith.negf %209 : vector<8x128xf32>
    %211 = math.exp %210 : vector<8x128xf32>
    %cst_49 = arith.constant 1.000000e+00 : f32
    %212 = vector.broadcast %cst_49 : f32 to vector<8x128xf32>
    %213 = arith.addf %212, %211 : vector<8x128xf32>
    %214 = arith.divf %212, %213 : vector<8x128xf32>
    %215 = vector.extract_strided_slice %204 {offsets = [0, 128], sizes = [8, 128], strides = [1, 1]} : vector<8x384xf32> to vector<8x128xf32>
    %216 = vector.extract_strided_slice %206 {offsets = [0, 128], sizes = [8, 128], strides = [1, 1]} : vector<8x384xf32> to vector<8x128xf32>
    %217 = arith.addf %215, %216 : vector<8x128xf32>
    %218 = arith.negf %217 : vector<8x128xf32>
    %219 = math.exp %218 : vector<8x128xf32>
    %cst_50 = arith.constant 1.000000e+00 : f32
    %220 = vector.broadcast %cst_50 : f32 to vector<8x128xf32>
    %221 = arith.addf %220, %219 : vector<8x128xf32>
    %222 = arith.divf %220, %221 : vector<8x128xf32>
    %223 = vector.extract_strided_slice %204 {offsets = [0, 256], sizes = [8, 128], strides = [1, 1]} : vector<8x384xf32> to vector<8x128xf32>
    %224 = vector.extract_strided_slice %206 {offsets = [0, 256], sizes = [8, 128], strides = [1, 1]} : vector<8x384xf32> to vector<8x128xf32>
    %225 = vector.broadcast %4 : vector<1x128xf32> to vector<8x128xf32>
    %226 = arith.addf %224, %225 : vector<8x128xf32>
    %227 = arith.mulf %214, %226 : vector<8x128xf32>
    %228 = arith.addf %223, %227 : vector<8x128xf32>
    %229 = math.tanh %228 : vector<8x128xf32>
    %cst_51 = arith.constant 1.000000e+00 : f32
    %230 = vector.broadcast %cst_51 : f32 to vector<8x128xf32>
    %231 = arith.subf %230, %222 : vector<8x128xf32>
    %232 = arith.mulf %231, %229 : vector<8x128xf32>
    %233 = arith.mulf %222, %195 : vector<8x128xf32>
    %234 = arith.addf %232, %233 : vector<8x128xf32>
    %235 = arith.truncf %234 : vector<8x128xf32> to vector<8x128xbf16>
    %236 = arith.index_cast %c5_i32 : i32 to index
    %c0_52 = arith.constant 0 : index
    %c0_53 = arith.constant 0 : index
    %237 = vector.load %arg6[%236, %c0_52, %c0_53] : memref<8x8x128xbf16, #tpu.memory_space<vmem>>, vector<1x8x128xbf16>
    %238 = vector.shape_cast %237 : vector<1x8x128xbf16> to vector<8x128xbf16>
    %239 = vector.shape_cast %235 : vector<8x128xbf16> to vector<1x8x128xbf16>
    tpu.vector_store %arg6[%236, %c0_52, %c0_53], %239 {strides = array<i32>} : memref<8x8x128xbf16, #tpu.memory_space<vmem>>, vector<1x8x128xbf16>,
    %c6_i32 = arith.constant 6 : i32
    %240 = arith.index_cast %c6_i32 : i32 to index
    %c0_54 = arith.constant 0 : index
    %c0_55 = arith.constant 0 : index
    %241 = vector.load %arg2[%240, %c0_54, %c0_55] : memref<8x8x384xbf16, #tpu.memory_space<vmem>>, vector<1x8x384xbf16>
    %242 = vector.shape_cast %241 : vector<1x8x384xbf16> to vector<8x384xbf16>
    %243 = arith.extf %242 : vector<8x384xbf16> to vector<8x384xf32>
    %244 = arith.truncf %234 : vector<8x128xf32> to vector<8x128xbf16>
    %cst_56 = arith.constant dense<0.000000e+00> : vector<8x384xf32>
    %245 = tpu.matmul %244, %3, %cst_56 {dimension_numbers = #tpu.dot_dimension_numbers<[1], [0], [0], [1], [0, 0, 1, 1], [], []>} : vector<8x128xbf16>, vector<128x384xbf16>, vector<8x384xf32> -> vector<8x384xf32>
    %246 = vector.extract_strided_slice %243 {offsets = [0, 0], sizes = [8, 128], strides = [1, 1]} : vector<8x384xf32> to vector<8x128xf32>
    %247 = vector.extract_strided_slice %245 {offsets = [0, 0], sizes = [8, 128], strides = [1, 1]} : vector<8x384xf32> to vector<8x128xf32>
    %248 = arith.addf %246, %247 : vector<8x128xf32>
    %249 = arith.negf %248 : vector<8x128xf32>
    %250 = math.exp %249 : vector<8x128xf32>
    %cst_57 = arith.constant 1.000000e+00 : f32
    %251 = vector.broadcast %cst_57 : f32 to vector<8x128xf32>
    %252 = arith.addf %251, %250 : vector<8x128xf32>
    %253 = arith.divf %251, %252 : vector<8x128xf32>
    %254 = vector.extract_strided_slice %243 {offsets = [0, 128], sizes = [8, 128], strides = [1, 1]} : vector<8x384xf32> to vector<8x128xf32>
    %255 = vector.extract_strided_slice %245 {offsets = [0, 128], sizes = [8, 128], strides = [1, 1]} : vector<8x384xf32> to vector<8x128xf32>
    %256 = arith.addf %254, %255 : vector<8x128xf32>
    %257 = arith.negf %256 : vector<8x128xf32>
    %258 = math.exp %257 : vector<8x128xf32>
    %cst_58 = arith.constant 1.000000e+00 : f32
    %259 = vector.broadcast %cst_58 : f32 to vector<8x128xf32>
    %260 = arith.addf %259, %258 : vector<8x128xf32>
    %261 = arith.divf %259, %260 : vector<8x128xf32>
    %262 = vector.extract_strided_slice %243 {offsets = [0, 256], sizes = [8, 128], strides = [1, 1]} : vector<8x384xf32> to vector<8x128xf32>
    %263 = vector.extract_strided_slice %245 {offsets = [0, 256], sizes = [8, 128], strides = [1, 1]} : vector<8x384xf32> to vector<8x128xf32>
    %264 = vector.broadcast %4 : vector<1x128xf32> to vector<8x128xf32>
    %265 = arith.addf %263, %264 : vector<8x128xf32>
    %266 = arith.mulf %253, %265 : vector<8x128xf32>
    %267 = arith.addf %262, %266 : vector<8x128xf32>
    %268 = math.tanh %267 : vector<8x128xf32>
    %cst_59 = arith.constant 1.000000e+00 : f32
    %269 = vector.broadcast %cst_59 : f32 to vector<8x128xf32>
    %270 = arith.subf %269, %261 : vector<8x128xf32>
    %271 = arith.mulf %270, %268 : vector<8x128xf32>
    %272 = arith.mulf %261, %234 : vector<8x128xf32>
    %273 = arith.addf %271, %272 : vector<8x128xf32>
    %274 = arith.truncf %273 : vector<8x128xf32> to vector<8x128xbf16>
    %275 = arith.index_cast %c6_i32 : i32 to index
    %c0_60 = arith.constant 0 : index
    %c0_61 = arith.constant 0 : index
    %276 = vector.load %arg6[%275, %c0_60, %c0_61] : memref<8x8x128xbf16, #tpu.memory_space<vmem>>, vector<1x8x128xbf16>
    %277 = vector.shape_cast %276 : vector<1x8x128xbf16> to vector<8x128xbf16>
    %278 = vector.shape_cast %274 : vector<8x128xbf16> to vector<1x8x128xbf16>
    tpu.vector_store %arg6[%275, %c0_60, %c0_61], %278 {strides = array<i32>} : memref<8x8x128xbf16, #tpu.memory_space<vmem>>, vector<1x8x128xbf16>,
    %c7_i32 = arith.constant 7 : i32
    %279 = arith.index_cast %c7_i32 : i32 to index
    %c0_62 = arith.constant 0 : index
    %c0_63 = arith.constant 0 : index
    %280 = vector.load %arg2[%279, %c0_62, %c0_63] : memref<8x8x384xbf16, #tpu.memory_space<vmem>>, vector<1x8x384xbf16>
    %281 = vector.shape_cast %280 : vector<1x8x384xbf16> to vector<8x384xbf16>
    %282 = arith.extf %281 : vector<8x384xbf16> to vector<8x384xf32>
    %283 = arith.truncf %273 : vector<8x128xf32> to vector<8x128xbf16>
    %cst_64 = arith.constant dense<0.000000e+00> : vector<8x384xf32>
    %284 = tpu.matmul %283, %3, %cst_64 {dimension_numbers = #tpu.dot_dimension_numbers<[1], [0], [0], [1], [0, 0, 1, 1], [], []>} : vector<8x128xbf16>, vector<128x384xbf16>, vector<8x384xf32> -> vector<8x384xf32>
    %285 = vector.extract_strided_slice %282 {offsets = [0, 0], sizes = [8, 128], strides = [1, 1]} : vector<8x384xf32> to vector<8x128xf32>
    %286 = vector.extract_strided_slice %284 {offsets = [0, 0], sizes = [8, 128], strides = [1, 1]} : vector<8x384xf32> to vector<8x128xf32>
    %287 = arith.addf %285, %286 : vector<8x128xf32>
    %288 = arith.negf %287 : vector<8x128xf32>
    %289 = math.exp %288 : vector<8x128xf32>
    %cst_65 = arith.constant 1.000000e+00 : f32
    %290 = vector.broadcast %cst_65 : f32 to vector<8x128xf32>
    %291 = arith.addf %290, %289 : vector<8x128xf32>
    %292 = arith.divf %290, %291 : vector<8x128xf32>
    %293 = vector.extract_strided_slice %282 {offsets = [0, 128], sizes = [8, 128], strides = [1, 1]} : vector<8x384xf32> to vector<8x128xf32>
    %294 = vector.extract_strided_slice %284 {offsets = [0, 128], sizes = [8, 128], strides = [1, 1]} : vector<8x384xf32> to vector<8x128xf32>
    %295 = arith.addf %293, %294 : vector<8x128xf32>
    %296 = arith.negf %295 : vector<8x128xf32>
    %297 = math.exp %296 : vector<8x128xf32>
    %cst_66 = arith.constant 1.000000e+00 : f32
    %298 = vector.broadcast %cst_66 : f32 to vector<8x128xf32>
    %299 = arith.addf %298, %297 : vector<8x128xf32>
    %300 = arith.divf %298, %299 : vector<8x128xf32>
    %301 = vector.extract_strided_slice %282 {offsets = [0, 256], sizes = [8, 128], strides = [1, 1]} : vector<8x384xf32> to vector<8x128xf32>
    %302 = vector.extract_strided_slice %284 {offsets = [0, 256], sizes = [8, 128], strides = [1, 1]} : vector<8x384xf32> to vector<8x128xf32>
    %303 = vector.broadcast %4 : vector<1x128xf32> to vector<8x128xf32>
    %304 = arith.addf %302, %303 : vector<8x128xf32>
    %305 = arith.mulf %292, %304 : vector<8x128xf32>
    %306 = arith.addf %301, %305 : vector<8x128xf32>
    %307 = math.tanh %306 : vector<8x128xf32>
    %cst_67 = arith.constant 1.000000e+00 : f32
    %308 = vector.broadcast %cst_67 : f32 to vector<8x128xf32>
    %309 = arith.subf %308, %300 : vector<8x128xf32>
    %310 = arith.mulf %309, %307 : vector<8x128xf32>
    %311 = arith.mulf %300, %273 : vector<8x128xf32>
    %312 = arith.addf %310, %311 : vector<8x128xf32>
    %313 = arith.truncf %312 : vector<8x128xf32> to vector<8x128xbf16>
    %314 = arith.index_cast %c7_i32 : i32 to index
    %c0_68 = arith.constant 0 : index
    %c0_69 = arith.constant 0 : index
    %315 = vector.load %arg6[%314, %c0_68, %c0_69] : memref<8x8x128xbf16, #tpu.memory_space<vmem>>, vector<1x8x128xbf16>
    %316 = vector.shape_cast %315 : vector<1x8x128xbf16> to vector<8x128xbf16>
    %317 = vector.shape_cast %313 : vector<8x128xbf16> to vector<1x8x128xbf16>
    tpu.vector_store %arg6[%314, %c0_68, %c0_69], %317 {strides = array<i32>} : memref<8x8x128xbf16, #tpu.memory_space<vmem>>, vector<1x8x128xbf16>,
    %c8_i32 = arith.constant 8 : i32
    %c0_70 = arith.constant 0 : index
    %c0_71 = arith.constant 0 : index
    %318 = vector.load %arg7[%c0_70, %c0_71] : memref<8x128xf32, #tpu.memory_space<vmem>>, vector<8x128xf32>
    tpu.vector_store %arg7[%c0_70, %c0_71], %312 {strides = array<i32>} : memref<8x128xf32, #tpu.memory_space<vmem>>, vector<8x128xf32>,
    return
  }
  func.func @transform_0(%arg0: i32, %arg1: i32) -> (i32, i32, i32) {
    %c0_i32 = arith.constant 0 : i32
    %c0_i32_0 = arith.constant 0 : i32
    return %arg1, %arg0, %c0_i32 : i32, i32, i32
  }
  func.func @transform_1(%arg0: i32, %arg1: i32) -> (i32, i32) {
    %c0_i32 = arith.constant 0 : i32
    %c0_i32_0 = arith.constant 0 : i32
    return %arg0, %c0_i32 : i32, i32
  }
  func.func @transform_2(%arg0: i32, %arg1: i32) -> (i32, i32) {
    %c0_i32 = arith.constant 0 : i32
    %c0_i32_0 = arith.constant 0 : i32
    %c0_i32_1 = arith.constant 0 : i32
    return %c0_i32, %c0_i32_0 : i32, i32
  }
  func.func @transform_3(%arg0: i32, %arg1: i32) -> (i32, i32) {
    %c0_i32 = arith.constant 0 : i32
    %c0_i32_0 = arith.constant 0 : i32
    %c0_i32_1 = arith.constant 0 : i32
    return %c0_i32, %c0_i32_0 : i32, i32
  }
  func.func @transform_4(%arg0: i32, %arg1: i32) -> (i32, i32, i32) {
    %c0_i32 = arith.constant 0 : i32
    %c0_i32_0 = arith.constant 0 : i32
    return %arg1, %arg0, %c0_i32 : i32, i32, i32
  }
}

</mosaic_0001>

<bundles_post_ra>
// kernel: seq2seq_forward.9
= control target key start
LH: loop header
LB: loop body
LE: loop exit
PB: predicated region body
PF: predicated region fallthrough
CT: control target
= control target key end

     0   :  { %v416_v1 = vmov 0   ;;  %v305_v21 = vlaneseq  ;;  %s548_s1 = inlined_call_operand.vmem [shape: bf16[128,256], index: 1, kind: input, shape index: {}]   ;;  %s549_s0 = inlined_call_operand.vmem [shape: bf16[64,128], index: 0, kind: input, shape index: {}]   ;;  %s550_s2 = inlined_call_operand.vmem [shape: f32[1,256], index: 2, kind: input, shape index: {}]   ;;  %s551_s3 = inlined_call_operand.vmem [shape: f32[64,256], index: 3, kind: output, shape index: {}]  }
   0x1   :  { %v388_v0 = vld [vmem:[%s548_s1 + $0x74] ss:$8 sps:$4 sm:$0xff]   ;;  %211 = vmatprep.mubr.bf16.mxu0 %v416_v1  ;;  %231 = vmatprep.mubr.bf16.mxu1 %v416_v1  ;;  %v390_v2 = vld [vmem:[%s548_s1 + $0x70] ss:$8 sps:$4 sm:$0xff]   ;;  %v391_v3 = vld [vmem:[%s548_s1 + $0x64] ss:$8 sps:$4 sm:$0xff]  }
   0x2   :  { %179 = vmatprep.subr.bf16.mxu0 %v388_v0  ;;  %371 = vmatprep.subr.bf16.mxu1 %v388_v0  ;;  %v393_v4 = vld [vmem:[%s548_s1 + $0x60] ss:$8 sps:$4 sm:$0xff]   ;;  %v394_v5 = vld [vmem:[%s548_s1 + $0x54] ss:$8 sps:$4 sm:$0xff]   ;;  %v396_v6 = vld [vmem:[%s548_s1 + $0x50] ss:$8 sps:$4 sm:$0xff]  }
   0x3   :  { %180 = vmatpush1.bf16.msra.mxu0 %v390_v2  ;;  %379 = vmatpush1.bf16.msra.mxu1 %v390_v2  ;;  %v397_v7 = vld [vmem:[%s548_s1 + $0x44] ss:$8 sps:$4 sm:$0xff]   ;;  %v399_v8 = vld [vmem:[%s548_s1 + $0x40] ss:$8 sps:$4 sm:$0xff]   ;;  %v400_v9 = vld [vmem:[%s548_s1 + $0x34] ss:$8 sps:$4 sm:$0xff]  }
   0x4   :  { %181 = vmatprep.subr.bf16.mxu0 %v391_v3  ;;  %372 = vmatprep.subr.bf16.mxu1 %v391_v3  ;;  %v402_v10 = vld [vmem:[%s548_s1 + $0x30] ss:$8 sps:$4 sm:$0xff]   ;;  %v403_v11 = vld [vmem:[%s548_s1 + $0x24] ss:$8 sps:$4 sm:$0xff]   ;;  %v405_v12 = vld [vmem:[%s548_s1 + $0x20] ss:$8 sps:$4 sm:$0xff]  }
   0x5   :  { %v406_v13 = vld [vmem:[%s548_s1 + $0x14] ss:$8 sps:$4 sm:$0xff]   ;;  %v408_v14 = vld [vmem:[%s548_s1 + $0x10] ss:$8 sps:$4 sm:$0xff]   ;;  %v409_v15 = vld [vmem:[%s548_s1 + $0x4] ss:$8 sps:$4 sm:$0xff]  }
   0x6   :  { %v411_v16 = vld [vmem:[%s548_s1] ss:$8 sps:$4 sm:$0xff]   ;;  %v413_v18 = vld [vmem:[%s549_s0 + $0x10] sm:$0xff]   ;;  %v415_v20 = vld [vmem:[%s549_s0 + $0x18] sm:$0xff]   ;;  %v306_v22 = vshrl.u32 %v305_v21, 7 }
   0x7   :  { %182 = vmatpush1.bf16.msra.mxu0 %v393_v4  ;;  %380 = vmatpush1.bf16.msra.mxu1 %v393_v4  ;;  %v412_v17 = vld [vmem:[%s549_s0] sm:$0xff]   ;;  %v414_v19 = vld [vmem:[%s549_s0 + $0x8] sm:$0xff]  }
   0x8   :  { %183 = vmatprep.subr.bf16.mxu0 %v394_v5  ;;  %373 = vmatprep.subr.bf16.mxu1 %v394_v5  ;;  %v307_v23 = vsub.s32 0, %v306_v22  ;;  %v303_v24 = vld [vmem:[%s550_s2] sm:$0x3]  ;;  %v311_v25 = vsub.s32 1, %v306_v22 }
   0xa   :  { %v308_v26 = vrot.slane %v303_v24, %v307_v23  ;;  %v312_v27 = vrot.slane %v303_v24, %v311_v25 }
   0xb   :  { %184 = vmatpush1.bf16.msra.mxu0 %v396_v6  ;;  %381 = vmatpush1.bf16.msra.mxu1 %v396_v6 }
   0xc   :  { %185 = vmatprep.subr.bf16.mxu0 %v397_v7  ;;  %374 = vmatprep.subr.bf16.mxu1 %v397_v7 }
   0xf   :  { %186 = vmatpush1.bf16.msra.mxu0 %v399_v8  ;;  %382 = vmatpush1.bf16.msra.mxu1 %v399_v8 }
  0x10   :  { %187 = vmatprep.subr.bf16.mxu0 %v400_v9  ;;  %375 = vmatprep.subr.bf16.mxu1 %v400_v9 }
  0x13   :  { %188 = vmatpush1.bf16.msra.mxu0 %v402_v10  ;;  %383 = vmatpush1.bf16.msra.mxu1 %v402_v10 }
  0x14   :  { %189 = vmatprep.subr.bf16.mxu0 %v403_v11  ;;  %376 = vmatprep.subr.bf16.mxu1 %v403_v11 }
  0x17   :  { %190 = vmatpush1.bf16.msra.mxu0 %v405_v12  ;;  %384 = vmatpush1.bf16.msra.mxu1 %v405_v12 }
  0x18   :  { %191 = vmatprep.subr.bf16.mxu0 %v406_v13  ;;  %377 = vmatprep.subr.bf16.mxu1 %v406_v13 }
  0x1b   :  { %192 = vmatpush1.bf16.msra.mxu0 %v408_v14  ;;  %385 = vmatpush1.bf16.msra.mxu1 %v408_v14 }
  0x1c   :  { %193 = vmatprep.subr.bf16.mxu0 %v409_v15  ;;  %378 = vmatprep.subr.bf16.mxu1 %v409_v15 }
  0x1f   :  { %194 = vmatpush1.bf16.msra.mxu0 %v411_v16  ;;  %386 = vmatpush1.bf16.msra.mxu1 %v411_v16 }
  0x22   :  { %212 = vmatmul.mubr.bf16.vlgmr.msra.gmra.mxu0 %v412_v17  ;;  %232 = vmatmul.mubr.bf16.vlgmr.msra.gmra.mxu1 %v413_v18 }
  0x23   :  { %221 = vmatprep.mubr.bf16.mxu0 %v416_v1  ;;  %241 = vmatprep.mubr.bf16.mxu1 %v416_v1 }
  0x2a   :  { %222 = vmatmul.mubr.bf16.gmra.mxu0 %v414_v19  ;;  %242 = vmatmul.mubr.bf16.gmra.mxu1 %v415_v20 }
  0xe2   :  { %v213_v28 = vpop.f32.mrf.mxu0  ;;  %v233_v29 = vpop.f32.mrf.mxu1 }
  0xe3   :  { %v315_v30 = vadd.f32 %v308_v26, %v213_v28  ;;  %v323_v31 = vadd.f32 %v308_v26, %v233_v29 }
  0xe4   :  { %v215_v32 = vpop.f32.mrf.mxu0  ;;  %v235_v33 = vpop.f32.mrf.mxu1 }
  0xe5   :  { %331 = vst [vmem:[%s551_s3] sm:$0xff] %v315_v30  ;;  %339 = vst [vmem:[%s551_s3 + $0x40] sm:$0xff] %v323_v31  ;;  %v316_v34 = vadd.f32 %v312_v27, %v215_v32  ;;  %v324_v35 = vadd.f32 %v312_v27, %v235_v33 }
  0xe6   :  { %v217_v36 = vpop.f32.mrf.mxu0  ;;  %v237_v37 = vpop.f32.mrf.mxu1 }
  0xe7   :  { %332 = vst [vmem:[%s551_s3 + $0x8] sm:$0xff] %v316_v34  ;;  %340 = vst [vmem:[%s551_s3 + $0x48] sm:$0xff] %v324_v35  ;;  %v317_v38 = vadd.f32 %v308_v26, %v217_v36  ;;  %v325_v39 = vadd.f32 %v308_v26, %v237_v37 }
  0xe8   :  { %v219_v40 = vpop.f32.mrf.mxu0  ;;  %v239_v41 = vpop.f32.mrf.mxu1 }
  0xe9   :  { %333 = vst [vmem:[%s551_s3 + $0x10] sm:$0xff] %v317_v38  ;;  %341 = vst [vmem:[%s551_s3 + $0x50] sm:$0xff] %v325_v39  ;;  %v318_v42 = vadd.f32 %v312_v27, %v219_v40  ;;  %v326_v43 = vadd.f32 %v312_v27, %v239_v41 }
  0xea   :  { %v223_v44 = vpop.f32.mrf.mxu0  ;;  %v243_v45 = vpop.f32.mrf.mxu1 }
  0xeb   :  { %334 = vst [vmem:[%s551_s3 + $0x18] sm:$0xff] %v318_v42  ;;  %342 = vst [vmem:[%s551_s3 + $0x58] sm:$0xff] %v326_v43  ;;  %v319_v46 = vadd.f32 %v308_v26, %v223_v44  ;;  %v327_v47 = vadd.f32 %v308_v26, %v243_v45 }
  0xec   :  { %v225_v48 = vpop.f32.mrf.mxu0  ;;  %v245_v49 = vpop.f32.mrf.mxu1 }
  0xed   :  { %335 = vst [vmem:[%s551_s3 + $0x20] sm:$0xff] %v319_v46  ;;  %343 = vst [vmem:[%s551_s3 + $0x60] sm:$0xff] %v327_v47  ;;  %v320_v50 = vadd.f32 %v312_v27, %v225_v48  ;;  %v328_v51 = vadd.f32 %v312_v27, %v245_v49 }
  0xee   :  { %v227_v52 = vpop.f32.mrf.mxu0  ;;  %v247_v53 = vpop.f32.mrf.mxu1 }
  0xef   :  { %336 = vst [vmem:[%s551_s3 + $0x28] sm:$0xff] %v320_v50  ;;  %344 = vst [vmem:[%s551_s3 + $0x68] sm:$0xff] %v328_v51  ;;  %v321_v54 = vadd.f32 %v308_v26, %v227_v52  ;;  %v329_v55 = vadd.f32 %v308_v26, %v247_v53 }
  0xf0   :  { %v229_v56 = vpop.f32.mrf.mxu0  ;;  %v249_v57 = vpop.f32.mrf.mxu1 }
  0xf1   :  { %337 = vst [vmem:[%s551_s3 + $0x30] sm:$0xff] %v321_v54  ;;  %345 = vst [vmem:[%s551_s3 + $0x70] sm:$0xff] %v329_v55  ;;  %v322_v58 = vadd.f32 %v312_v27, %v229_v56  ;;  %v330_v59 = vadd.f32 %v312_v27, %v249_v57 }
  0xf3   :  { %338 = vst [vmem:[%s551_s3 + $0x38] sm:$0xff] %v322_v58  ;;  %346 = vst [vmem:[%s551_s3 + $0x78] sm:$0xff] %v330_v59 }

// kernel: seq2seq_forward.5
= control target key start
LH: loop header
LB: loop body
LE: loop exit
PB: predicated region body
PF: predicated region fallthrough
CT: control target
= control target key end

     0   :  { %v746_v1 = vmov 0   ;;  %v474_v29 = vlaneseq  ;;  %s926_s1 = inlined_call_operand.vmem [shape: bf16[128,384], index: 1, kind: input, shape index: {}]   ;;  %s927_s0 = inlined_call_operand.vmem [shape: bf16[64,128], index: 0, kind: input, shape index: {}]   ;;  %s928_s2 = inlined_call_operand.vmem [shape: f32[1,384], index: 2, kind: input, shape index: {}]   ;;  %s929_s3 = inlined_call_operand.vmem [shape: bf16[64,384], index: 3, kind: output, shape index: {}]  }
   0x1   :  { %v710_v0 = vld [vmem:[%s926_s1 + $0xac] ss:$12 sps:$4 sm:$0xff]   ;;  %291 = vmatprep.mubr.bf16.mxu0 %v746_v1  ;;  %v712_v2 = vld [vmem:[%s926_s1 + $0xa8] ss:$12 sps:$4 sm:$0xff]   ;;  %v715_v4 = vld [vmem:[%s926_s1 + $0x90] ss:$12 sps:$4 sm:$0xff]  }
   0x2   :  { %259 = vmatprep.subr.bf16.mxu0 %v710_v0  ;;  %v713_v3 = vld [vmem:[%s926_s1 + $0x94] ss:$12 sps:$4 sm:$0xff]   ;;  %v716_v5 = vld [vmem:[%s926_s1 + $0x7c] ss:$12 sps:$4 sm:$0xff]   ;;  %v718_v7 = vld [vmem:[%s926_s1 + $0x78] ss:$12 sps:$4 sm:$0xff]  }
   0x3   :  { %260 = vmatpush1.bf16.msra.mxu0 %v712_v2  ;;  %v719_v6 = vld [vmem:[%s926_s1 + $0xb0] ss:$12 sps:$4 sm:$0xff]   ;;  %v723_v8 = vld [vmem:[%s926_s1 + $0x98] ss:$12 sps:$4 sm:$0xff]   ;;  %v727_v10 = vld [vmem:[%s926_s1 + $0x80] ss:$12 sps:$4 sm:$0xff]  }
   0x4   :  { %261 = vmatprep.subr.bf16.mxu0 %v713_v3  ;;  %685 = vmatprep.subr.bf16.mxu1 %v719_v6  ;;  %v720_v9 = vld [vmem:[%s926_s1 + $0x64] ss:$12 sps:$4 sm:$0xff]   ;;  %v722_v11 = vld [vmem:[%s926_s1 + $0x60] ss:$12 sps:$4 sm:$0xff]   ;;  %v731_v13 = vld [vmem:[%s926_s1 + $0x68] ss:$12 sps:$4 sm:$0xff]  }
   0x5   :  { %686 = vmatpush3.bf16.msra.mxu1 %v719_v6  ;;  %v724_v12 = vld [vmem:[%s926_s1 + $0x4c] ss:$12 sps:$4 sm:$0xff]   ;;  %v726_v14 = vld [vmem:[%s926_s1 + $0x48] ss:$12 sps:$4 sm:$0xff]   ;;  %v735_v16 = vld [vmem:[%s926_s1 + $0x50] ss:$12 sps:$4 sm:$0xff]  }
   0x6   :  { %687 = vmatprep.subr.bf16.mxu1 %v723_v8  ;;  %v728_v15 = vld [vmem:[%s926_s1 + $0x34] ss:$12 sps:$4 sm:$0xff]   ;;  %v730_v17 = vld [vmem:[%s926_s1 + $0x30] ss:$12 sps:$4 sm:$0xff]   ;;  %v739_v20 = vld [vmem:[%s926_s1 + $0x38] ss:$12 sps:$4 sm:$0xff]  }
   0x7   :  { %262 = vmatpush1.bf16.msra.mxu0 %v715_v4  ;;  %v732_v18 = vld [vmem:[%s926_s1 + $0x1c] ss:$12 sps:$4 sm:$0xff]   ;;  %v740_v19 = vld [vmem:[%s927_s0] sm:$0xff]   ;;  %v744_v26 = vld [vmem:[%s927_s0 + $0x10] sm:$0xff]   ;;  %v475_v30 = vshrl.u32 %v474_v29, 7 }
   0x8   :  { %263 = vmatprep.subr.bf16.mxu0 %v716_v5  ;;  %701 = vmatprep.mubr.bf16.mxu1 %v740_v19  ;;  %v734_v21 = vld [vmem:[%s926_s1 + $0x18] ss:$12 sps:$4 sm:$0xff]   ;;  %v741_v23 = vld [vmem:[%s926_s1 + $0x20] ss:$12 sps:$4 sm:$0xff]   ;;  %v742_v25 = vld [vmem:[%s926_s1 + $0x8] ss:$12 sps:$4 sm:$0xff]  }
   0x9   :  { %688 = vmatpush3.bf16.msra.mxu1 %v723_v8  ;;  %v736_v22 = vld [vmem:[%s926_s1 + $0x4] ss:$12 sps:$4 sm:$0xff]   ;;  %v738_v24 = vld [vmem:[%s926_s1] ss:$12 sps:$4 sm:$0xff]   ;;  %v745_v28 = vld [vmem:[%s927_s0 + $0x18] sm:$0xff]   ;;  %v476_v31 = vsub.s32 0, %v475_v30 }
   0xa   :  { %689 = vmatprep.subr.bf16.mxu1 %v727_v10  ;;  %v743_v27 = vld [vmem:[%s927_s0 + $0x8] sm:$0xff]   ;;  %v480_v32 = vsub.s32 1, %v475_v30  ;;  %v472_v33 = vld [vmem:[%s928_s2] sm:$0x7]  ;;  %v484_v34 = vsub.s32 2, %v475_v30 }
   0xb   :  { %264 = vmatpush1.bf16.msra.mxu0 %v718_v7  ;;  %v858_v35 = vrot.slane %v472_v33, %v476_v31 }
   0xc   :  { %265 = vmatprep.subr.bf16.mxu0 %v720_v9  ;;  %v860_v36 = vrot.slane %v472_v33, %v480_v32  ;;  %v485_v38 = vrot.slane %v472_v33, %v484_v34 }
   0xd   :  { %690 = vmatpush3.bf16.msra.mxu1 %v727_v10 }
   0xe   :  { %691 = vmatprep.subr.bf16.mxu1 %v731_v13 }
   0xf   :  { %266 = vmatpush1.bf16.msra.mxu0 %v722_v11 }
  0x10   :  { %267 = vmatprep.subr.bf16.mxu0 %v724_v12 }
  0x11   :  { %692 = vmatpush3.bf16.msra.mxu1 %v731_v13 }
  0x12   :  { %693 = vmatprep.subr.bf16.mxu1 %v735_v16 }
  0x13   :  { %268 = vmatpush1.bf16.msra.mxu0 %v726_v14 }
  0x14   :  { %269 = vmatprep.subr.bf16.mxu0 %v728_v15 }
  0x15   :  { %694 = vmatpush3.bf16.msra.mxu1 %v735_v16 }
  0x16   :  { %695 = vmatprep.subr.bf16.mxu1 %v739_v20 }
  0x17   :  { %270 = vmatpush1.bf16.msra.mxu0 %v730_v17 }
  0x18   :  { %271 = vmatprep.subr.bf16.mxu0 %v732_v18 }
  0x19   :  { %696 = vmatpush3.bf16.msra.mxu1 %v739_v20 }
  0x1a   :  { %697 = vmatprep.subr.bf16.mxu1 %v741_v23 }
  0x1b   :  { %272 = vmatpush1.bf16.msra.mxu0 %v734_v21 }
  0x1c   :  { %273 = vmatprep.subr.bf16.mxu0 %v736_v22 }
  0x1d   :  { %698 = vmatpush3.bf16.msra.mxu1 %v741_v23 }
  0x1e   :  { %699 = vmatprep.subr.bf16.mxu1 %v742_v25 }
  0x1f   :  { %274 = vmatpush1.bf16.msra.mxu0 %v738_v24 }
  0x21   :  { %700 = vmatpush3.bf16.msra.mxu1 %v742_v25 }
  0x22   :  { %292 = vmatmul.mubr.bf16.vlgmr.msra.gmra.mxu0 %v740_v19 }
  0x23   :  { %301 = vmatprep.mubr.bf16.mxu0 %v746_v1 }
  0x24   :  { %702 = vmatmul.mubr.bf16.vlgmr.msra.gmra.mxu1 %v743_v27 }
  0x25   :  { %705 = vmatprep.mubr.bf16.mxu1 %v744_v26 }
  0x2a   :  { %302 = vmatmul.mubr.bf16.gmra.mxu0 %v743_v27 }
  0x2b   :  { %311 = vmatprep.mubr.bf16.mxu0 %v746_v1 }
  0x2c   :  { %706 = vmatmul.mubr.bf16.gmra.mxu1 %v745_v28 }
  0x32   :  { %312 = vmatmul.mubr.bf16.gmra.mxu0 %v744_v26 }
  0x33   :  { %321 = vmatprep.mubr.bf16.mxu0 %v746_v1 }
  0x3a   :  { %322 = vmatmul.mubr.bf16.gmra.mxu0 %v745_v28 }
  0xe2   :  { %v293_v37 = vpop.f32.mrf.mxu0 }
  0xe3   :  { %v489_v40 = vadd.f32 %v858_v35, %v293_v37 }
  0xe4   :  { %v295_v39 = vpop.f32.mrf.mxu0  ;;  %v703_v43 = vpop.f32.mrf.mxu1 }
  0xe5   :  { %v490_v41 = vadd.f32 %v860_v36, %v295_v39  ;;  %v497_v45 = vadd.f32 %v703_v43, %v485_v38 }
  0xe6   :  { %v297_v42 = vpop.f32.mrf.mxu0  ;;  %v366_v47 = vpop.f32.mrf.mxu1 }
  0xe7   :  { %v657_v44 = vpack.c.bf16 %v490_v41, %v489_v40  ;;  %v492_v48 = vadd.f32 %v858_v35, %v297_v42  ;;  %v662_v50 = vpack.c.bf16 %v497_v45, %v497_v45  ;;  %v491_v51 = vadd.f32 %v485_v38, %v366_v47 }
  0xe8   :  { %v299_v46 = vpop.f32.mrf.mxu0  ;;  %v704_v53 = vpop.f32.mrf.mxu1 }
  0xe9   :  { %593 = vst [vmem:[%s929_s3] sm:$0xff] %v657_v44  ;;  %v493_v49 = vadd.f32 %v860_v36, %v299_v46  ;;  %598 = vst [vmem:[%s929_s3 + $0x20] sm:$0xf] %v662_v50  ;;  %v658_v55 = vpack.c.bf16 %v491_v51, %v491_v51  ;;  %v500_v56 = vadd.f32 %v704_v53, %v485_v38 }
  0xea   :  { %v303_v52 = vpop.f32.mrf.mxu0  ;;  %v369_v58 = vpop.f32.mrf.mxu1 }
  0xeb   :  { %v659_v54 = vpack.c.bf16 %v493_v49, %v492_v48  ;;  %v495_v59 = vadd.f32 %v858_v35, %v303_v52  ;;  %594 = vst [vmem:[%s929_s3 + $0x8] sm:$0xf] %v658_v55  ;;  %v664_v61 = vpack.c.bf16 %v500_v56, %v500_v56  ;;  %v494_v62 = vadd.f32 %v485_v38, %v369_v58 }
  0xec   :  { %v305_v57 = vpop.f32.mrf.mxu0  ;;  %v707_v0 = vpop.f32.mrf.mxu1 }
  0xed   :  { %595 = vst [vmem:[%s929_s3 + $0xc] sm:$0xff] %v659_v54  ;;  %v496_v60 = vadd.f32 %v860_v36, %v305_v57  ;;  %600 = vst [vmem:[%s929_s3 + $0x2c] sm:$0xf] %v664_v61  ;;  %v660_v2 = vpack.c.bf16 %v494_v62, %v494_v62  ;;  %v509_v3 = vadd.f32 %v707_v0, %v485_v38 }
  0xee   :  { %v307_v63 = vpop.f32.mrf.mxu0  ;;  %v382_v5 = vpop.f32.mrf.mxu1 }
  0xef   :  { %v661_v1 = vpack.c.bf16 %v496_v60, %v495_v59  ;;  %v498_v6 = vadd.f32 %v858_v35, %v307_v63  ;;  %596 = vst [vmem:[%s929_s3 + $0x14] sm:$0xf] %v660_v2  ;;  %v670_v8 = vpack.c.bf16 %v509_v3, %v509_v3  ;;  %v503_v9 = vadd.f32 %v485_v38, %v382_v5 }
  0xf0   :  { %v309_v4 = vpop.f32.mrf.mxu0  ;;  %v708_v11 = vpop.f32.mrf.mxu1 }
  0xf1   :  { %597 = vst [vmem:[%s929_s3 + $0x18] sm:$0xff] %v661_v1  ;;  %v499_v7 = vadd.f32 %v860_v36, %v309_v4  ;;  %606 = vst [vmem:[%s929_s3 + $0x50] sm:$0xf] %v670_v8  ;;  %v666_v13 = vpack.c.bf16 %v503_v9, %v503_v9  ;;  %v512_v14 = vadd.f32 %v708_v11, %v485_v38 }
  0xf2   :  { %v313_v10 = vpop.f32.mrf.mxu0  ;;  %v385_v16 = vpop.f32.mrf.mxu1 }
  0xf3   :  { %v663_v12 = vpack.c.bf16 %v499_v7, %v498_v6  ;;  %v501_v17 = vadd.f32 %v858_v35, %v313_v10  ;;  %602 = vst [vmem:[%s929_s3 + $0x38] sm:$0xf] %v666_v13  ;;  %v672_v19 = vpack.c.bf16 %v512_v14, %v512_v14  ;;  %v506_v20 = vadd.f32 %v485_v38, %v385_v16 }
  0xf4   :  { %v315_v15 = vpop.f32.mrf.mxu0 }
  0xf5   :  { %599 = vst [vmem:[%s929_s3 + $0x24] sm:$0xff] %v663_v12  ;;  %v502_v18 = vadd.f32 %v860_v36, %v315_v15  ;;  %608 = vst [vmem:[%s929_s3 + $0x5c] sm:$0xf] %v672_v19  ;;  %v668_v23 = vpack.c.bf16 %v506_v20, %v506_v20 }
  0xf6   :  { %v317_v21 = vpop.f32.mrf.mxu0 }
  0xf7   :  { %v665_v22 = vpack.c.bf16 %v502_v18, %v501_v17  ;;  %v504_v25 = vadd.f32 %v858_v35, %v317_v21  ;;  %604 = vst [vmem:[%s929_s3 + $0x44] sm:$0xf] %v668_v23 }
  0xf8   :  { %v319_v24 = vpop.f32.mrf.mxu0 }
  0xf9   :  { %601 = vst [vmem:[%s929_s3 + $0x30] sm:$0xff] %v665_v22  ;;  %v505_v26 = vadd.f32 %v860_v36, %v319_v24 }
  0xfa   :  { %v323_v27 = vpop.f32.mrf.mxu0 }
  0xfb   :  { %v667_v28 = vpack.c.bf16 %v505_v26, %v504_v25  ;;  %v507_v30 = vadd.f32 %v858_v35, %v323_v27 }
  0xfc   :  { %v325_v29 = vpop.f32.mrf.mxu0 }
  0xfd   :  { %603 = vst [vmem:[%s929_s3 + $0x3c] sm:$0xff] %v667_v28  ;;  %v508_v31 = vadd.f32 %v860_v36, %v325_v29 }
  0xfe   :  { %v327_v32 = vpop.f32.mrf.mxu0 }
  0xff   :  { %v669_v33 = vpack.c.bf16 %v508_v31, %v507_v30  ;;  %v510_v37 = vadd.f32 %v858_v35, %v327_v32 }
 0x100   :  { %v329_v34 = vpop.f32.mrf.mxu0 }
 0x101   :  { %605 = vst [vmem:[%s929_s3 + $0x48] sm:$0xff] %v669_v33  ;;  %v511_v38 = vadd.f32 %v860_v36, %v329_v34 }
 0x103   :  { %v671_v39 = vpack.c.bf16 %v511_v38, %v510_v37 }
 0x105   :  { %607 = vst [vmem:[%s929_s3 + $0x54] sm:$0xff] %v671_v39 }

// kernel: seq2seq_forward.7
= control target key start
LH: loop header
LB: loop body
LE: loop exit
PB: predicated region body
PF: predicated region fallthrough
CT: control target
= control target key end

     0   :  { %v1487_v1 = vmov 0.0   ;;  %v1488_v2 = vmov 0   ;;  %vm1489_vm0 = vmmov 0   ;;  %v1490_v25 = vmov 0.0|0.0   ;;  %s2021_s1 = inlined_call_operand.vmem [shape: bf16[128,384], index: 1, kind: input, shape index: {}]   ;;  %s2022_s0 = inlined_call_operand.vmem [shape: bf16[8,8,384], index: 0, kind: input, shape index: {}]   ;;  %s2023_s2 = inlined_call_operand.vmem [shape: f32[1,128], index: 2, kind: input, shape index: {}]   ;;  %s2024_s3 = inlined_call_operand.vmem [shape: f32[8,128], index: 3, kind: output, shape index: {}]  }
   0x1   :  { %v1514_v0 = vld [vmem:[%s2021_s1 + $0xac] ss:$12 sps:$4 sm:$0xff]   ;;  %1203 = vmatprep.subr.bf16.mxu1 %v1487_v1  ;;  %220 = vmatprep.mubr.bf16.mxu0 %v1488_v2  ;;  %v1521_v3 = vld [vmem:[%s2021_s1 + $0xa8] ss:$12 sps:$4 sm:$0xff]   ;;  %v1535_v5 = vld [vmem:[%s2021_s1 + $0x90] ss:$12 sps:$4 sm:$0xff]  }
   0x2   :  { %1219 = vmatprep.mubr.msk.bf16.mxu1 %vm1489_vm0, %v1487_v1  ;;  %188 = vmatprep.subr.bf16.mxu0 %v1514_v0  ;;  %v1529_v4 = vld [vmem:[%s2021_s1 + $0x94] ss:$12 sps:$4 sm:$0xff]   ;;  %v1541_v6 = vld [vmem:[%s2021_s1 + $0x7c] ss:$12 sps:$4 sm:$0xff]   ;;  %v1547_v7 = vld [vmem:[%s2021_s1 + $0x78] ss:$12 sps:$4 sm:$0xff]  }
   0x3   :  { %189 = vmatpush1.bf16.msra.mxu0 %v1521_v3  ;;  %v1553_v8 = vld [vmem:[%s2021_s1 + $0x64] ss:$12 sps:$4 sm:$0xff]   ;;  %v1564_v10 = vld [vmem:[%s2021_s1 + $0x60] ss:$12 sps:$4 sm:$0xff]   ;;  %v1582_v13 = vld [vmem:[%s2021_s1 + $0x48] ss:$12 sps:$4 sm:$0xff]  }
   0x4   :  { %190 = vmatprep.subr.bf16.mxu0 %v1529_v4  ;;  %v1558_v9 = vld [vmem:[%s2021_s1 + $0xb0] ss:$12 sps:$4 sm:$0xff]   ;;  %v1569_v11 = vld [vmem:[%s2021_s1 + $0x4c] ss:$12 sps:$4 sm:$0xff]   ;;  %v1588_v14 = vld [vmem:[%s2021_s1 + $0x34] ss:$12 sps:$4 sm:$0xff]  }
   0x5   :  { %1204 = vmatpush3.bf16.msra.mxu1 %v1558_v9  ;;  %v1576_v12 = vld [vmem:[%s2021_s1 + $0x98] ss:$12 sps:$4 sm:$0xff]   ;;  %v1595_v15 = vld [vmem:[%s2021_s1 + $0x80] ss:$12 sps:$4 sm:$0xff]   ;;  %v1602_v16 = vld [vmem:[%s2021_s1 + $0x30] ss:$12 sps:$4 sm:$0xff]  }
   0x6   :  { %1205 = vmatprep.subr.bf16.mxu1 %v1487_v1  ;;  %v1608_v17 = vld [vmem:[%s2021_s1 + $0x1c] ss:$12 sps:$4 sm:$0xff]   ;;  %v1621_v19 = vld [vmem:[%s2021_s1 + $0x18] ss:$12 sps:$4 sm:$0xff]   ;;  %v1640_v22 = vld [vmem:[%s2021_s1] ss:$12 sps:$4 sm:$0xff]  }
   0x7   :  { %191 = vmatpush1.bf16.msra.mxu0 %v1535_v5  ;;  %v1614_v18 = vld [vmem:[%s2021_s1 + $0x68] ss:$12 sps:$4 sm:$0xff]   ;;  %v1627_v20 = vld [vmem:[%s2021_s1 + $0x4] ss:$12 sps:$4 sm:$0xff]   ;;  %v1655_v24 = vld [vmem:[%s2021_s1 + $0x20] ss:$12 sps:$4 sm:$0xff]  }
   0x8   :  { %192 = vmatprep.subr.bf16.mxu0 %v1541_v6  ;;  %v1633_v21 = vld [vmem:[%s2021_s1 + $0x50] ss:$12 sps:$4 sm:$0xff]   ;;  %v1647_v23 = vld [vmem:[%s2021_s1 + $0x38] ss:$12 sps:$4 sm:$0xff]   ;;  %v1665_v26 = vld [vmem:[%s2021_s1 + $0x8] ss:$12 sps:$4 sm:$0xff]  }
   0x9   :  { %1206 = vmatpush3.bf16.msra.mxu1 %v1576_v12  ;;  %v54_v27 = vld [vmem:[%s2022_s0] sm:$0xff]  ;;  %v1714_v46 = vld [vmem:[%s2022_s0 + $0x8] ss:$12 sps:$4 sm:$0xff]   ;;  %v1103_v60 = vld [vmem:[%s2022_s0 + $0xc] sm:$0xff] }
   0xa   :  { %1207 = vmatprep.subr.bf16.mxu1 %v1487_v1  ;;  %v56_v28 = vunpack.c.l.bf16 %v54_v27  ;;  %v57_v33 = vunpack.c.h.bf16 %v54_v27  ;;  %v1709_v45 = vld [vmem:[%s2023_s2] ss:$0 sm:$0xff]  ;;  %v58_v49 = vunpack.c.l.bf16 %v1714_v46  ;;  %v300_v61 = vunpack.c.l.bf16 %v1103_v60 }
   0xb   :  { %193 = vmatpush1.bf16.msra.mxu0 %v1547_v7 }
   0xc   :  { %194 = vmatprep.subr.bf16.mxu0 %v1553_v8 }
   0xd   :  { %1208 = vmatpush3.bf16.msra.mxu1 %v1595_v15 }
   0xe   :  { %1209 = vmatprep.subr.bf16.mxu1 %v1487_v1 }
   0xf   :  { %195 = vmatpush1.bf16.msra.mxu0 %v1564_v10 }
  0x10   :  { %196 = vmatprep.subr.bf16.mxu0 %v1569_v11 }
  0x11   :  { %1210 = vmatpush3.bf16.msra.mxu1 %v1614_v18 }
  0x12   :  { %1211 = vmatprep.subr.bf16.mxu1 %v1487_v1 }
  0x13   :  { %197 = vmatpush1.bf16.msra.mxu0 %v1582_v13 }
  0x14   :  { %198 = vmatprep.subr.bf16.mxu0 %v1588_v14 }
  0x15   :  { %1212 = vmatpush3.bf16.msra.mxu1 %v1633_v21 }
  0x16   :  { %1213 = vmatprep.subr.bf16.mxu1 %v1487_v1 }
  0x17   :  { %199 = vmatpush1.bf16.msra.mxu0 %v1602_v16 }
  0x18   :  { %200 = vmatprep.subr.bf16.mxu0 %v1608_v17 }
  0x19   :  { %1214 = vmatpush3.bf16.msra.mxu1 %v1647_v23 }
  0x1a   :  { %1215 = vmatprep.subr.bf16.mxu1 %v1487_v1 }
  0x1b   :  { %201 = vmatpush1.bf16.msra.mxu0 %v1621_v19 }
  0x1c   :  { %202 = vmatprep.subr.bf16.mxu0 %v1627_v20 }
  0x1d   :  { %1216 = vmatpush3.bf16.msra.mxu1 %v1655_v24 }
  0x1e   :  { %1217 = vmatprep.subr.bf16.mxu1 %v1487_v1 }
  0x1f   :  { %203 = vmatpush1.bf16.msra.mxu0 %v1640_v22 }
  0x20   :  { %304 = vmatprep.subr.bf16.mxu0 %v1514_v0 }
  0x21   :  { %1218 = vmatpush3.bf16.msra.mxu1 %v1665_v26 }
  0x22   :  { %221 = vmatmul.mubr.bf16.vlgmr.msra.gmra.mxu0 %v1490_v25  ;;  %1223 = vmatprep.subr.bf16.mxu1 %v1487_v1 }
  0x23   :  { %305 = vmatpush1.bf16.msra.mxu0 %v1521_v3  ;;  %336 = vmatprep.mubr.bf16.mxu0 %v1488_v2 }
  0x24   :  { %306 = vmatprep.subr.bf16.mxu0 %v1529_v4  ;;  %1220 = vmatmul.mubr.bf16.vlgmr.msra.gmra.mxu1 %v1490_v25 }
  0x25   :  { %1224 = vmatpush3.bf16.msra.mxu1 %v1558_v9  ;;  %1239 = vmatprep.mubr.msk.bf16.mxu1 %vm1489_vm0, %v1487_v1 }
  0x26   :  { %1225 = vmatprep.subr.bf16.mxu1 %v1487_v1 }
  0x27   :  { %307 = vmatpush1.bf16.msra.mxu0 %v1535_v5 }
  0x28   :  { %308 = vmatprep.subr.bf16.mxu0 %v1541_v6 }
  0x29   :  { %1226 = vmatpush3.bf16.msra.mxu1 %v1576_v12 }
  0x2a   :  { %1227 = vmatprep.subr.bf16.mxu1 %v1487_v1 }
  0x2b   :  { %309 = vmatpush1.bf16.msra.mxu0 %v1547_v7 }
  0x2c   :  { %310 = vmatprep.subr.bf16.mxu0 %v1553_v8 }
  0x2d   :  { %1228 = vmatpush3.bf16.msra.mxu1 %v1595_v15 }
  0x2e   :  { %1229 = vmatprep.subr.bf16.mxu1 %v1487_v1 }
  0x2f   :  { %311 = vmatpush1.bf16.msra.mxu0 %v1564_v10 }
  0x30   :  { %312 = vmatprep.subr.bf16.mxu0 %v1569_v11 }
  0x31   :  { %1230 = vmatpush3.bf16.msra.mxu1 %v1614_v18 }
  0x32   :  { %1231 = vmatprep.subr.bf16.mxu1 %v1487_v1 }
  0x33   :  { %313 = vmatpush1.bf16.msra.mxu0 %v1582_v13 }
  0x34   :  { %314 = vmatprep.subr.bf16.mxu0 %v1588_v14 }
  0x35   :  { %1232 = vmatpush3.bf16.msra.mxu1 %v1633_v21 }
  0x36   :  { %1233 = vmatprep.subr.bf16.mxu1 %v1487_v1 }
  0x37   :  { %315 = vmatpush1.bf16.msra.mxu0 %v1602_v16 }
  0x38   :  { %316 = vmatprep.subr.bf16.mxu0 %v1608_v17 }
  0x39   :  { %1234 = vmatpush3.bf16.msra.mxu1 %v1647_v23 }
  0x3a   :  { %1235 = vmatprep.subr.bf16.mxu1 %v1487_v1 }
  0x3b   :  { %317 = vmatpush1.bf16.msra.mxu0 %v1621_v19 }
  0x3c   :  { %318 = vmatprep.subr.bf16.mxu0 %v1627_v20 }
  0x3d   :  { %1236 = vmatpush3.bf16.msra.mxu1 %v1655_v24 }
  0x3e   :  { %1237 = vmatprep.subr.bf16.mxu1 %v1487_v1 }
  0x3f   :  { %319 = vmatpush1.bf16.msra.mxu0 %v1640_v22 }
  0x40   :  { %414 = vmatprep.subr.bf16.mxu0 %v1514_v0 }
  0x41   :  { %1238 = vmatpush3.bf16.msra.mxu1 %v1665_v26 }
  0x42   :  { %1243 = vmatprep.subr.bf16.mxu1 %v1487_v1 }
  0xe2   :  { %v222_v29 = vpop.f32.mrf.mxu0 }
  0xe3   :  { %v269_v30 = vadd.f32 %v222_v29, %v56_v28 }
  0xe4   :  { %v224_v31 = vpop.f32.mrf.mxu0  ;;  %v263_v37 = vpop.f32.mrf.mxu1 }
  0xe5   :  { %v1100_v32 = vmul.f32 -1.442695, %v269_v30  ;;  %v276_v36 = vadd.f32 %v224_v31, %v57_v33  ;;  %v289_v48 = vadd.f32 %v1709_v45, %v263_v37  ;;  %v301_v30 = vunpack.c.h.bf16 %v1103_v60 }
  0xe6   :  { %v226_v34 = vpop.f32.mrf.mxu0  ;;  %v1221_v39 = vpop.f32.mrf.mxu1 }
  0xe7   :  { %1399 = vpow2.f32 %v1100_v32  ;;  %v1101_v38 = vmul.f32 -1.442695, %v276_v36 }
  0xe8   :  { %v227_v35 = vpop.f32.mrf.mxu0  ;;  %v266_v40 = vpop.f32.mrf.mxu1 }
  0xe9   :  { %1401 = vpow2.f32 %v1101_v38 }
  0xea   :  { %v1222_v41 = vpop.f32.mrf.mxu1 }
  0xeb   :  { %v302_v41 = vunpack.c.h.bf16 %v1714_v46  ;;  %v1107_v46 = vld [vmem:[%s2022_s0 + $0x18] sm:$0xff] }
  0xf4   :  { %v1400_v42 = vpop.eup %1399 }
  0xf5   :  { %v273_v43 = vadd.f32 1.0, %v1400_v42 }
  0xf6   :  { %v1402_v44 = vpop.eup %1401 }
  0xf7   :  { %1403 = vrcp.f32 %v273_v43  ;;  %v280_v47 = vadd.f32 1.0, %v1402_v44 }
  0xf9   :  { %1405 = vrcp.f32 %v280_v47 }
 0x104   :  { %v1404_v50 = vpop.eup %1403 }
 0x105   :  { %v290_v51 = vmul.f32 %v1404_v50, %v289_v48 }
 0x106   :  { %v1406_v53 = vpop.eup %1405 }
 0x107   :  { %v291_v52 = vadd.f32 %v290_v51, %v58_v49  ;;  %v293_v54 = vsub.f32 1.0, %v1406_v53  ;;  %v295_v57 = vmul.f32 0.0, %v1406_v53 }
 0x109   :  { %1407 = vtanh.f32 %v291_v52 }
 0x116   :  { %v1408_v55 = vpop.eup %1407 }
 0x117   :  { %v294_v56 = vmul.f32 %v1408_v55, %v293_v54  ;;  %v410_v55 = vunpack.c.l.bf16 %v1107_v46 }
 0x119   :  { %v1718_v58 = vadd.f32 %v295_v57, %v294_v56 }
 0x11b   :  { %v303_v59 = vpack.c.bf16 %v1718_v58, %v1718_v58 }
 0x11d   :  { %337 = vmatmul.mubr.bf16.vlgmr.msra.gmra.mxu0 %v303_v59  ;;  %1240 = vmatmul.mubr.bf16.vlgmr.msra.gmra.mxu1 %v303_v59 }
 0x11e   :  { %415 = vmatpush1.bf16.msra.mxu0 %v1521_v3  ;;  %1244 = vmatpush3.bf16.msra.mxu1 %v1558_v9 }
 0x11f   :  { %416 = vmatprep.subr.bf16.mxu0 %v1529_v4  ;;  %1245 = vmatprep.subr.bf16.mxu1 %v1487_v1 }
 0x120   :  { %446 = vmatprep.mubr.bf16.mxu0 %v1488_v2  ;;  %1259 = vmatprep.mubr.msk.bf16.mxu1 %vm1489_vm0, %v1487_v1 }
 0x122   :  { %417 = vmatpush1.bf16.msra.mxu0 %v1535_v5  ;;  %1246 = vmatpush3.bf16.msra.mxu1 %v1576_v12 }
 0x123   :  { %418 = vmatprep.subr.bf16.mxu0 %v1541_v6  ;;  %1247 = vmatprep.subr.bf16.mxu1 %v1487_v1 }
 0x126   :  { %419 = vmatpush1.bf16.msra.mxu0 %v1547_v7  ;;  %1248 = vmatpush3.bf16.msra.mxu1 %v1595_v15 }
 0x127   :  { %420 = vmatprep.subr.bf16.mxu0 %v1553_v8  ;;  %1249 = vmatprep.subr.bf16.mxu1 %v1487_v1 }
 0x12a   :  { %421 = vmatpush1.bf16.msra.mxu0 %v1564_v10  ;;  %1250 = vmatpush3.bf16.msra.mxu1 %v1614_v18 }
 0x12b   :  { %422 = vmatprep.subr.bf16.mxu0 %v1569_v11  ;;  %1251 = vmatprep.subr.bf16.mxu1 %v1487_v1 }
 0x12e   :  { %423 = vmatpush1.bf16.msra.mxu0 %v1582_v13  ;;  %1252 = vmatpush3.bf16.msra.mxu1 %v1633_v21 }
 0x12f   :  { %424 = vmatprep.subr.bf16.mxu0 %v1588_v14  ;;  %1253 = vmatprep.subr.bf16.mxu1 %v1487_v1 }
 0x132   :  { %425 = vmatpush1.bf16.msra.mxu0 %v1602_v16  ;;  %1254 = vmatpush3.bf16.msra.mxu1 %v1647_v23 }
 0x133   :  { %426 = vmatprep.subr.bf16.mxu0 %v1608_v17  ;;  %1255 = vmatprep.subr.bf16.mxu1 %v1487_v1 }
 0x136   :  { %427 = vmatpush1.bf16.msra.mxu0 %v1621_v19  ;;  %1256 = vmatpush3.bf16.msra.mxu1 %v1655_v24 }
 0x137   :  { %428 = vmatprep.subr.bf16.mxu0 %v1627_v20  ;;  %1257 = vmatprep.subr.bf16.mxu1 %v1487_v1 }
 0x13a   :  { %429 = vmatpush1.bf16.msra.mxu0 %v1640_v22  ;;  %1258 = vmatpush3.bf16.msra.mxu1 %v1665_v26 }
 0x13b   :  { %524 = vmatprep.subr.bf16.mxu0 %v1514_v0  ;;  %1263 = vmatprep.subr.bf16.mxu1 %v1487_v1 }
 0x1dd   :  { %v338_v62 = vpop.f32.mrf.mxu0  ;;  %v379_v63 = vpop.f32.mrf.mxu1 }
 0x1de   :  { %v385_v25 = vadd.f32 %v338_v62, %v300_v61  ;;  %v399_v42 = vadd.f32 %v1709_v45, %v379_v63  ;;  %v411_v62 = vunpack.c.h.bf16 %v1107_v46 }
 0x1df   :  { %v340_v27 = vpop.f32.mrf.mxu0  ;;  %v1241_v28 = vpop.f32.mrf.mxu1 }
 0x1e0   :  { %v1105_v29 = vmul.f32 -1.442695, %v385_v25  ;;  %v392_v35 = vadd.f32 %v340_v27, %v301_v30 }
 0x1e1   :  { %v342_v31 = vpop.f32.mrf.mxu0  ;;  %v382_v32 = vpop.f32.mrf.mxu1 }
 0x1e2   :  { %1409 = vpow2.f32 %v1105_v29  ;;  %v1106_v36 = vmul.f32 -1.442695, %v392_v35 }
 0x1e3   :  { %v343_v33 = vpop.f32.mrf.mxu0  ;;  %v1242_v34 = vpop.f32.mrf.mxu1 }
 0x1e4   :  { %1411 = vpow2.f32 %v1106_v36  ;;  %v1808_v34 = vld [vmem:[%s2022_s0 + $0x20] ss:$12 sps:$4 sm:$0xff]  }
 0x1e5   :  { %v412_v36 = vunpack.c.l.bf16 %v1808_v34 }
 0x1ef   :  { %v1410_v37 = vpop.eup %1409 }
 0x1f0   :  { %v389_v38 = vadd.f32 1.0, %v1410_v37 }
 0x1f1   :  { %v1412_v39 = vpop.eup %1411 }
 0x1f2   :  { %1413 = vrcp.f32 %v389_v38  ;;  %v396_v40 = vadd.f32 1.0, %v1412_v39 }
 0x1f4   :  { %1415 = vrcp.f32 %v396_v40 }
 0x1ff   :  { %v1414_v43 = vpop.eup %1413 }
 0x200   :  { %v400_v44 = vmul.f32 %v1414_v43, %v399_v42 }
 0x201   :  { %v1416_v48 = vpop.eup %1415 }
 0x202   :  { %v401_v47 = vadd.f32 %v400_v44, %v302_v41  ;;  %v403_v49 = vsub.f32 1.0, %v1416_v48  ;;  %v405_v52 = vmul.f32 %v1416_v48, %v1718_v58 }
 0x204   :  { %1417 = vtanh.f32 %v401_v47 }
 0x211   :  { %v1418_v50 = vpop.eup %1417 }
 0x212   :  { %v404_v51 = vmul.f32 %v1418_v50, %v403_v49  ;;  %v1111_v50 = vld [vmem:[%s2022_s0 + $0x24] sm:$0xff] }
 0x214   :  { %v1763_v53 = vadd.f32 %v405_v52, %v404_v51  ;;  %v520_v51 = vunpack.c.l.bf16 %v1111_v50 }
 0x216   :  { %v413_v54 = vpack.c.bf16 %v1763_v53, %v1763_v53 }
 0x218   :  { %447 = vmatmul.mubr.bf16.vlgmr.msra.gmra.mxu0 %v413_v54  ;;  %1260 = vmatmul.mubr.bf16.vlgmr.msra.gmra.mxu1 %v413_v54 }
 0x219   :  { %525 = vmatpush1.bf16.msra.mxu0 %v1521_v3  ;;  %1264 = vmatpush3.bf16.msra.mxu1 %v1558_v9 }
 0x21a   :  { %526 = vmatprep.subr.bf16.mxu0 %v1529_v4  ;;  %1265 = vmatprep.subr.bf16.mxu1 %v1487_v1 }
 0x21b   :  { %556 = vmatprep.mubr.bf16.mxu0 %v1488_v2  ;;  %1279 = vmatprep.mubr.msk.bf16.mxu1 %vm1489_vm0, %v1487_v1 }
 0x21d   :  { %527 = vmatpush1.bf16.msra.mxu0 %v1535_v5  ;;  %1266 = vmatpush3.bf16.msra.mxu1 %v1576_v12 }
 0x21e   :  { %528 = vmatprep.subr.bf16.mxu0 %v1541_v6  ;;  %1267 = vmatprep.subr.bf16.mxu1 %v1487_v1 }
 0x221   :  { %529 = vmatpush1.bf16.msra.mxu0 %v1547_v7  ;;  %1268 = vmatpush3.bf16.msra.mxu1 %v1595_v15 }
 0x222   :  { %530 = vmatprep.subr.bf16.mxu0 %v1553_v8  ;;  %1269 = vmatprep.subr.bf16.mxu1 %v1487_v1 }
 0x225   :  { %531 = vmatpush1.bf16.msra.mxu0 %v1564_v10  ;;  %1270 = vmatpush3.bf16.msra.mxu1 %v1614_v18 }
 0x226   :  { %532 = vmatprep.subr.bf16.mxu0 %v1569_v11  ;;  %1271 = vmatprep.subr.bf16.mxu1 %v1487_v1 }
 0x229   :  { %533 = vmatpush1.bf16.msra.mxu0 %v1582_v13  ;;  %1272 = vmatpush3.bf16.msra.mxu1 %v1633_v21 }
 0x22a   :  { %534 = vmatprep.subr.bf16.mxu0 %v1588_v14  ;;  %1273 = vmatprep.subr.bf16.mxu1 %v1487_v1 }
 0x22d   :  { %535 = vmatpush1.bf16.msra.mxu0 %v1602_v16  ;;  %1274 = vmatpush3.bf16.msra.mxu1 %v1647_v23 }
 0x22e   :  { %536 = vmatprep.subr.bf16.mxu0 %v1608_v17  ;;  %1275 = vmatprep.subr.bf16.mxu1 %v1487_v1 }
 0x231   :  { %537 = vmatpush1.bf16.msra.mxu0 %v1621_v19  ;;  %1276 = vmatpush3.bf16.msra.mxu1 %v1655_v24 }
 0x232   :  { %538 = vmatprep.subr.bf16.mxu0 %v1627_v20  ;;  %1277 = vmatprep.subr.bf16.mxu1 %v1487_v1 }
 0x235   :  { %539 = vmatpush1.bf16.msra.mxu0 %v1640_v22  ;;  %1278 = vmatpush3.bf16.msra.mxu1 %v1665_v26 }
 0x236   :  { %634 = vmatprep.subr.bf16.mxu0 %v1514_v0  ;;  %1283 = vmatprep.subr.bf16.mxu1 %v1487_v1 }
 0x2d8   :  { %v448_v56 = vpop.f32.mrf.mxu0  ;;  %v489_v57 = vpop.f32.mrf.mxu1 }
 0x2d9   :  { %v495_v58 = vadd.f32 %v448_v56, %v410_v55  ;;  %v509_v37 = vadd.f32 %v1709_v45, %v489_v57  ;;  %v521_v57 = vunpack.c.h.bf16 %v1111_v50 }
 0x2da   :  { %v450_v59 = vpop.f32.mrf.mxu0  ;;  %v1261_v60 = vpop.f32.mrf.mxu1 }
 0x2db   :  { %v1109_v61 = vmul.f32 -1.442695, %v495_v58  ;;  %v502_v29 = vadd.f32 %v450_v59, %v411_v62 }
 0x2dc   :  { %v452_v63 = vpop.f32.mrf.mxu0  ;;  %v492_v25 = vpop.f32.mrf.mxu1 }
 0x2dd   :  { %1419 = vpow2.f32 %v1109_v61  ;;  %v1110_v30 = vmul.f32 -1.442695, %v502_v29 }
 0x2de   :  { %v453_v27 = vpop.f32.mrf.mxu0  ;;  %v1262_v28 = vpop.f32.mrf.mxu1 }
 0x2df   :  { %1421 = vpow2.f32 %v1110_v30  ;;  %v522_v30 = vunpack.c.h.bf16 %v1808_v34  ;;  %v1115_v34 = vld [vmem:[%s2022_s0 + $0x30] sm:$0xff] }
 0x2ea   :  { %v1420_v31 = vpop.eup %1419 }
 0x2eb   :  { %v499_v32 = vadd.f32 1.0, %v1420_v31 }
 0x2ec   :  { %v1422_v33 = vpop.eup %1421 }
 0x2ed   :  { %1423 = vrcp.f32 %v499_v32  ;;  %v506_v35 = vadd.f32 1.0, %v1422_v33 }
 0x2ef   :  { %1425 = vrcp.f32 %v506_v35 }
 0x2fa   :  { %v1424_v38 = vpop.eup %1423 }
 0x2fb   :  { %v510_v39 = vmul.f32 %v1424_v38, %v509_v37 }
 0x2fc   :  { %v1426_v41 = vpop.eup %1425 }
 0x2fd   :  { %v511_v40 = vadd.f32 %v510_v39, %v412_v36  ;;  %v513_v42 = vsub.f32 1.0, %v1426_v41  ;;  %v515_v47 = vmul.f32 %v1426_v41, %v1763_v53 }
 0x2ff   :  { %1427 = vtanh.f32 %v511_v40 }
 0x30c   :  { %v1428_v43 = vpop.eup %1427 }
 0x30d   :  { %v514_v44 = vmul.f32 %v1428_v43, %v513_v42  ;;  %v630_v43 = vunpack.c.l.bf16 %v1115_v34 }
 0x30f   :  { %v1813_v48 = vadd.f32 %v515_v47, %v514_v44 }
 0x311   :  { %v523_v49 = vpack.c.bf16 %v1813_v48, %v1813_v48 }
 0x313   :  { %557 = vmatmul.mubr.bf16.vlgmr.msra.gmra.mxu0 %v523_v49  ;;  %1280 = vmatmul.mubr.bf16.vlgmr.msra.gmra.mxu1 %v523_v49 }
 0x314   :  { %635 = vmatpush1.bf16.msra.mxu0 %v1521_v3  ;;  %1284 = vmatpush3.bf16.msra.mxu1 %v1558_v9 }
 0x315   :  { %636 = vmatprep.subr.bf16.mxu0 %v1529_v4  ;;  %1285 = vmatprep.subr.bf16.mxu1 %v1487_v1 }
 0x316   :  { %666 = vmatprep.mubr.bf16.mxu0 %v1488_v2  ;;  %1299 = vmatprep.mubr.msk.bf16.mxu1 %vm1489_vm0, %v1487_v1 }
 0x318   :  { %637 = vmatpush1.bf16.msra.mxu0 %v1535_v5  ;;  %1286 = vmatpush3.bf16.msra.mxu1 %v1576_v12 }
 0x319   :  { %638 = vmatprep.subr.bf16.mxu0 %v1541_v6  ;;  %1287 = vmatprep.subr.bf16.mxu1 %v1487_v1 }
 0x31c   :  { %639 = vmatpush1.bf16.msra.mxu0 %v1547_v7  ;;  %1288 = vmatpush3.bf16.msra.mxu1 %v1595_v15 }
 0x31d   :  { %640 = vmatprep.subr.bf16.mxu0 %v1553_v8  ;;  %1289 = vmatprep.subr.bf16.mxu1 %v1487_v1 }
 0x320   :  { %641 = vmatpush1.bf16.msra.mxu0 %v1564_v10  ;;  %1290 = vmatpush3.bf16.msra.mxu1 %v1614_v18 }
 0x321   :  { %642 = vmatprep.subr.bf16.mxu0 %v1569_v11  ;;  %1291 = vmatprep.subr.bf16.mxu1 %v1487_v1 }
 0x324   :  { %643 = vmatpush1.bf16.msra.mxu0 %v1582_v13  ;;  %1292 = vmatpush3.bf16.msra.mxu1 %v1633_v21 }
 0x325   :  { %644 = vmatprep.subr.bf16.mxu0 %v1588_v14  ;;  %1293 = vmatprep.subr.bf16.mxu1 %v1487_v1 }
 0x328   :  { %645 = vmatpush1.bf16.msra.mxu0 %v1602_v16  ;;  %1294 = vmatpush3.bf16.msra.mxu1 %v1647_v23 }
 0x329   :  { %646 = vmatprep.subr.bf16.mxu0 %v1608_v17  ;;  %1295 = vmatprep.subr.bf16.mxu1 %v1487_v1 }
 0x32c   :  { %647 = vmatpush1.bf16.msra.mxu0 %v1621_v19  ;;  %1296 = vmatpush3.bf16.msra.mxu1 %v1655_v24 }
 0x32d   :  { %648 = vmatprep.subr.bf16.mxu0 %v1627_v20  ;;  %1297 = vmatprep.subr.bf16.mxu1 %v1487_v1 }
 0x330   :  { %649 = vmatpush1.bf16.msra.mxu0 %v1640_v22  ;;  %1298 = vmatpush3.bf16.msra.mxu1 %v1665_v26 }
 0x331   :  { %744 = vmatprep.subr.bf16.mxu0 %v1514_v0  ;;  %1303 = vmatprep.subr.bf16.mxu1 %v1487_v1 }
 0x3d3   :  { %v558_v52 = vpop.f32.mrf.mxu0  ;;  %v599_v53 = vpop.f32.mrf.mxu1 }
 0x3d4   :  { %v605_v54 = vadd.f32 %v558_v52, %v520_v51  ;;  %v619_v31 = vadd.f32 %v1709_v45, %v599_v53  ;;  %v631_v52 = vunpack.c.h.bf16 %v1115_v34 }
 0x3d5   :  { %v560_v46 = vpop.f32.mrf.mxu0  ;;  %v1281_v55 = vpop.f32.mrf.mxu1 }
 0x3d6   :  { %v1113_v56 = vmul.f32 -1.442695, %v605_v54  ;;  %v612_v62 = vadd.f32 %v560_v46, %v521_v57 }
 0x3d7   :  { %v562_v58 = vpop.f32.mrf.mxu0  ;;  %v602_v59 = vpop.f32.mrf.mxu1 }
 0x3d8   :  { %1429 = vpow2.f32 %v1113_v56  ;;  %v1114_v63 = vmul.f32 -1.442695, %v612_v62 }
 0x3d9   :  { %v563_v60 = vpop.f32.mrf.mxu0  ;;  %v1282_v61 = vpop.f32.mrf.mxu1 }
 0x3da   :  { %1431 = vpow2.f32 %v1114_v63  ;;  %v1903_v61 = vld [vmem:[%s2022_s0 + $0x38] ss:$12 sps:$4 sm:$0xff]  }
 0x3db   :  { %v632_v63 = vunpack.c.l.bf16 %v1903_v61 }
 0x3e5   :  { %v1430_v25 = vpop.eup %1429 }
 0x3e6   :  { %v609_v27 = vadd.f32 1.0, %v1430_v25 }
 0x3e7   :  { %v1432_v28 = vpop.eup %1431 }
 0x3e8   :  { %1433 = vrcp.f32 %v609_v27  ;;  %v616_v29 = vadd.f32 1.0, %v1432_v28 }
 0x3ea   :  { %1435 = vrcp.f32 %v616_v29 }
 0x3f5   :  { %v1434_v32 = vpop.eup %1433 }
 0x3f6   :  { %v620_v33 = vmul.f32 %v1434_v32, %v619_v31 }
 0x3f7   :  { %v1436_v36 = vpop.eup %1435 }
 0x3f8   :  { %v621_v35 = vadd.f32 %v620_v33, %v522_v30  ;;  %v623_v37 = vsub.f32 1.0, %v1436_v36  ;;  %v625_v40 = vmul.f32 %v1436_v36, %v1813_v48 }
 0x3fa   :  { %1437 = vtanh.f32 %v621_v35 }
 0x407   :  { %v1438_v38 = vpop.eup %1437 }
 0x408   :  { %v624_v39 = vmul.f32 %v1438_v38, %v623_v37 }
 0x40a   :  { %v1858_v41 = vadd.f32 %v625_v40, %v624_v39 }
 0x40c   :  { %v633_v42 = vpack.c.bf16 %v1858_v41, %v1858_v41 }
 0x40e   :  { %667 = vmatmul.mubr.bf16.vlgmr.msra.gmra.mxu0 %v633_v42  ;;  %1300 = vmatmul.mubr.bf16.vlgmr.msra.gmra.mxu1 %v633_v42 }
 0x40f   :  { %745 = vmatpush1.bf16.msra.mxu0 %v1521_v3  ;;  %1304 = vmatpush3.bf16.msra.mxu1 %v1558_v9 }
 0x410   :  { %746 = vmatprep.subr.bf16.mxu0 %v1529_v4  ;;  %1305 = vmatprep.subr.bf16.mxu1 %v1487_v1 }
 0x411   :  { %776 = vmatprep.mubr.bf16.mxu0 %v1488_v2  ;;  %1319 = vmatprep.mubr.msk.bf16.mxu1 %vm1489_vm0, %v1487_v1 }
 0x413   :  { %747 = vmatpush1.bf16.msra.mxu0 %v1535_v5  ;;  %1306 = vmatpush3.bf16.msra.mxu1 %v1576_v12 }
 0x414   :  { %748 = vmatprep.subr.bf16.mxu0 %v1541_v6  ;;  %1307 = vmatprep.subr.bf16.mxu1 %v1487_v1 }
 0x417   :  { %749 = vmatpush1.bf16.msra.mxu0 %v1547_v7  ;;  %1308 = vmatpush3.bf16.msra.mxu1 %v1595_v15 }
 0x418   :  { %750 = vmatprep.subr.bf16.mxu0 %v1553_v8  ;;  %1309 = vmatprep.subr.bf16.mxu1 %v1487_v1 }
 0x41b   :  { %751 = vmatpush1.bf16.msra.mxu0 %v1564_v10  ;;  %1310 = vmatpush3.bf16.msra.mxu1 %v1614_v18 }
 0x41c   :  { %752 = vmatprep.subr.bf16.mxu0 %v1569_v11  ;;  %1311 = vmatprep.subr.bf16.mxu1 %v1487_v1 }
 0x41f   :  { %753 = vmatpush1.bf16.msra.mxu0 %v1582_v13  ;;  %1312 = vmatpush3.bf16.msra.mxu1 %v1633_v21 }
 0x420   :  { %754 = vmatprep.subr.bf16.mxu0 %v1588_v14  ;;  %1313 = vmatprep.subr.bf16.mxu1 %v1487_v1 }
 0x423   :  { %755 = vmatpush1.bf16.msra.mxu0 %v1602_v16  ;;  %1314 = vmatpush3.bf16.msra.mxu1 %v1647_v23 }
 0x424   :  { %756 = vmatprep.subr.bf16.mxu0 %v1608_v17  ;;  %1315 = vmatprep.subr.bf16.mxu1 %v1487_v1 }
 0x427   :  { %757 = vmatpush1.bf16.msra.mxu0 %v1621_v19  ;;  %1316 = vmatpush3.bf16.msra.mxu1 %v1655_v24 }
 0x428   :  { %758 = vmatprep.subr.bf16.mxu0 %v1627_v20  ;;  %1317 = vmatprep.subr.bf16.mxu1 %v1487_v1 }
 0x42b   :  { %759 = vmatpush1.bf16.msra.mxu0 %v1640_v22  ;;  %1318 = vmatpush3.bf16.msra.mxu1 %v1665_v26 }
 0x42c   :  { %854 = vmatprep.subr.bf16.mxu0 %v1514_v0  ;;  %1323 = vmatprep.subr.bf16.mxu1 %v1487_v1 }
 0x4ce   :  { %v668_v44 = vpop.f32.mrf.mxu0  ;;  %v709_v47 = vpop.f32.mrf.mxu1 }
 0x4cf   :  { %v715_v48 = vadd.f32 %v668_v44, %v630_v43  ;;  %v729_v25 = vadd.f32 %v1709_v45, %v709_v47 }
 0x4d0   :  { %v670_v49 = vpop.f32.mrf.mxu0  ;;  %v1301_v50 = vpop.f32.mrf.mxu1 }
 0x4d1   :  { %v1117_v51 = vmul.f32 -1.442695, %v715_v48  ;;  %v722_v56 = vadd.f32 %v670_v49, %v631_v52  ;;  %v742_v49 = vunpack.c.h.bf16 %v1903_v61  ;;  %v1480_v61 = vld [vmem:[%s2021_s1 + $0x94] ss:$12 sps:$4 sm:$0xff]  }
 0x4d2   :  { %v672_v53 = vpop.f32.mrf.mxu0  ;;  %v712_v54 = vpop.f32.mrf.mxu1 }
 0x4d3   :  { %1439 = vpow2.f32 %v1117_v51  ;;  %v1118_v57 = vmul.f32 -1.442695, %v722_v56 }
 0x4d4   :  { %v673_v46 = vpop.f32.mrf.mxu0  ;;  %v1302_v55 = vpop.f32.mrf.mxu1 }
 0x4d5   :  { %1441 = vpow2.f32 %v1118_v57 }
 0x4e0   :  { %v1440_v58 = vpop.eup %1439 }
 0x4e1   :  { %v719_v59 = vadd.f32 1.0, %v1440_v58 }
 0x4e2   :  { %v1442_v60 = vpop.eup %1441 }
 0x4e3   :  { %1443 = vrcp.f32 %v719_v59  ;;  %v726_v62 = vadd.f32 1.0, %v1442_v60  ;;  %v1479_v60 = vld [vmem:[%s2021_s1 + $0xa8] ss:$12 sps:$4 sm:$0xff]  }
 0x4e5   :  { %1445 = vrcp.f32 %v726_v62  ;;  %v1481_v62 = vld [vmem:[%s2021_s1 + $0x90] ss:$12 sps:$4 sm:$0xff]  }
 0x4f0   :  { %v1444_v27 = vpop.eup %1443 }
 0x4f1   :  { %v730_v28 = vmul.f32 %v1444_v27, %v729_v25  ;;  %v1486_v25 = vld [vmem:[%s2021_s1 + $0x4c] ss:$12 sps:$4 sm:$0xff]  }
 0x4f2   :  { %v1446_v30 = vpop.eup %1445 }
 0x4f3   :  { %v731_v29 = vadd.f32 %v730_v28, %v632_v63  ;;  %v733_v31 = vsub.f32 1.0, %v1446_v30  ;;  %v735_v35 = vmul.f32 %v1446_v30, %v1858_v41  ;;  %v1484_v63 = vld [vmem:[%s2021_s1 + $0x64] ss:$12 sps:$4 sm:$0xff]  }
 0x4f5   :  { %1447 = vtanh.f32 %v731_v29 }
 0x502   :  { %v1448_v32 = vpop.eup %1447 }
 0x503   :  { %v734_v33 = vmul.f32 %v1448_v32, %v733_v31  ;;  %v1124_v31 = vld [vmem:[%s2022_s0 + $0x50] ss:$12 sps:$4 sm:$0xff]  }
 0x505   :  { %v1908_v36 = vadd.f32 %v735_v35, %v734_v33  ;;  %v852_v33 = vunpack.c.l.bf16 %v1124_v31 }
 0x507   :  { %v743_v37 = vpack.c.bf16 %v1908_v36, %v1908_v36 }
 0x509   :  { %777 = vmatmul.mubr.bf16.vlgmr.msra.gmra.mxu0 %v743_v37  ;;  %1320 = vmatmul.mubr.bf16.vlgmr.msra.gmra.mxu1 %v743_v37 }
 0x50a   :  { %855 = vmatpush1.bf16.msra.mxu0 %v1521_v3  ;;  %1324 = vmatpush3.bf16.msra.mxu1 %v1558_v9  ;;  %v1119_v3 = vld [vmem:[%s2022_s0 + $0x3c] sm:$0xff] }
 0x50b   :  { %856 = vmatprep.subr.bf16.mxu0 %v1529_v4  ;;  %1325 = vmatprep.subr.bf16.mxu1 %v1487_v1  ;;  %v740_v4 = vunpack.c.l.bf16 %v1119_v3  ;;  %v741_v38 = vunpack.c.h.bf16 %v1119_v3 }
 0x50c   :  { %886 = vmatprep.mubr.bf16.mxu0 %v1488_v2  ;;  %1339 = vmatprep.mubr.msk.bf16.mxu1 %vm1489_vm0, %v1487_v1 }
 0x50e   :  { %857 = vmatpush1.bf16.msra.mxu0 %v1535_v5  ;;  %1326 = vmatpush3.bf16.msra.mxu1 %v1576_v12 }
 0x50f   :  { %858 = vmatprep.subr.bf16.mxu0 %v1541_v6  ;;  %1327 = vmatprep.subr.bf16.mxu1 %v1487_v1 }
 0x512   :  { %859 = vmatpush1.bf16.msra.mxu0 %v1547_v7  ;;  %1328 = vmatpush3.bf16.msra.mxu1 %v1595_v15 }
 0x513   :  { %860 = vmatprep.subr.bf16.mxu0 %v1553_v8  ;;  %1329 = vmatprep.subr.bf16.mxu1 %v1487_v1 }
 0x516   :  { %861 = vmatpush1.bf16.msra.mxu0 %v1564_v10  ;;  %1330 = vmatpush3.bf16.msra.mxu1 %v1614_v18 }
 0x517   :  { %862 = vmatprep.subr.bf16.mxu0 %v1569_v11  ;;  %1331 = vmatprep.subr.bf16.mxu1 %v1487_v1 }
 0x51a   :  { %863 = vmatpush1.bf16.msra.mxu0 %v1582_v13  ;;  %1332 = vmatpush3.bf16.msra.mxu1 %v1633_v21 }
 0x51b   :  { %864 = vmatprep.subr.bf16.mxu0 %v1588_v14  ;;  %1333 = vmatprep.subr.bf16.mxu1 %v1487_v1 }
 0x51e   :  { %865 = vmatpush1.bf16.msra.mxu0 %v1602_v16  ;;  %1334 = vmatpush3.bf16.msra.mxu1 %v1647_v23 }
 0x51f   :  { %866 = vmatprep.subr.bf16.mxu0 %v1608_v17  ;;  %1335 = vmatprep.subr.bf16.mxu1 %v1487_v1 }
 0x522   :  { %867 = vmatpush1.bf16.msra.mxu0 %v1621_v19  ;;  %1336 = vmatpush3.bf16.msra.mxu1 %v1655_v24 }
 0x523   :  { %868 = vmatprep.subr.bf16.mxu0 %v1627_v20  ;;  %1337 = vmatprep.subr.bf16.mxu1 %v1487_v1 }
 0x526   :  { %869 = vmatpush1.bf16.msra.mxu0 %v1640_v22  ;;  %1338 = vmatpush3.bf16.msra.mxu1 %v1665_v26 }
 0x527   :  { %964 = vmatprep.subr.bf16.mxu0 %v1514_v0  ;;  %1343 = vmatprep.subr.bf16.mxu1 %v1487_v1 }
 0x5c9   :  { %v778_v5 = vpop.f32.mrf.mxu0  ;;  %v819_v6 = vpop.f32.mrf.mxu1 }
 0x5ca   :  { %v825_v7 = vadd.f32 %v778_v5, %v740_v4  ;;  %v839_v50 = vadd.f32 %v1709_v45, %v819_v6 }
 0x5cb   :  { %v780_v8 = vpop.f32.mrf.mxu0  ;;  %v1321_v10 = vpop.f32.mrf.mxu1 }
 0x5cc   :  { %v1121_v11 = vmul.f32 -1.442695, %v825_v7  ;;  %v832_v0 = vadd.f32 %v780_v8, %v741_v38  ;;  %v1127_v38 = vld [vmem:[%s2022_s0 + $0x54] sm:$0xff] }
 0x5cd   :  { %v782_v39 = vpop.f32.mrf.mxu0  ;;  %v822_v40 = vpop.f32.mrf.mxu1 }
 0x5ce   :  { %1449 = vpow2.f32 %v1121_v11  ;;  %v1122_v34 = vmul.f32 -1.442695, %v832_v0  ;;  %v960_v39 = vunpack.c.l.bf16 %v1127_v38 }
 0x5cf   :  { %v783_v41 = vpop.f32.mrf.mxu0  ;;  %v1322_v42 = vpop.f32.mrf.mxu1 }
 0x5d0   :  { %1451 = vpow2.f32 %v1122_v34 }
 0x5db   :  { %v1450_v43 = vpop.eup %1449 }
 0x5dc   :  { %v829_v44 = vadd.f32 1.0, %v1450_v43 }
 0x5dd   :  { %v1452_v47 = vpop.eup %1451 }
 0x5de   :  { %1453 = vrcp.f32 %v829_v44  ;;  %v836_v48 = vadd.f32 1.0, %v1452_v47  ;;  %v961_v44 = vunpack.c.h.bf16 %v1127_v38 }
 0x5e0   :  { %1455 = vrcp.f32 %v836_v48 }
 0x5eb   :  { %v1454_v51 = vpop.eup %1453 }
 0x5ec   :  { %v840_v52 = vmul.f32 %v1454_v51, %v839_v50 }
 0x5ed   :  { %v1456_v54 = vpop.eup %1455 }
 0x5ee   :  { %v841_v53 = vadd.f32 %v840_v52, %v742_v49  ;;  %v843_v46 = vsub.f32 1.0, %v1456_v54  ;;  %v845_v57 = vmul.f32 %v1456_v54, %v1908_v36 }
 0x5f0   :  { %1457 = vtanh.f32 %v841_v53 }
 0x5fd   :  { %v1458_v55 = vpop.eup %1457 }
 0x5fe   :  { %v844_v56 = vmul.f32 %v1458_v55, %v843_v46 }
 0x600   :  { %v1953_v58 = vadd.f32 %v845_v57, %v844_v56  ;;  %v962_v56 = vunpack.c.h.bf16 %v1124_v31 }
 0x602   :  { %v853_v59 = vpack.c.bf16 %v1953_v58, %v1953_v58 }
 0x604   :  { %887 = vmatmul.mubr.bf16.vlgmr.msra.gmra.mxu0 %v853_v59  ;;  %1340 = vmatmul.mubr.bf16.vlgmr.msra.gmra.mxu1 %v853_v59 }
 0x605   :  { %965 = vmatpush1.bf16.msra.mxu0 %v1479_v60  ;;  %1344 = vmatpush3.bf16.msra.mxu1 %v1558_v9  ;;  %v1482_v9 = vld [vmem:[%s2021_s1 + $0x7c] ss:$12 sps:$4 sm:$0xff]  }
 0x606   :  { %966 = vmatprep.subr.bf16.mxu0 %v1480_v61  ;;  %1345 = vmatprep.subr.bf16.mxu1 %v1487_v1 }
 0x607   :  { %996 = vmatprep.mubr.bf16.mxu0 %v1488_v2  ;;  %1359 = vmatprep.mubr.msk.bf16.mxu1 %vm1489_vm0, %v1487_v1  ;;  %v1483_v2 = vld [vmem:[%s2021_s1 + $0x78] ss:$12 sps:$4 sm:$0xff]  }
 0x609   :  { %967 = vmatpush1.bf16.msra.mxu0 %v1481_v62  ;;  %1346 = vmatpush3.bf16.msra.mxu1 %v1576_v12  ;;  %v1485_v12 = vld [vmem:[%s2021_s1 + $0x60] ss:$12 sps:$4 sm:$0xff]  }
 0x60a   :  { %968 = vmatprep.subr.bf16.mxu0 %v1482_v9  ;;  %1347 = vmatprep.subr.bf16.mxu1 %v1487_v1 }
 0x60d   :  { %969 = vmatpush1.bf16.msra.mxu0 %v1483_v2  ;;  %1348 = vmatpush3.bf16.msra.mxu1 %v1595_v15 }
 0x60e   :  { %970 = vmatprep.subr.bf16.mxu0 %v1484_v63  ;;  %1349 = vmatprep.subr.bf16.mxu1 %v1487_v1 }
 0x611   :  { %971 = vmatpush1.bf16.msra.mxu0 %v1485_v12  ;;  %1350 = vmatpush3.bf16.msra.mxu1 %v1614_v18 }
 0x612   :  { %972 = vmatprep.subr.bf16.mxu0 %v1486_v25  ;;  %1351 = vmatprep.subr.bf16.mxu1 %v1487_v1 }
 0x615   :  { %973 = vmatpush1.bf16.msra.mxu0 %v1582_v13  ;;  %1352 = vmatpush3.bf16.msra.mxu1 %v1633_v21  ;;  %v1123_v13 = vld [vmem:[%s2022_s0 + $0x48] sm:$0xff] }
 0x616   :  { %974 = vmatprep.subr.bf16.mxu0 %v1588_v14  ;;  %1353 = vmatprep.subr.bf16.mxu1 %v1487_v1  ;;  %v850_v14 = vunpack.c.l.bf16 %v1123_v13 }
 0x619   :  { %975 = vmatpush1.bf16.msra.mxu0 %v1602_v16  ;;  %1354 = vmatpush3.bf16.msra.mxu1 %v1647_v23  ;;  %v851_v23 = vunpack.c.h.bf16 %v1123_v13 }
 0x61a   :  { %976 = vmatprep.subr.bf16.mxu0 %v1608_v17  ;;  %1355 = vmatprep.subr.bf16.mxu1 %v1487_v1 }
 0x61d   :  { %977 = vmatpush1.bf16.msra.mxu0 %v1621_v19  ;;  %1356 = vmatpush3.bf16.msra.mxu1 %v1655_v24 }
 0x61e   :  { %978 = vmatprep.subr.bf16.mxu0 %v1627_v20  ;;  %1357 = vmatprep.subr.bf16.mxu1 %v1487_v1 }
 0x621   :  { %979 = vmatpush1.bf16.msra.mxu0 %v1640_v22  ;;  %1358 = vmatpush3.bf16.msra.mxu1 %v1665_v26 }
 0x6c4   :  { %v888_v15 = vpop.f32.mrf.mxu0  ;;  %v929_v16 = vpop.f32.mrf.mxu1 }
 0x6c5   :  { %v935_v17 = vadd.f32 %v888_v15, %v850_v14  ;;  %v949_v35 = vadd.f32 %v1709_v45, %v929_v16 }
 0x6c6   :  { %v890_v18 = vpop.f32.mrf.mxu0  ;;  %v1341_v19 = vpop.f32.mrf.mxu1 }
 0x6c7   :  { %v1125_v21 = vmul.f32 -1.442695, %v935_v17  ;;  %v942_v22 = vadd.f32 %v890_v18, %v851_v23 }
 0x6c8   :  { %v892_v24 = vpop.f32.mrf.mxu0  ;;  %v932_v20 = vpop.f32.mrf.mxu1 }
 0x6c9   :  { %1459 = vpow2.f32 %v1125_v21  ;;  %v1126_v28 = vmul.f32 -1.442695, %v942_v22 }
 0x6ca   :  { %v893_v1 = vpop.f32.mrf.mxu0  ;;  %v1342_v27 = vpop.f32.mrf.mxu1 }
 0x6cb   :  { %1461 = vpow2.f32 %v1126_v28 }
 0x6d6   :  { %v1460_v26 = vpop.eup %1459 }
 0x6d7   :  { %v939_v29 = vadd.f32 1.0, %v1460_v26 }
 0x6d8   :  { %v1462_v30 = vpop.eup %1461 }
 0x6d9   :  { %1463 = vrcp.f32 %v939_v29  ;;  %v946_v32 = vadd.f32 1.0, %v1462_v30 }
 0x6db   :  { %1465 = vrcp.f32 %v946_v32 }
 0x6e6   :  { %v1464_v36 = vpop.eup %1463 }
 0x6e7   :  { %v950_v37 = vmul.f32 %v1464_v36, %v949_v35 }
 0x6e8   :  { %v1466_v4 = vpop.eup %1465 }
 0x6e9   :  { %v951_v3 = vadd.f32 %v950_v37, %v852_v33  ;;  %v953_v5 = vsub.f32 1.0, %v1466_v4  ;;  %v955_v8 = vmul.f32 %v1466_v4, %v1953_v58 }
 0x6eb   :  { %1467 = vtanh.f32 %v951_v3 }
 0x6f8   :  { %v1468_v6 = vpop.eup %1467 }
 0x6f9   :  { %v954_v7 = vmul.f32 %v1468_v6, %v953_v5 }
 0x6fb   :  { %v956_v10 = vadd.f32 %v955_v8, %v954_v7 }
 0x6fd   :  { %v963_v11 = vpack.c.bf16 %v956_v10, %v956_v10 }
 0x6ff   :  { %997 = vmatmul.mubr.bf16.vlgmr.msra.gmra.mxu0 %v963_v11  ;;  %1360 = vmatmul.mubr.bf16.vlgmr.msra.gmra.mxu1 %v963_v11 }
 0x7bf   :  { %v998_v40 = vpop.f32.mrf.mxu0  ;;  %v1039_v41 = vpop.f32.mrf.mxu1 }
 0x7c0   :  { %v1045_v42 = vadd.f32 %v998_v40, %v960_v39  ;;  %v1059_v57 = vadd.f32 %v1709_v45, %v1039_v41 }
 0x7c1   :  { %v1000_v0 = vpop.f32.mrf.mxu0  ;;  %v1361_v34 = vpop.f32.mrf.mxu1 }
 0x7c2   :  { %v1129_v43 = vmul.f32 -1.442695, %v1045_v42  ;;  %v1052_v51 = vadd.f32 %v1000_v0, %v961_v44 }
 0x7c3   :  { %v1002_v47 = vpop.f32.mrf.mxu0  ;;  %v1042_v48 = vpop.f32.mrf.mxu1 }
 0x7c4   :  { %1469 = vpow2.f32 %v1129_v43  ;;  %v1130_v52 = vmul.f32 -1.442695, %v1052_v51 }
 0x7c5   :  { %v1003_v49 = vpop.f32.mrf.mxu0  ;;  %v1362_v50 = vpop.f32.mrf.mxu1 }
 0x7c6   :  { %1471 = vpow2.f32 %v1130_v52 }
 0x7d1   :  { %v1470_v53 = vpop.eup %1469 }
 0x7d2   :  { %v1049_v54 = vadd.f32 1.0, %v1470_v53 }
 0x7d3   :  { %v1472_v46 = vpop.eup %1471 }
 0x7d4   :  { %1473 = vrcp.f32 %v1049_v54  ;;  %v1056_v55 = vadd.f32 1.0, %v1472_v46 }
 0x7d6   :  { %1475 = vrcp.f32 %v1056_v55 }
 0x7e1   :  { %v1474_v58 = vpop.eup %1473 }
 0x7e2   :  { %v1060_v59 = vmul.f32 %v1474_v58, %v1059_v57 }
 0x7e3   :  { %v1476_v61 = vpop.eup %1475 }
 0x7e4   :  { %v1061_v60 = vadd.f32 %v1060_v59, %v962_v56  ;;  %v1063_v62 = vsub.f32 1.0, %v1476_v61  ;;  %v1065_v63 = vmul.f32 %v1476_v61, %v956_v10 }
 0x7e6   :  { %1477 = vtanh.f32 %v1061_v60 }
 0x7f3   :  { %v1478_v9 = vpop.eup %1477 }
 0x7f4   :  { %v1064_v2 = vmul.f32 %v1478_v9, %v1063_v62 }
 0x7f6   :  { %v1066_v12 = vadd.f32 %v1065_v63, %v1064_v2 }
 0x7f8   :  { %1071 = vst [vmem:[%s2024_s3] sm:$0xff] %v1066_v12 }

// kernel: seq2seq_forward.8
= control target key start
LH: loop header
LB: loop body
LE: loop exit
PB: predicated region body
PF: predicated region fallthrough
CT: control target
= control target key end

     0   :  { %v1512_v1 = vmov 0.0   ;;  %v1513_v2 = vmov 0   ;;  %vm1514_vm0 = vmmov 0   ;;  %s2088_s2 = inlined_call_operand.vmem [shape: bf16[128,384], index: 2, kind: input, shape index: {}]   ;;  %s2089_s1 = inlined_call_operand.vmem [shape: f32[8,128], index: 1, kind: input, shape index: {}]   ;;  %s2090_s0 = inlined_call_operand.vmem [shape: bf16[8,8,384], index: 0, kind: input, shape index: {}]   ;;  %s2091_s3 = inlined_call_operand.vmem [shape: f32[1,128], index: 3, kind: input, shape index: {}]   ;;  %s2092_s4 = inlined_call_operand.vmem [shape: bf16[8,8,128], index: 4, kind: output, shape index: {}]  }
   0x1   :  { %v1543_v0 = vld [vmem:[%s2088_s2 + $0xac] ss:$12 sps:$4 sm:$0xff]   ;;  %1226 = vmatprep.subr.bf16.mxu1 %v1512_v1  ;;  %224 = vmatprep.mubr.bf16.mxu0 %v1513_v2  ;;  %v1550_v3 = vld [vmem:[%s2088_s2 + $0xa8] ss:$12 sps:$4 sm:$0xff]   ;;  %v1564_v5 = vld [vmem:[%s2088_s2 + $0x90] ss:$12 sps:$4 sm:$0xff]  }
   0x2   :  { %1242 = vmatprep.mubr.msk.bf16.mxu1 %vm1514_vm0, %v1512_v1  ;;  %192 = vmatprep.subr.bf16.mxu0 %v1543_v0  ;;  %v1558_v4 = vld [vmem:[%s2088_s2 + $0x94] ss:$12 sps:$4 sm:$0xff]   ;;  %v1570_v6 = vld [vmem:[%s2088_s2 + $0x7c] ss:$12 sps:$4 sm:$0xff]   ;;  %v1576_v7 = vld [vmem:[%s2088_s2 + $0x78] ss:$12 sps:$4 sm:$0xff]  }
   0x3   :  { %193 = vmatpush1.bf16.msra.mxu0 %v1550_v3  ;;  %v1582_v8 = vld [vmem:[%s2088_s2 + $0x64] ss:$12 sps:$4 sm:$0xff]   ;;  %v1593_v10 = vld [vmem:[%s2088_s2 + $0x60] ss:$12 sps:$4 sm:$0xff]   ;;  %v1611_v13 = vld [vmem:[%s2088_s2 + $0x48] ss:$12 sps:$4 sm:$0xff]  }
   0x4   :  { %194 = vmatprep.subr.bf16.mxu0 %v1558_v4  ;;  %v1587_v9 = vld [vmem:[%s2088_s2 + $0xb0] ss:$12 sps:$4 sm:$0xff]   ;;  %v1599_v11 = vld [vmem:[%s2088_s2 + $0x4c] ss:$12 sps:$4 sm:$0xff]   ;;  %v1617_v14 = vld [vmem:[%s2088_s2 + $0x34] ss:$12 sps:$4 sm:$0xff]  }
   0x5   :  { %1227 = vmatpush3.bf16.msra.mxu1 %v1587_v9  ;;  %v1605_v12 = vld [vmem:[%s2088_s2 + $0x98] ss:$12 sps:$4 sm:$0xff]   ;;  %v1624_v15 = vld [vmem:[%s2088_s2 + $0x80] ss:$12 sps:$4 sm:$0xff]   ;;  %v1631_v16 = vld [vmem:[%s2088_s2 + $0x30] ss:$12 sps:$4 sm:$0xff]  }
   0x6   :  { %1228 = vmatprep.subr.bf16.mxu1 %v1512_v1  ;;  %v1637_v17 = vld [vmem:[%s2088_s2 + $0x1c] ss:$12 sps:$4 sm:$0xff]   ;;  %v1650_v19 = vld [vmem:[%s2088_s2 + $0x18] ss:$12 sps:$4 sm:$0xff]   ;;  %v1669_v22 = vld [vmem:[%s2088_s2] ss:$12 sps:$4 sm:$0xff]  }
   0x7   :  { %195 = vmatpush1.bf16.msra.mxu0 %v1564_v5  ;;  %v1643_v18 = vld [vmem:[%s2088_s2 + $0x68] ss:$12 sps:$4 sm:$0xff]   ;;  %v1656_v20 = vld [vmem:[%s2088_s2 + $0x4] ss:$12 sps:$4 sm:$0xff]   ;;  %v1691_v26 = vld [vmem:[%s2088_s2 + $0x20] ss:$12 sps:$4 sm:$0xff]  }
   0x8   :  { %196 = vmatprep.subr.bf16.mxu0 %v1570_v6  ;;  %v1662_v21 = vld [vmem:[%s2088_s2 + $0x50] ss:$12 sps:$4 sm:$0xff]   ;;  %v1674_v23 = vld [vmem:[%s2089_s1] sm:$0xff]  ;;  %v1701_v27 = vld [vmem:[%s2088_s2 + $0x8] ss:$12 sps:$4 sm:$0xff]  }
   0x9   :  { %1229 = vmatpush3.bf16.msra.mxu1 %v1605_v12  ;;  %v1681_v24 = vld [vmem:[%s2088_s2 + $0x38] ss:$12 sps:$4 sm:$0xff]   ;;  %v63_v25 = vpack.c.bf16 %v1674_v23, %v1674_v23  ;;  %v1745_v46 = vld [vmem:[%s2091_s3] ss:$0 sm:$0xff]  ;;  %v59_v47 = vld [vmem:[%s2090_s0 + $0x8] sm:$0xf] }
   0xa   :  { %1230 = vmatprep.subr.bf16.mxu1 %v1512_v1  ;;  %v58_v28 = vld [vmem:[%s2090_s0] sm:$0xff]  ;;  %v62_v50 = vunpack.c.l.bf16 %v59_v47  ;;  %v1119_v61 = vld [vmem:[%s2090_s0 + $0xc] sm:$0xff] }
   0xb   :  { %197 = vmatpush1.bf16.msra.mxu0 %v1576_v7  ;;  %v60_v29 = vunpack.c.l.bf16 %v58_v28  ;;  %v61_v34 = vunpack.c.h.bf16 %v58_v28  ;;  %v306_v62 = vunpack.c.l.bf16 %v1119_v61 }
   0xc   :  { %198 = vmatprep.subr.bf16.mxu0 %v1582_v8 }
   0xd   :  { %1231 = vmatpush3.bf16.msra.mxu1 %v1624_v15 }
   0xe   :  { %1232 = vmatprep.subr.bf16.mxu1 %v1512_v1 }
   0xf   :  { %199 = vmatpush1.bf16.msra.mxu0 %v1593_v10 }
  0x10   :  { %200 = vmatprep.subr.bf16.mxu0 %v1599_v11 }
  0x11   :  { %1233 = vmatpush3.bf16.msra.mxu1 %v1643_v18 }
  0x12   :  { %1234 = vmatprep.subr.bf16.mxu1 %v1512_v1 }
  0x13   :  { %201 = vmatpush1.bf16.msra.mxu0 %v1611_v13 }
  0x14   :  { %202 = vmatprep.subr.bf16.mxu0 %v1617_v14 }
  0x15   :  { %1235 = vmatpush3.bf16.msra.mxu1 %v1662_v21 }
  0x16   :  { %1236 = vmatprep.subr.bf16.mxu1 %v1512_v1 }
  0x17   :  { %203 = vmatpush1.bf16.msra.mxu0 %v1631_v16 }
  0x18   :  { %204 = vmatprep.subr.bf16.mxu0 %v1637_v17 }
  0x19   :  { %1237 = vmatpush3.bf16.msra.mxu1 %v1681_v24 }
  0x1a   :  { %1238 = vmatprep.subr.bf16.mxu1 %v1512_v1 }
  0x1b   :  { %205 = vmatpush1.bf16.msra.mxu0 %v1650_v19 }
  0x1c   :  { %206 = vmatprep.subr.bf16.mxu0 %v1656_v20 }
  0x1d   :  { %1239 = vmatpush3.bf16.msra.mxu1 %v1691_v26 }
  0x1e   :  { %1240 = vmatprep.subr.bf16.mxu1 %v1512_v1 }
  0x1f   :  { %207 = vmatpush1.bf16.msra.mxu0 %v1669_v22 }
  0x20   :  { %309 = vmatprep.subr.bf16.mxu0 %v1543_v0 }
  0x21   :  { %1241 = vmatpush3.bf16.msra.mxu1 %v1701_v27 }
  0x22   :  { %225 = vmatmul.mubr.bf16.vlgmr.msra.gmra.mxu0 %v63_v25  ;;  %1246 = vmatprep.subr.bf16.mxu1 %v1512_v1 }
  0x23   :  { %310 = vmatpush1.bf16.msra.mxu0 %v1550_v3  ;;  %341 = vmatprep.mubr.bf16.mxu0 %v1513_v2 }
  0x24   :  { %311 = vmatprep.subr.bf16.mxu0 %v1558_v4  ;;  %1243 = vmatmul.mubr.bf16.vlgmr.msra.gmra.mxu1 %v63_v25 }
  0x25   :  { %1247 = vmatpush3.bf16.msra.mxu1 %v1587_v9  ;;  %1262 = vmatprep.mubr.msk.bf16.mxu1 %vm1514_vm0, %v1512_v1 }
  0x26   :  { %1248 = vmatprep.subr.bf16.mxu1 %v1512_v1 }
  0x27   :  { %312 = vmatpush1.bf16.msra.mxu0 %v1564_v5 }
  0x28   :  { %313 = vmatprep.subr.bf16.mxu0 %v1570_v6 }
  0x29   :  { %1249 = vmatpush3.bf16.msra.mxu1 %v1605_v12 }
  0x2a   :  { %1250 = vmatprep.subr.bf16.mxu1 %v1512_v1 }
  0x2b   :  { %314 = vmatpush1.bf16.msra.mxu0 %v1576_v7 }
  0x2c   :  { %315 = vmatprep.subr.bf16.mxu0 %v1582_v8 }
  0x2d   :  { %1251 = vmatpush3.bf16.msra.mxu1 %v1624_v15 }
  0x2e   :  { %1252 = vmatprep.subr.bf16.mxu1 %v1512_v1 }
  0x2f   :  { %316 = vmatpush1.bf16.msra.mxu0 %v1593_v10 }
  0x30   :  { %317 = vmatprep.subr.bf16.mxu0 %v1599_v11 }
  0x31   :  { %1253 = vmatpush3.bf16.msra.mxu1 %v1643_v18 }
  0x32   :  { %1254 = vmatprep.subr.bf16.mxu1 %v1512_v1 }
  0x33   :  { %318 = vmatpush1.bf16.msra.mxu0 %v1611_v13 }
  0x34   :  { %319 = vmatprep.subr.bf16.mxu0 %v1617_v14 }
  0x35   :  { %1255 = vmatpush3.bf16.msra.mxu1 %v1662_v21 }
  0x36   :  { %1256 = vmatprep.subr.bf16.mxu1 %v1512_v1 }
  0x37   :  { %320 = vmatpush1.bf16.msra.mxu0 %v1631_v16 }
  0x38   :  { %321 = vmatprep.subr.bf16.mxu0 %v1637_v17 }
  0x39   :  { %1257 = vmatpush3.bf16.msra.mxu1 %v1681_v24 }
  0x3a   :  { %1258 = vmatprep.subr.bf16.mxu1 %v1512_v1 }
  0x3b   :  { %322 = vmatpush1.bf16.msra.mxu0 %v1650_v19 }
  0x3c   :  { %323 = vmatprep.subr.bf16.mxu0 %v1656_v20 }
  0x3d   :  { %1259 = vmatpush3.bf16.msra.mxu1 %v1691_v26 }
  0x3e   :  { %1260 = vmatprep.subr.bf16.mxu1 %v1512_v1 }
  0x3f   :  { %324 = vmatpush1.bf16.msra.mxu0 %v1669_v22 }
  0x40   :  { %421 = vmatprep.subr.bf16.mxu0 %v1543_v0 }
  0x41   :  { %1261 = vmatpush3.bf16.msra.mxu1 %v1701_v27 }
  0x42   :  { %1266 = vmatprep.subr.bf16.mxu1 %v1512_v1 }
  0xe2   :  { %v226_v30 = vpop.f32.mrf.mxu0 }
  0xe3   :  { %v273_v31 = vadd.f32 %v226_v30, %v60_v29 }
  0xe4   :  { %v228_v32 = vpop.f32.mrf.mxu0  ;;  %v267_v38 = vpop.f32.mrf.mxu1 }
  0xe5   :  { %v1116_v33 = vmul.f32 -1.442695, %v273_v31  ;;  %v280_v37 = vadd.f32 %v228_v32, %v61_v34  ;;  %v293_v49 = vadd.f32 %v1745_v46, %v267_v38  ;;  %v307_v31 = vunpack.c.h.bf16 %v1119_v61 }
  0xe6   :  { %v230_v35 = vpop.f32.mrf.mxu0  ;;  %v1244_v40 = vpop.f32.mrf.mxu1 }
  0xe7   :  { %1421 = vpow2.f32 %v1116_v33  ;;  %v1117_v39 = vmul.f32 -1.442695, %v280_v37 }
  0xe8   :  { %v231_v36 = vpop.f32.mrf.mxu0  ;;  %v270_v41 = vpop.f32.mrf.mxu1 }
  0xe9   :  { %1423 = vpow2.f32 %v1117_v39  ;;  %v1800_v41 = vld [vmem:[%s2090_s0 + $0x14] ss:$12 sps:$4 sm:$0xff]  }
  0xea   :  { %v1245_v42 = vpop.f32.mrf.mxu1 }
  0xf4   :  { %v1422_v43 = vpop.eup %1421 }
  0xf5   :  { %v277_v44 = vadd.f32 1.0, %v1422_v43  ;;  %v308_v43 = vunpack.c.l.bf16 %v1800_v41 }
  0xf6   :  { %v1424_v45 = vpop.eup %1423 }
  0xf7   :  { %1425 = vrcp.f32 %v277_v44  ;;  %v284_v48 = vadd.f32 1.0, %v1424_v45 }
  0xf9   :  { %1427 = vrcp.f32 %v284_v48 }
 0x104   :  { %v1426_v51 = vpop.eup %1425 }
 0x105   :  { %v294_v52 = vmul.f32 %v1426_v51, %v293_v49 }
 0x106   :  { %v1428_v54 = vpop.eup %1427 }
 0x107   :  { %v295_v53 = vadd.f32 %v294_v52, %v62_v50  ;;  %v297_v55 = vsub.f32 1.0, %v1428_v54  ;;  %v299_v58 = vmul.f32 %v1428_v54, %v1674_v23 }
 0x109   :  { %1429 = vtanh.f32 %v295_v53 }
 0x116   :  { %v1430_v56 = vpop.eup %1429 }
 0x117   :  { %v298_v57 = vmul.f32 %v1430_v56, %v297_v55  ;;  %v1124_v56 = vld [vmem:[%s2090_s0 + $0x18] sm:$0xff] }
 0x119   :  { %v1752_v59 = vadd.f32 %v299_v58, %v298_v57  ;;  %v418_v57 = vunpack.c.l.bf16 %v1124_v56 }
 0x11b   :  { %v301_v60 = vpack.c.bf16 %v1752_v59, %v1752_v59 }
 0x11d   :  { %302 = vst [vmem:[%s2092_s4] sm:$0xf] %v301_v60  ;;  %342 = vmatmul.mubr.bf16.vlgmr.msra.gmra.mxu0 %v301_v60  ;;  %1263 = vmatmul.mubr.bf16.vlgmr.msra.gmra.mxu1 %v301_v60 }
 0x11e   :  { %422 = vmatpush1.bf16.msra.mxu0 %v1550_v3  ;;  %1267 = vmatpush3.bf16.msra.mxu1 %v1587_v9 }
 0x11f   :  { %423 = vmatprep.subr.bf16.mxu0 %v1558_v4  ;;  %1268 = vmatprep.subr.bf16.mxu1 %v1512_v1 }
 0x120   :  { %453 = vmatprep.mubr.bf16.mxu0 %v1513_v2  ;;  %1282 = vmatprep.mubr.msk.bf16.mxu1 %vm1514_vm0, %v1512_v1 }
 0x122   :  { %424 = vmatpush1.bf16.msra.mxu0 %v1564_v5  ;;  %1269 = vmatpush3.bf16.msra.mxu1 %v1605_v12 }
 0x123   :  { %425 = vmatprep.subr.bf16.mxu0 %v1570_v6  ;;  %1270 = vmatprep.subr.bf16.mxu1 %v1512_v1 }
 0x126   :  { %426 = vmatpush1.bf16.msra.mxu0 %v1576_v7  ;;  %1271 = vmatpush3.bf16.msra.mxu1 %v1624_v15 }
 0x127   :  { %427 = vmatprep.subr.bf16.mxu0 %v1582_v8  ;;  %1272 = vmatprep.subr.bf16.mxu1 %v1512_v1 }
 0x12a   :  { %428 = vmatpush1.bf16.msra.mxu0 %v1593_v10  ;;  %1273 = vmatpush3.bf16.msra.mxu1 %v1643_v18 }
 0x12b   :  { %429 = vmatprep.subr.bf16.mxu0 %v1599_v11  ;;  %1274 = vmatprep.subr.bf16.mxu1 %v1512_v1 }
 0x12e   :  { %430 = vmatpush1.bf16.msra.mxu0 %v1611_v13  ;;  %1275 = vmatpush3.bf16.msra.mxu1 %v1662_v21 }
 0x12f   :  { %431 = vmatprep.subr.bf16.mxu0 %v1617_v14  ;;  %1276 = vmatprep.subr.bf16.mxu1 %v1512_v1 }
 0x132   :  { %432 = vmatpush1.bf16.msra.mxu0 %v1631_v16  ;;  %1277 = vmatpush3.bf16.msra.mxu1 %v1681_v24 }
 0x133   :  { %433 = vmatprep.subr.bf16.mxu0 %v1637_v17  ;;  %1278 = vmatprep.subr.bf16.mxu1 %v1512_v1 }
 0x136   :  { %434 = vmatpush1.bf16.msra.mxu0 %v1650_v19  ;;  %1279 = vmatpush3.bf16.msra.mxu1 %v1691_v26 }
 0x137   :  { %435 = vmatprep.subr.bf16.mxu0 %v1656_v20  ;;  %1280 = vmatprep.subr.bf16.mxu1 %v1512_v1 }
 0x13a   :  { %436 = vmatpush1.bf16.msra.mxu0 %v1669_v22  ;;  %1281 = vmatpush3.bf16.msra.mxu1 %v1701_v27 }
 0x13b   :  { %533 = vmatprep.subr.bf16.mxu0 %v1543_v0  ;;  %1286 = vmatprep.subr.bf16.mxu1 %v1512_v1 }
 0x1dd   :  { %v343_v63 = vpop.f32.mrf.mxu0  ;;  %v384_v23 = vpop.f32.mrf.mxu1 }
 0x1de   :  { %v390_v25 = vadd.f32 %v343_v63, %v306_v62  ;;  %v404_v44 = vadd.f32 %v1745_v46, %v384_v23  ;;  %v419_v23 = vunpack.c.h.bf16 %v1124_v56 }
 0x1df   :  { %v345_v28 = vpop.f32.mrf.mxu0  ;;  %v1264_v29 = vpop.f32.mrf.mxu1 }
 0x1e0   :  { %v1121_v30 = vmul.f32 -1.442695, %v390_v25  ;;  %v397_v36 = vadd.f32 %v345_v28, %v307_v31 }
 0x1e1   :  { %v347_v32 = vpop.f32.mrf.mxu0  ;;  %v387_v33 = vpop.f32.mrf.mxu1 }
 0x1e2   :  { %1431 = vpow2.f32 %v1121_v30  ;;  %v1122_v37 = vmul.f32 -1.442695, %v397_v36 }
 0x1e3   :  { %v348_v34 = vpop.f32.mrf.mxu0  ;;  %v1265_v35 = vpop.f32.mrf.mxu1 }
 0x1e4   :  { %1433 = vpow2.f32 %v1122_v37  ;;  %v420_v37 = vunpack.c.h.bf16 %v1800_v41  ;;  %v1129_v41 = vld [vmem:[%s2090_s0 + $0x24] sm:$0xff] }
 0x1ef   :  { %v1432_v38 = vpop.eup %1431 }
 0x1f0   :  { %v394_v39 = vadd.f32 1.0, %v1432_v38 }
 0x1f1   :  { %v1434_v40 = vpop.eup %1433 }
 0x1f2   :  { %1435 = vrcp.f32 %v394_v39  ;;  %v401_v42 = vadd.f32 1.0, %v1434_v40 }
 0x1f4   :  { %1437 = vrcp.f32 %v401_v42 }
 0x1ff   :  { %v1436_v45 = vpop.eup %1435 }
 0x200   :  { %v405_v47 = vmul.f32 %v1436_v45, %v404_v44 }
 0x201   :  { %v1438_v49 = vpop.eup %1437 }
 0x202   :  { %v406_v48 = vadd.f32 %v405_v47, %v308_v43  ;;  %v408_v50 = vsub.f32 1.0, %v1438_v49  ;;  %v410_v53 = vmul.f32 %v1438_v49, %v1752_v59 }
 0x204   :  { %1439 = vtanh.f32 %v406_v48 }
 0x211   :  { %v1440_v51 = vpop.eup %1439 }
 0x212   :  { %v409_v52 = vmul.f32 %v1440_v51, %v408_v50  ;;  %v530_v51 = vunpack.c.l.bf16 %v1129_v41 }
 0x214   :  { %v1805_v54 = vadd.f32 %v410_v53, %v409_v52 }
 0x216   :  { %v412_v55 = vpack.c.bf16 %v1805_v54, %v1805_v54 }
 0x218   :  { %1123 = vst [vmem:[%s2092_s4 + $0x4] sm:$0xf] %v412_v55  ;;  %454 = vmatmul.mubr.bf16.vlgmr.msra.gmra.mxu0 %v412_v55  ;;  %1283 = vmatmul.mubr.bf16.vlgmr.msra.gmra.mxu1 %v412_v55 }
 0x219   :  { %534 = vmatpush1.bf16.msra.mxu0 %v1550_v3  ;;  %1287 = vmatpush3.bf16.msra.mxu1 %v1587_v9 }
 0x21a   :  { %535 = vmatprep.subr.bf16.mxu0 %v1558_v4  ;;  %1288 = vmatprep.subr.bf16.mxu1 %v1512_v1 }
 0x21b   :  { %565 = vmatprep.mubr.bf16.mxu0 %v1513_v2  ;;  %1302 = vmatprep.mubr.msk.bf16.mxu1 %vm1514_vm0, %v1512_v1 }
 0x21d   :  { %536 = vmatpush1.bf16.msra.mxu0 %v1564_v5  ;;  %1289 = vmatpush3.bf16.msra.mxu1 %v1605_v12 }
 0x21e   :  { %537 = vmatprep.subr.bf16.mxu0 %v1570_v6  ;;  %1290 = vmatprep.subr.bf16.mxu1 %v1512_v1 }
 0x221   :  { %538 = vmatpush1.bf16.msra.mxu0 %v1576_v7  ;;  %1291 = vmatpush3.bf16.msra.mxu1 %v1624_v15 }
 0x222   :  { %539 = vmatprep.subr.bf16.mxu0 %v1582_v8  ;;  %1292 = vmatprep.subr.bf16.mxu1 %v1512_v1 }
 0x225   :  { %540 = vmatpush1.bf16.msra.mxu0 %v1593_v10  ;;  %1293 = vmatpush3.bf16.msra.mxu1 %v1643_v18 }
 0x226   :  { %541 = vmatprep.subr.bf16.mxu0 %v1599_v11  ;;  %1294 = vmatprep.subr.bf16.mxu1 %v1512_v1 }
 0x229   :  { %542 = vmatpush1.bf16.msra.mxu0 %v1611_v13  ;;  %1295 = vmatpush3.bf16.msra.mxu1 %v1662_v21 }
 0x22a   :  { %543 = vmatprep.subr.bf16.mxu0 %v1617_v14  ;;  %1296 = vmatprep.subr.bf16.mxu1 %v1512_v1 }
 0x22d   :  { %544 = vmatpush1.bf16.msra.mxu0 %v1631_v16  ;;  %1297 = vmatpush3.bf16.msra.mxu1 %v1681_v24 }
 0x22e   :  { %545 = vmatprep.subr.bf16.mxu0 %v1637_v17  ;;  %1298 = vmatprep.subr.bf16.mxu1 %v1512_v1 }
 0x231   :  { %546 = vmatpush1.bf16.msra.mxu0 %v1650_v19  ;;  %1299 = vmatpush3.bf16.msra.mxu1 %v1691_v26 }
 0x232   :  { %547 = vmatprep.subr.bf16.mxu0 %v1656_v20  ;;  %1300 = vmatprep.subr.bf16.mxu1 %v1512_v1 }
 0x235   :  { %548 = vmatpush1.bf16.msra.mxu0 %v1669_v22  ;;  %1301 = vmatpush3.bf16.msra.mxu1 %v1701_v27 }
 0x236   :  { %645 = vmatprep.subr.bf16.mxu0 %v1543_v0  ;;  %1306 = vmatprep.subr.bf16.mxu1 %v1512_v1 }
 0x2d8   :  { %v455_v58 = vpop.f32.mrf.mxu0  ;;  %v496_v59 = vpop.f32.mrf.mxu1 }
 0x2d9   :  { %v502_v60 = vadd.f32 %v455_v58, %v418_v57  ;;  %v516_v38 = vadd.f32 %v1745_v46, %v496_v59  ;;  %v531_v58 = vunpack.c.h.bf16 %v1129_v41 }
 0x2da   :  { %v457_v61 = vpop.f32.mrf.mxu0  ;;  %v1284_v62 = vpop.f32.mrf.mxu1 }
 0x2db   :  { %v1126_v63 = vmul.f32 -1.442695, %v502_v60  ;;  %v509_v31 = vadd.f32 %v457_v61, %v419_v23 }
 0x2dc   :  { %v459_v25 = vpop.f32.mrf.mxu0  ;;  %v499_v28 = vpop.f32.mrf.mxu1 }
 0x2dd   :  { %1441 = vpow2.f32 %v1126_v63  ;;  %v1127_v32 = vmul.f32 -1.442695, %v509_v31 }
 0x2de   :  { %v460_v29 = vpop.f32.mrf.mxu0  ;;  %v1285_v30 = vpop.f32.mrf.mxu1 }
 0x2df   :  { %1443 = vpow2.f32 %v1127_v32  ;;  %v1901_v30 = vld [vmem:[%s2090_s0 + $0x2c] ss:$12 sps:$4 sm:$0xff]  }
 0x2e0   :  { %v532_v32 = vunpack.c.l.bf16 %v1901_v30 }
 0x2ea   :  { %v1442_v33 = vpop.eup %1441 }
 0x2eb   :  { %v506_v34 = vadd.f32 1.0, %v1442_v33 }
 0x2ec   :  { %v1444_v35 = vpop.eup %1443 }
 0x2ed   :  { %1445 = vrcp.f32 %v506_v34  ;;  %v513_v36 = vadd.f32 1.0, %v1444_v35 }
 0x2ef   :  { %1447 = vrcp.f32 %v513_v36 }
 0x2fa   :  { %v1446_v39 = vpop.eup %1445 }
 0x2fb   :  { %v517_v40 = vmul.f32 %v1446_v39, %v516_v38 }
 0x2fc   :  { %v1448_v43 = vpop.eup %1447 }
 0x2fd   :  { %v518_v42 = vadd.f32 %v517_v40, %v420_v37  ;;  %v520_v44 = vsub.f32 1.0, %v1448_v43  ;;  %v522_v48 = vmul.f32 %v1448_v43, %v1805_v54 }
 0x2ff   :  { %1449 = vtanh.f32 %v518_v42 }
 0x30c   :  { %v1450_v45 = vpop.eup %1449 }
 0x30d   :  { %v521_v47 = vmul.f32 %v1450_v45, %v520_v44  ;;  %v1134_v45 = vld [vmem:[%s2090_s0 + $0x30] sm:$0xff] }
 0x30f   :  { %v1853_v49 = vadd.f32 %v522_v48, %v521_v47  ;;  %v642_v47 = vunpack.c.l.bf16 %v1134_v45 }
 0x311   :  { %v524_v50 = vpack.c.bf16 %v1853_v49, %v1853_v49 }
 0x313   :  { %1128 = vst [vmem:[%s2092_s4 + $0x8] sm:$0xf] %v524_v50  ;;  %566 = vmatmul.mubr.bf16.vlgmr.msra.gmra.mxu0 %v524_v50  ;;  %1303 = vmatmul.mubr.bf16.vlgmr.msra.gmra.mxu1 %v524_v50 }
 0x314   :  { %646 = vmatpush1.bf16.msra.mxu0 %v1550_v3  ;;  %1307 = vmatpush3.bf16.msra.mxu1 %v1587_v9 }
 0x315   :  { %647 = vmatprep.subr.bf16.mxu0 %v1558_v4  ;;  %1308 = vmatprep.subr.bf16.mxu1 %v1512_v1 }
 0x316   :  { %677 = vmatprep.mubr.bf16.mxu0 %v1513_v2  ;;  %1322 = vmatprep.mubr.msk.bf16.mxu1 %vm1514_vm0, %v1512_v1 }
 0x318   :  { %648 = vmatpush1.bf16.msra.mxu0 %v1564_v5  ;;  %1309 = vmatpush3.bf16.msra.mxu1 %v1605_v12 }
 0x319   :  { %649 = vmatprep.subr.bf16.mxu0 %v1570_v6  ;;  %1310 = vmatprep.subr.bf16.mxu1 %v1512_v1 }
 0x31c   :  { %650 = vmatpush1.bf16.msra.mxu0 %v1576_v7  ;;  %1311 = vmatpush3.bf16.msra.mxu1 %v1624_v15 }
 0x31d   :  { %651 = vmatprep.subr.bf16.mxu0 %v1582_v8  ;;  %1312 = vmatprep.subr.bf16.mxu1 %v1512_v1 }
 0x320   :  { %652 = vmatpush1.bf16.msra.mxu0 %v1593_v10  ;;  %1313 = vmatpush3.bf16.msra.mxu1 %v1643_v18 }
 0x321   :  { %653 = vmatprep.subr.bf16.mxu0 %v1599_v11  ;;  %1314 = vmatprep.subr.bf16.mxu1 %v1512_v1 }
 0x324   :  { %654 = vmatpush1.bf16.msra.mxu0 %v1611_v13  ;;  %1315 = vmatpush3.bf16.msra.mxu1 %v1662_v21 }
 0x325   :  { %655 = vmatprep.subr.bf16.mxu0 %v1617_v14  ;;  %1316 = vmatprep.subr.bf16.mxu1 %v1512_v1 }
 0x328   :  { %656 = vmatpush1.bf16.msra.mxu0 %v1631_v16  ;;  %1317 = vmatpush3.bf16.msra.mxu1 %v1681_v24 }
 0x329   :  { %657 = vmatprep.subr.bf16.mxu0 %v1637_v17  ;;  %1318 = vmatprep.subr.bf16.mxu1 %v1512_v1 }
 0x32c   :  { %658 = vmatpush1.bf16.msra.mxu0 %v1650_v19  ;;  %1319 = vmatpush3.bf16.msra.mxu1 %v1691_v26 }
 0x32d   :  { %659 = vmatprep.subr.bf16.mxu0 %v1656_v20  ;;  %1320 = vmatprep.subr.bf16.mxu1 %v1512_v1 }
 0x330   :  { %660 = vmatpush1.bf16.msra.mxu0 %v1669_v22  ;;  %1321 = vmatpush3.bf16.msra.mxu1 %v1701_v27 }
 0x331   :  { %757 = vmatprep.subr.bf16.mxu0 %v1543_v0  ;;  %1326 = vmatprep.subr.bf16.mxu1 %v1512_v1 }
 0x3d3   :  { %v567_v52 = vpop.f32.mrf.mxu0  ;;  %v608_v53 = vpop.f32.mrf.mxu1 }
 0x3d4   :  { %v614_v54 = vadd.f32 %v567_v52, %v530_v51  ;;  %v628_v33 = vadd.f32 %v1745_v46, %v608_v53  ;;  %v643_v53 = vunpack.c.h.bf16 %v1134_v45  ;;  %v2002_v45 = vld [vmem:[%s2090_s0 + $0x44] ss:$12 sps:$4 sm:$0xff]  }
 0x3d5   :  { %v569_v55 = vpop.f32.mrf.mxu0  ;;  %v1304_v56 = vpop.f32.mrf.mxu1 }
 0x3d6   :  { %v1131_v57 = vmul.f32 -1.442695, %v614_v54  ;;  %v621_v63 = vadd.f32 %v569_v55, %v531_v58 }
 0x3d7   :  { %v571_v59 = vpop.f32.mrf.mxu0  ;;  %v611_v60 = vpop.f32.mrf.mxu1 }
 0x3d8   :  { %1451 = vpow2.f32 %v1131_v57  ;;  %v1132_v23 = vmul.f32 -1.442695, %v621_v63 }
 0x3d9   :  { %v572_v61 = vpop.f32.mrf.mxu0  ;;  %v1305_v62 = vpop.f32.mrf.mxu1 }
 0x3da   :  { %1453 = vpow2.f32 %v1132_v23  ;;  %v644_v23 = vunpack.c.h.bf16 %v1901_v30 }
 0x3e5   :  { %v1452_v25 = vpop.eup %1451 }
 0x3e6   :  { %v618_v28 = vadd.f32 1.0, %v1452_v25 }
 0x3e7   :  { %v1454_v29 = vpop.eup %1453 }
 0x3e8   :  { %1455 = vrcp.f32 %v618_v28  ;;  %v625_v31 = vadd.f32 1.0, %v1454_v29 }
 0x3ea   :  { %1457 = vrcp.f32 %v625_v31 }
 0x3f5   :  { %v1456_v34 = vpop.eup %1455 }
 0x3f6   :  { %v629_v35 = vmul.f32 %v1456_v34, %v628_v33 }
 0x3f7   :  { %v1458_v37 = vpop.eup %1457 }
 0x3f8   :  { %v630_v36 = vadd.f32 %v629_v35, %v532_v32  ;;  %v632_v38 = vsub.f32 1.0, %v1458_v37  ;;  %v634_v42 = vmul.f32 %v1458_v37, %v1853_v49 }
 0x3fa   :  { %1459 = vtanh.f32 %v630_v36 }
 0x407   :  { %v1460_v39 = vpop.eup %1459 }
 0x408   :  { %v633_v40 = vmul.f32 %v1460_v39, %v632_v38 }
 0x40a   :  { %v1906_v43 = vadd.f32 %v634_v42, %v633_v40 }
 0x40c   :  { %v636_v44 = vpack.c.bf16 %v1906_v43, %v1906_v43 }
 0x40e   :  { %1133 = vst [vmem:[%s2092_s4 + $0xc] sm:$0xf] %v636_v44  ;;  %678 = vmatmul.mubr.bf16.vlgmr.msra.gmra.mxu0 %v636_v44  ;;  %1323 = vmatmul.mubr.bf16.vlgmr.msra.gmra.mxu1 %v636_v44 }
 0x40f   :  { %758 = vmatpush1.bf16.msra.mxu0 %v1550_v3  ;;  %1327 = vmatpush3.bf16.msra.mxu1 %v1587_v9 }
 0x410   :  { %759 = vmatprep.subr.bf16.mxu0 %v1558_v4  ;;  %1328 = vmatprep.subr.bf16.mxu1 %v1512_v1 }
 0x411   :  { %789 = vmatprep.mubr.bf16.mxu0 %v1513_v2  ;;  %1342 = vmatprep.mubr.msk.bf16.mxu1 %vm1514_vm0, %v1512_v1 }
 0x413   :  { %760 = vmatpush1.bf16.msra.mxu0 %v1564_v5  ;;  %1329 = vmatpush3.bf16.msra.mxu1 %v1605_v12 }
 0x414   :  { %761 = vmatprep.subr.bf16.mxu0 %v1570_v6  ;;  %1330 = vmatprep.subr.bf16.mxu1 %v1512_v1 }
 0x417   :  { %762 = vmatpush1.bf16.msra.mxu0 %v1576_v7  ;;  %1331 = vmatpush3.bf16.msra.mxu1 %v1624_v15 }
 0x418   :  { %763 = vmatprep.subr.bf16.mxu0 %v1582_v8  ;;  %1332 = vmatprep.subr.bf16.mxu1 %v1512_v1 }
 0x41b   :  { %764 = vmatpush1.bf16.msra.mxu0 %v1593_v10  ;;  %1333 = vmatpush3.bf16.msra.mxu1 %v1643_v18 }
 0x41c   :  { %765 = vmatprep.subr.bf16.mxu0 %v1599_v11  ;;  %1334 = vmatprep.subr.bf16.mxu1 %v1512_v1 }
 0x41f   :  { %766 = vmatpush1.bf16.msra.mxu0 %v1611_v13  ;;  %1335 = vmatpush3.bf16.msra.mxu1 %v1662_v21 }
 0x420   :  { %767 = vmatprep.subr.bf16.mxu0 %v1617_v14  ;;  %1336 = vmatprep.subr.bf16.mxu1 %v1512_v1 }
 0x423   :  { %768 = vmatpush1.bf16.msra.mxu0 %v1631_v16  ;;  %1337 = vmatpush3.bf16.msra.mxu1 %v1681_v24 }
 0x424   :  { %769 = vmatprep.subr.bf16.mxu0 %v1637_v17  ;;  %1338 = vmatprep.subr.bf16.mxu1 %v1512_v1 }
 0x427   :  { %770 = vmatpush1.bf16.msra.mxu0 %v1650_v19  ;;  %1339 = vmatpush3.bf16.msra.mxu1 %v1691_v26 }
 0x428   :  { %771 = vmatprep.subr.bf16.mxu0 %v1656_v20  ;;  %1340 = vmatprep.subr.bf16.mxu1 %v1512_v1 }
 0x42b   :  { %772 = vmatpush1.bf16.msra.mxu0 %v1669_v22  ;;  %1341 = vmatpush3.bf16.msra.mxu1 %v1701_v27 }
 0x42c   :  { %869 = vmatprep.subr.bf16.mxu0 %v1543_v0  ;;  %1346 = vmatprep.subr.bf16.mxu1 %v1512_v1 }
 0x4ce   :  { %v679_v48 = vpop.f32.mrf.mxu0  ;;  %v720_v49 = vpop.f32.mrf.mxu1 }
 0x4cf   :  { %v726_v50 = vadd.f32 %v679_v48, %v642_v47  ;;  %v740_v25 = vadd.f32 %v1745_v46, %v720_v49  ;;  %v756_v48 = vunpack.c.l.bf16 %v2002_v45 }
 0x4d0   :  { %v681_v41 = vpop.f32.mrf.mxu0  ;;  %v1324_v51 = vpop.f32.mrf.mxu1 }
 0x4d1   :  { %v1136_v52 = vmul.f32 -1.442695, %v726_v50  ;;  %v733_v58 = vadd.f32 %v681_v41, %v643_v53 }
 0x4d2   :  { %v683_v54 = vpop.f32.mrf.mxu0  ;;  %v723_v55 = vpop.f32.mrf.mxu1 }
 0x4d3   :  { %1461 = vpow2.f32 %v1136_v52  ;;  %v1137_v59 = vmul.f32 -1.442695, %v733_v58 }
 0x4d4   :  { %v684_v56 = vpop.f32.mrf.mxu0  ;;  %v1325_v57 = vpop.f32.mrf.mxu1 }
 0x4d5   :  { %1463 = vpow2.f32 %v1137_v59  ;;  %v1501_v59 = vld [vmem:[%s2088_s2 + $0xa8] ss:$12 sps:$4 sm:$0xff]  }
 0x4e0   :  { %v1462_v60 = vpop.eup %1461 }
 0x4e1   :  { %v730_v61 = vadd.f32 1.0, %v1462_v60  ;;  %v1502_v60 = vld [vmem:[%s2088_s2 + $0xb0] ss:$12 sps:$4 sm:$0xff]  }
 0x4e2   :  { %v1464_v62 = vpop.eup %1463 }
 0x4e3   :  { %1465 = vrcp.f32 %v730_v61  ;;  %v737_v63 = vadd.f32 1.0, %v1464_v62  ;;  %v1503_v61 = vld [vmem:[%s2088_s2 + $0x94] ss:$12 sps:$4 sm:$0xff]   ;;  %v1504_v62 = vld [vmem:[%s2088_s2 + $0x90] ss:$12 sps:$4 sm:$0xff]  }
 0x4e5   :  { %1467 = vrcp.f32 %v737_v63  ;;  %v1505_v63 = vld [vmem:[%s2088_s2 + $0x7c] ss:$12 sps:$4 sm:$0xff]  }
 0x4f0   :  { %v1466_v28 = vpop.eup %1465 }
 0x4f1   :  { %v741_v29 = vmul.f32 %v1466_v28, %v740_v25  ;;  %v1509_v25 = vld [vmem:[%s2088_s2 + $0x4c] ss:$12 sps:$4 sm:$0xff]   ;;  %v1511_v28 = vld [vmem:[%s2088_s2 + $0x34] ss:$12 sps:$4 sm:$0xff]  }
 0x4f2   :  { %v1468_v32 = vpop.eup %1467 }
 0x4f3   :  { %v742_v31 = vadd.f32 %v741_v29, %v644_v23  ;;  %v744_v33 = vsub.f32 1.0, %v1468_v32  ;;  %v746_v36 = vmul.f32 %v1468_v32, %v1906_v43  ;;  %v1507_v23 = vld [vmem:[%s2088_s2 + $0x64] ss:$12 sps:$4 sm:$0xff]  }
 0x4f5   :  { %1469 = vtanh.f32 %v742_v31 }
 0x502   :  { %v1470_v34 = vpop.eup %1469 }
 0x503   :  { %v745_v35 = vmul.f32 %v1470_v34, %v744_v33 }
 0x505   :  { %v1954_v37 = vadd.f32 %v746_v36, %v745_v35 }
 0x507   :  { %v748_v38 = vpack.c.bf16 %v1954_v37, %v1954_v37 }
 0x509   :  { %1138 = vst [vmem:[%s2092_s4 + $0x10] sm:$0xf] %v748_v38  ;;  %790 = vmatmul.mubr.bf16.vlgmr.msra.gmra.mxu0 %v748_v38  ;;  %1343 = vmatmul.mubr.bf16.vlgmr.msra.gmra.mxu1 %v748_v38  ;;  %v868_v38 = vunpack.c.h.bf16 %v2002_v45 }
 0x50a   :  { %870 = vmatpush1.bf16.msra.mxu0 %v1550_v3  ;;  %1347 = vmatpush3.bf16.msra.mxu1 %v1587_v9  ;;  %v1139_v3 = vld [vmem:[%s2090_s0 + $0x3c] sm:$0xff] }
 0x50b   :  { %871 = vmatprep.subr.bf16.mxu0 %v1558_v4  ;;  %1348 = vmatprep.subr.bf16.mxu1 %v1512_v1  ;;  %v754_v4 = vunpack.c.l.bf16 %v1139_v3 }
 0x50c   :  { %901 = vmatprep.mubr.bf16.mxu0 %v1513_v2  ;;  %1362 = vmatprep.mubr.msk.bf16.mxu1 %vm1514_vm0, %v1512_v1 }
 0x50e   :  { %872 = vmatpush1.bf16.msra.mxu0 %v1564_v5  ;;  %1349 = vmatpush3.bf16.msra.mxu1 %v1605_v12 }
 0x50f   :  { %873 = vmatprep.subr.bf16.mxu0 %v1570_v6  ;;  %1350 = vmatprep.subr.bf16.mxu1 %v1512_v1 }
 0x512   :  { %874 = vmatpush1.bf16.msra.mxu0 %v1576_v7  ;;  %1351 = vmatpush3.bf16.msra.mxu1 %v1624_v15 }
 0x513   :  { %875 = vmatprep.subr.bf16.mxu0 %v1582_v8  ;;  %1352 = vmatprep.subr.bf16.mxu1 %v1512_v1 }
 0x516   :  { %876 = vmatpush1.bf16.msra.mxu0 %v1593_v10  ;;  %1353 = vmatpush3.bf16.msra.mxu1 %v1643_v18 }
 0x517   :  { %877 = vmatprep.subr.bf16.mxu0 %v1599_v11  ;;  %1354 = vmatprep.subr.bf16.mxu1 %v1512_v1  ;;  %v755_v11 = vunpack.c.h.bf16 %v1139_v3 }
 0x51a   :  { %878 = vmatpush1.bf16.msra.mxu0 %v1611_v13  ;;  %1355 = vmatpush3.bf16.msra.mxu1 %v1662_v21 }
 0x51b   :  { %879 = vmatprep.subr.bf16.mxu0 %v1617_v14  ;;  %1356 = vmatprep.subr.bf16.mxu1 %v1512_v1 }
 0x51e   :  { %880 = vmatpush1.bf16.msra.mxu0 %v1631_v16  ;;  %1357 = vmatpush3.bf16.msra.mxu1 %v1681_v24 }
 0x51f   :  { %881 = vmatprep.subr.bf16.mxu0 %v1637_v17  ;;  %1358 = vmatprep.subr.bf16.mxu1 %v1512_v1 }
 0x522   :  { %882 = vmatpush1.bf16.msra.mxu0 %v1650_v19  ;;  %1359 = vmatpush3.bf16.msra.mxu1 %v1691_v26 }
 0x523   :  { %883 = vmatprep.subr.bf16.mxu0 %v1656_v20  ;;  %1360 = vmatprep.subr.bf16.mxu1 %v1512_v1 }
 0x526   :  { %884 = vmatpush1.bf16.msra.mxu0 %v1669_v22  ;;  %1361 = vmatpush3.bf16.msra.mxu1 %v1701_v27 }
 0x527   :  { %981 = vmatprep.subr.bf16.mxu0 %v1543_v0  ;;  %1366 = vmatprep.subr.bf16.mxu1 %v1512_v1 }
 0x5c9   :  { %v791_v5 = vpop.f32.mrf.mxu0  ;;  %v832_v6 = vpop.f32.mrf.mxu1 }
 0x5ca   :  { %v838_v7 = vadd.f32 %v791_v5, %v754_v4  ;;  %v852_v49 = vadd.f32 %v1745_v46, %v832_v6 }
 0x5cb   :  { %v793_v8 = vpop.f32.mrf.mxu0  ;;  %v1344_v9 = vpop.f32.mrf.mxu1 }
 0x5cc   :  { %v1141_v10 = vmul.f32 -1.442695, %v838_v7  ;;  %v845_v0 = vadd.f32 %v793_v8, %v755_v11 }
 0x5cd   :  { %v795_v13 = vpop.f32.mrf.mxu0  ;;  %v835_v14 = vpop.f32.mrf.mxu1 }
 0x5ce   :  { %1471 = vpow2.f32 %v1141_v10  ;;  %v1142_v40 = vmul.f32 -1.442695, %v845_v0 }
 0x5cf   :  { %v796_v30 = vpop.f32.mrf.mxu0  ;;  %v1345_v39 = vpop.f32.mrf.mxu1 }
 0x5d0   :  { %1473 = vpow2.f32 %v1142_v40  ;;  %v1149_v30 = vld [vmem:[%s2090_s0 + $0x54] sm:$0xff] }
 0x5d1   :  { %v978_v39 = vunpack.c.l.bf16 %v1149_v30 }
 0x5db   :  { %v1472_v42 = vpop.eup %1471 }
 0x5dc   :  { %v842_v43 = vadd.f32 1.0, %v1472_v42 }
 0x5dd   :  { %v1474_v44 = vpop.eup %1473 }
 0x5de   :  { %1475 = vrcp.f32 %v842_v43  ;;  %v849_v47 = vadd.f32 1.0, %v1474_v44 }
 0x5e0   :  { %1477 = vrcp.f32 %v849_v47  ;;  %v979_v47 = vunpack.c.h.bf16 %v1149_v30 }
 0x5eb   :  { %v1476_v50 = vpop.eup %1475 }
 0x5ec   :  { %v853_v41 = vmul.f32 %v1476_v50, %v852_v49 }
 0x5ed   :  { %v1478_v52 = vpop.eup %1477 }
 0x5ee   :  { %v854_v51 = vadd.f32 %v853_v41, %v756_v48  ;;  %v856_v53 = vsub.f32 1.0, %v1478_v52  ;;  %v858_v56 = vmul.f32 %v1478_v52, %v1954_v37 }
 0x5f0   :  { %1479 = vtanh.f32 %v854_v51 }
 0x5fd   :  { %v1480_v54 = vpop.eup %1479 }
 0x5fe   :  { %v857_v55 = vmul.f32 %v1480_v54, %v856_v53 }
 0x600   :  { %v2007_v57 = vadd.f32 %v858_v56, %v857_v55  ;;  %v1150_v56 = vld [vmem:[%s2090_s0 + $0x5c] sm:$0xf] }
 0x602   :  { %v860_v58 = vpack.c.bf16 %v2007_v57, %v2007_v57 }
 0x604   :  { %1143 = vst [vmem:[%s2092_s4 + $0x14] sm:$0xf] %v860_v58  ;;  %902 = vmatmul.mubr.bf16.vlgmr.msra.gmra.mxu0 %v860_v58  ;;  %1363 = vmatmul.mubr.bf16.vlgmr.msra.gmra.mxu1 %v860_v58  ;;  %v980_v58 = vunpack.c.l.bf16 %v1150_v56 }
 0x605   :  { %982 = vmatpush1.bf16.msra.mxu0 %v1501_v59  ;;  %1367 = vmatpush3.bf16.msra.mxu1 %v1502_v60 }
 0x606   :  { %983 = vmatprep.subr.bf16.mxu0 %v1503_v61  ;;  %1368 = vmatprep.subr.bf16.mxu1 %v1512_v1 }
 0x607   :  { %1013 = vmatprep.mubr.bf16.mxu0 %v1513_v2  ;;  %1382 = vmatprep.mubr.msk.bf16.mxu1 %vm1514_vm0, %v1512_v1  ;;  %v1506_v2 = vld [vmem:[%s2088_s2 + $0x78] ss:$12 sps:$4 sm:$0xff]  }
 0x609   :  { %984 = vmatpush1.bf16.msra.mxu0 %v1504_v62  ;;  %1369 = vmatpush3.bf16.msra.mxu1 %v1605_v12  ;;  %v1508_v12 = vld [vmem:[%s2088_s2 + $0x60] ss:$12 sps:$4 sm:$0xff]  }
 0x60a   :  { %985 = vmatprep.subr.bf16.mxu0 %v1505_v63  ;;  %1370 = vmatprep.subr.bf16.mxu1 %v1512_v1 }
 0x60d   :  { %986 = vmatpush1.bf16.msra.mxu0 %v1506_v2  ;;  %1371 = vmatpush3.bf16.msra.mxu1 %v1624_v15  ;;  %v1510_v15 = vld [vmem:[%s2088_s2 + $0x48] ss:$12 sps:$4 sm:$0xff]  }
 0x60e   :  { %987 = vmatprep.subr.bf16.mxu0 %v1507_v23  ;;  %1372 = vmatprep.subr.bf16.mxu1 %v1512_v1 }
 0x611   :  { %988 = vmatpush1.bf16.msra.mxu0 %v1508_v12  ;;  %1373 = vmatpush3.bf16.msra.mxu1 %v1643_v18 }
 0x612   :  { %989 = vmatprep.subr.bf16.mxu0 %v1509_v25  ;;  %1374 = vmatprep.subr.bf16.mxu1 %v1512_v1 }
 0x615   :  { %990 = vmatpush1.bf16.msra.mxu0 %v1510_v15  ;;  %1375 = vmatpush3.bf16.msra.mxu1 %v1662_v21 }
 0x616   :  { %991 = vmatprep.subr.bf16.mxu0 %v1511_v28  ;;  %1376 = vmatprep.subr.bf16.mxu1 %v1512_v1 }
 0x619   :  { %992 = vmatpush1.bf16.msra.mxu0 %v1631_v16  ;;  %1377 = vmatpush3.bf16.msra.mxu1 %v1681_v24  ;;  %v1144_v16 = vld [vmem:[%s2090_s0 + $0x48] sm:$0xff] }
 0x61a   :  { %993 = vmatprep.subr.bf16.mxu0 %v1637_v17  ;;  %1378 = vmatprep.subr.bf16.mxu1 %v1512_v1  ;;  %v866_v18 = vunpack.c.l.bf16 %v1144_v16 }
 0x61d   :  { %994 = vmatpush1.bf16.msra.mxu0 %v1650_v19  ;;  %1379 = vmatpush3.bf16.msra.mxu1 %v1691_v26  ;;  %v867_v26 = vunpack.c.h.bf16 %v1144_v16 }
 0x61e   :  { %995 = vmatprep.subr.bf16.mxu0 %v1656_v20  ;;  %1380 = vmatprep.subr.bf16.mxu1 %v1512_v1 }
 0x621   :  { %996 = vmatpush1.bf16.msra.mxu0 %v1669_v22  ;;  %1381 = vmatpush3.bf16.msra.mxu1 %v1701_v27 }
 0x6c4   :  { %v903_v17 = vpop.f32.mrf.mxu0  ;;  %v944_v21 = vpop.f32.mrf.mxu1 }
 0x6c5   :  { %v950_v24 = vadd.f32 %v903_v17, %v866_v18  ;;  %v964_v3 = vadd.f32 %v1745_v46, %v944_v21 }
 0x6c6   :  { %v905_v29 = vpop.f32.mrf.mxu0  ;;  %v1364_v19 = vpop.f32.mrf.mxu1 }
 0x6c7   :  { %v1146_v31 = vmul.f32 -1.442695, %v950_v24  ;;  %v957_v22 = vadd.f32 %v905_v29, %v867_v26 }
 0x6c8   :  { %v907_v32 = vpop.f32.mrf.mxu0  ;;  %v947_v20 = vpop.f32.mrf.mxu1 }
 0x6c9   :  { %1481 = vpow2.f32 %v1146_v31  ;;  %v1147_v34 = vmul.f32 -1.442695, %v957_v22 }
 0x6ca   :  { %v908_v1 = vpop.f32.mrf.mxu0  ;;  %v1365_v33 = vpop.f32.mrf.mxu1 }
 0x6cb   :  { %1483 = vpow2.f32 %v1147_v34 }
 0x6d6   :  { %v1482_v27 = vpop.eup %1481 }
 0x6d7   :  { %v954_v35 = vadd.f32 1.0, %v1482_v27 }
 0x6d8   :  { %v1484_v36 = vpop.eup %1483 }
 0x6d9   :  { %1485 = vrcp.f32 %v954_v35  ;;  %v961_v37 = vadd.f32 1.0, %v1484_v36 }
 0x6db   :  { %1487 = vrcp.f32 %v961_v37 }
 0x6e6   :  { %v1486_v4 = vpop.eup %1485 }
 0x6e7   :  { %v965_v5 = vmul.f32 %v1486_v4, %v964_v3 }
 0x6e8   :  { %v1488_v7 = vpop.eup %1487 }
 0x6e9   :  { %v966_v6 = vadd.f32 %v965_v5, %v868_v38  ;;  %v968_v8 = vsub.f32 1.0, %v1488_v7  ;;  %v970_v11 = vmul.f32 %v1488_v7, %v2007_v57 }
 0x6eb   :  { %1489 = vtanh.f32 %v966_v6 }
 0x6f8   :  { %v1490_v9 = vpop.eup %1489 }
 0x6f9   :  { %v969_v10 = vmul.f32 %v1490_v9, %v968_v8 }
 0x6fb   :  { %v971_v13 = vadd.f32 %v970_v11, %v969_v10 }
 0x6fd   :  { %v972_v14 = vpack.c.bf16 %v971_v13, %v971_v13 }
 0x6ff   :  { %1148 = vst [vmem:[%s2092_s4 + $0x18] sm:$0xf] %v972_v14  ;;  %1014 = vmatmul.mubr.bf16.vlgmr.msra.gmra.mxu0 %v972_v14  ;;  %1383 = vmatmul.mubr.bf16.vlgmr.msra.gmra.mxu1 %v972_v14 }
 0x7bf   :  { %v1015_v0 = vpop.f32.mrf.mxu0  ;;  %v1056_v40 = vpop.f32.mrf.mxu1 }
 0x7c0   :  { %v1062_v42 = vadd.f32 %v1015_v0, %v978_v39  ;;  %v1076_v59 = vadd.f32 %v1745_v46, %v1056_v40 }
 0x7c1   :  { %v1017_v43 = vpop.f32.mrf.mxu0  ;;  %v1384_v44 = vpop.f32.mrf.mxu1 }
 0x7c2   :  { %v1151_v45 = vmul.f32 -1.442695, %v1062_v42  ;;  %v1069_v51 = vadd.f32 %v1017_v43, %v979_v47 }
 0x7c3   :  { %v1019_v48 = vpop.f32.mrf.mxu0  ;;  %v1059_v49 = vpop.f32.mrf.mxu1 }
 0x7c4   :  { %1491 = vpow2.f32 %v1151_v45  ;;  %v1152_v52 = vmul.f32 -1.442695, %v1069_v51 }
 0x7c5   :  { %v1020_v50 = vpop.f32.mrf.mxu0  ;;  %v1385_v41 = vpop.f32.mrf.mxu1 }
 0x7c6   :  { %1493 = vpow2.f32 %v1152_v52 }
 0x7d1   :  { %v1492_v53 = vpop.eup %1491 }
 0x7d2   :  { %v1066_v54 = vadd.f32 1.0, %v1492_v53 }
 0x7d3   :  { %v1494_v55 = vpop.eup %1493 }
 0x7d4   :  { %1495 = vrcp.f32 %v1066_v54  ;;  %v1073_v57 = vadd.f32 1.0, %v1494_v55 }
 0x7d6   :  { %1497 = vrcp.f32 %v1073_v57 }
 0x7e1   :  { %v1496_v60 = vpop.eup %1495 }
 0x7e2   :  { %v1077_v61 = vmul.f32 %v1496_v60, %v1076_v59 }
 0x7e3   :  { %v1498_v63 = vpop.eup %1497 }
 0x7e4   :  { %v1078_v62 = vadd.f32 %v1077_v61, %v980_v58  ;;  %v1080_v2 = vsub.f32 1.0, %v1498_v63  ;;  %v1082_v25 = vmul.f32 %v1498_v63, %v971_v13 }
 0x7e6   :  { %1499 = vtanh.f32 %v1078_v62 }
 0x7f3   :  { %v1500_v23 = vpop.eup %1499 }
 0x7f4   :  { %v1081_v12 = vmul.f32 %v1500_v23, %v1080_v2 }
 0x7f6   :  { %v1083_v15 = vadd.f32 %v1082_v25, %v1081_v12 }
 0x7f8   :  { %v1084_v28 = vpack.c.bf16 %v1083_v15, %v1083_v15 }
 0x7fa   :  { %1153 = vst [vmem:[%s2092_s4 + $0x1c] sm:$0xf] %v1084_v28 }

</bundles_post_ra>
